<compile_context>
chip_gen: v5e
topology: v5e:2x2
jax: 0.10.0
libtpu: 0.0.40
codegen_flags: <defaults>
</compile_context>

<pallas_src>
import jax
import jax.numpy as jnp
from jax.experimental import pallas as pl
from jax.experimental.pallas import tpu as pltpu

_BN_EPS = 1e-5
_TAPS = tuple((dy, dx) for dy in range(3) for dx in range(3))


def _mosaic_params(working_set_bytes):
    """Parallel grid axis (uses both v7x TensorCores) + explicit VMEM limit."""
    limit = int(min(max(2 * working_set_bytes, 32 * 1024 * 1024),
                    48 * 1024 * 1024))          # stays under v7x's 64 MiB VMEM
    return pltpu.CompilerParams(dimension_semantics=("parallel",),
                                vmem_limit_bytes=limit)


def _pick_tile_rows(H, N, W, C, downsample, budget=8 * 1024 * 1024):
    """Largest row tile whose per-step working set fits a conservative VMEM
    budget (sized so double-buffering still fits v7x's 64 MiB), keeping >= 2
    grid steps when possible so pipelining / megacore sharding has work."""
    def nbytes(th):
        m = th * N * W
        return 4 * (9 * m * C                      # im2col scratch
                    + (th + 2) * N * (W + 2) * C   # padded-tile scratch
                    + 4 * m * C)                   # in/out blocks, double-buffered
    cands = [t for t in range(1, H + 1)
             if H % t == 0 and (not downsample or t % 2 == 0)]
    fitting = [t for t in cands if nbytes(t) <= budget] or cands[:1]
    multi = [t for t in fitting if H // t >= 2]
    return max(multi) if multi else max(fitting)


def _conv_pass(src, w, b, scale, shift, *, N, H, W, Cin, Cout, TH, compute_dtype):
    """One tiled 3x3 conv pass over a (H, N, W, Cin) activation.

    Per TH-row grid step: optionally apply the previous layer's folded
    BN + ReLU (scale/shift, including to the halo rows), build the zero-padded
    tile in VMEM (border-only memset), build im2col once in VMEM, run a single
    fused-K MXU matmul + bias, and emit per-tile BN partial sums via ones-row
    matmuls.  Outputs: pre-BN activation (H, N, W, Cout) and (nT, 2, Cout)."""
    nT = H // TH
    M = TH * N * W
    normalize = scale is not None

    def kernel(*refs):
        if normalize:
            xc, xt, xb, sc, sh, wr, br, yo, sto, pad, col = refs
        else:
            xc, xt, xb, wr, br, yo, sto, pad, col = refs
        i = pl.program_id(0)
        last = pl.num_programs(0) - 1

        if normalize:
            g = sc[...].reshape(1, 1, 1, Cin)
            t = sh[...].reshape(1, 1, 1, Cin)
            act = lambda v: jnp.maximum(v * g + t, 0.0)   # folded BN + ReLU
        else:
            act = lambda v: v

        cur = act(xc[...])                                 # (TH, N, W, Cin)
        top = jnp.where(i > 0, act(xt[...]), 0.0)          # (1,  N, W, Cin)
        bot = jnp.where(i < last, act(xb[...]), 0.0)

        # Zero-padded tile: only the 1-pixel border columns are memset; the
        # interior and halo rows are each written exactly once.
        zcol = jnp.zeros((TH + 2, N, 1, Cin), jnp.float32)
        pad[:, :, 0:1, :] = zcol
        pad[:, :, W + 1:W + 2, :] = zcol
        pad[1:TH + 1, :, 1:W + 1, :] = cur
        pad[0:1, :, 1:W + 1, :] = top
        pad[TH + 1:TH + 2, :, 1:W + 1, :] = bot

        # im2col built once into VMEM -> a single fused-K (9*Cin) MXU matmul.
        for k, (dy, dx) in enumerate(_TAPS):
            col[:, k * Cin:(k + 1) * Cin] = (
                pad[dy:dy + TH, :, dx:dx + W, :].reshape(M, Cin))
        acc = jnp.dot(col[...].astype(compute_dtype),
                      wr[...].astype(compute_dtype),
                      preferred_element_type=jnp.float32) + br[...]

        # BN partial sums on the MXU (ones-row matmuls) instead of an XLU
        # cross-sublane reduce at Cout/128 lane occupancy.
        ones_row = jnp.ones((1, M), jnp.float32)
        s = jnp.dot(ones_row, acc, preferred_element_type=jnp.float32)
        ss = jnp.dot(ones_row, acc * acc, preferred_element_type=jnp.float32)
        sto[...] = jnp.concatenate([s, ss], axis=0).reshape(1, 2, Cout)

        yo[...] = acc.reshape(TH, N, W, Cout)

    in_specs = [
        pl.BlockSpec((TH, N, W, Cin), lambda i: (i, 0, 0, 0)),
        pl.BlockSpec((1, N, W, Cin),
                     lambda i: (jnp.maximum(i * TH - 1, 0), 0, 0, 0)),
        pl.BlockSpec((1, N, W, Cin),
                     lambda i: (jnp.minimum((i + 1) * TH, H - 1), 0, 0, 0)),
    ]
    args = [src, src, src]
    if normalize:
        in_specs += [pl.BlockSpec((1, Cin), lambda i: (0, 0)),
                     pl.BlockSpec((1, Cin), lambda i: (0, 0))]
        args += [scale, shift]
    in_specs += [pl.BlockSpec((9 * Cin, Cout), lambda i: (0, 0)),
                 pl.BlockSpec((1, Cout), lambda i: (0, 0))]
    args += [w, b]

    out_specs = [pl.BlockSpec((TH, N, W, Cout), lambda i: (i, 0, 0, 0)),
                 pl.BlockSpec((1, 2, Cout), lambda i: (i, 0, 0))]
    out_shape = (jax.ShapeDtypeStruct((H, N, W, Cout), jnp.float32),
                 jax.ShapeDtypeStruct((nT, 2, Cout), jnp.float32))
    scratch = [pltpu.VMEM((TH + 2, N, W + 2, Cin), jnp.float32),
               pltpu.VMEM((M, 9 * Cin), jnp.float32)]

    wset = 4 * (2 * M * (Cin + Cout)
                + (TH + 2) * N * (W + 2) * Cin + 9 * M * Cin)
    return pl.pallas_call(
        kernel,
        grid=(nT,),
        in_specs=in_specs,
        out_specs=out_specs,
        out_shape=out_shape,
        scratch_shapes=scratch,
        compiler_params=_mosaic_params(wset),
    )(*args)


def _fold_bn(partials, count, gamma, beta):
    """Reduce per-tile (sum, sum_sq) partials into folded per-channel BN
    scale/shift (training-mode: biased variance over the whole batch).  Tiny
    XLA glue between the pipelined passes."""
    s = jnp.sum(partials, axis=0)                         # (2, C)
    mean = s[0] / count
    var = jnp.maximum(s[1] / count - mean * mean, 0.0)
    scale = gamma.reshape(-1) * jax.lax.rsqrt(var + _BN_EPS)
    shift = beta.reshape(-1) - mean * scale
    return scale.reshape(1, -1), shift.reshape(1, -1)


def _finalize_pass(y_pre, x_l, scale, shift, params, *, N, H, W, Cin, Cout, TH,
                   same_ch, downsample, skip):
    """Final fused pass: folded BN + ReLU, skip add (residual or channel-cat),
    and optionally the 1x1 stride-2 downsample of both branches as a single
    matmul (out_e + x_e) @ wd + 2*bd (same numerics as the PyTorch sequence)."""
    nT = H // TH
    if downsample:
        Ho, Wo, THo = H // 2, W // 2, TH // 2
    else:
        Ho, Wo, THo = H, W, TH

    def kernel(*refs):
        idx = 0
        y_ref = refs[idx]; idx += 1
        x_ref = None
        if skip:
            x_ref = refs[idx]; idx += 1
        sc_ref, sh_ref = refs[idx], refs[idx + 1]; idx += 2
        if downsample:
            wd_ref, bd_ref = refs[idx], refs[idx + 1]; idx += 2
        out_ref = refs[idx]

        g = sc_ref[...].reshape(1, 1, 1, Cout)
        t = sh_ref[...].reshape(1, 1, 1, Cout)

        if not downsample:
            z = jnp.maximum(y_ref[...] * g + t, 0.0)            # (TH, N, W, Cout)
            if skip:
                if same_ch:
                    z = z + x_ref[...]
                else:   # out_ch == 2*in_ch: skip adds cat(identity, identity)
                    xr = x_ref[...]
                    z = z + jnp.concatenate([xr, xr], axis=-1)
            out_ref[...] = z
        else:
            rows = TH // 2
            # even rows of this tile (tile start row is even since TH is even)
            y_e = y_ref[...].reshape(rows, 2, N, W, Cout)[:, 0]
            z = jnp.maximum(y_e * g + t, 0.0)                   # (rows, N, W, Cout)
            if skip:
                x_e = x_ref[...].reshape(rows, 2, N, W, Cout)[:, 0]
                z = z + x_e
            # even columns, then the fused 1x1 stride-2 conv (bias once/twice)
            z = z.reshape(rows, N, W // 2, 2, Cout)[:, :, :, 0, :]
            m = z.reshape(rows * N * (W // 2), Cout)
            o = jnp.dot(m, wd_ref[...], preferred_element_type=jnp.float32)
            o = o + (2.0 if skip else 1.0) * bd_ref[...]
            out_ref[...] = o.reshape(rows, N, W // 2, Cout)

    in_specs = [pl.BlockSpec((TH, N, W, Cout), lambda i: (i, 0, 0, 0))]
    args = [y_pre]
    if skip:
        in_specs.append(pl.BlockSpec((TH, N, W, Cin), lambda i: (i, 0, 0, 0)))
        args.append(x_l)
    in_specs += [pl.BlockSpec((1, Cout), lambda i: (0, 0)),
                 pl.BlockSpec((1, Cout), lambda i: (0, 0))]
    args += [scale, shift]
    if downsample:
        in_specs += [pl.BlockSpec((Cin, Cout), lambda i: (0, 0)),
                     pl.BlockSpec((1, Cout), lambda i: (0, 0))]
        args += [params["wd"], params["bd"]]

    out_spec = pl.BlockSpec((THo, N, Wo, Cout), lambda i: (i, 0, 0, 0))
    out_shape = jax.ShapeDtypeStruct((Ho, N, Wo, Cout), jnp.float32)
    wset = 4 * 2 * (TH * N * W * (Cin + Cout) + THo * N * Wo * Cout)
    return pl.pallas_call(
        kernel,
        grid=(nT,),
        in_specs=in_specs,
        out_specs=out_spec,
        out_shape=out_shape,
        compiler_params=_mosaic_params(wset),
    )(*args)


def skip_block_dn(x_nchw, params, *, downsample=False, skip_connections=True,
                  tile_rows=None, compute_dtype=jnp.float32):
    """Forward pass of DLStudio's SkipBlockDN (see module docstring)."""
    N, Ci, H, W = x_nchw.shape
    Co = params["w1"].shape[-1]
    same_ch = (Ci == Co)
    if downsample:
        assert same_ch, "downsampler(in_ch->out_ch) only shape-valid when in_ch == out_ch"
        assert H % 2 == 0 and W % 2 == 0
    if skip_connections and not same_ch:
        assert Co == 2 * Ci, "channel-cat skip requires out_ch == 2*in_ch"

    # Rows-major layout (H, N, W, C): row tiling keeps the conv halo to 1 row.
    x_l = jnp.transpose(x_nchw.astype(jnp.float32), (2, 0, 3, 1))
    TH = tile_rows or _pick_tile_rows(H, N, W, max(Ci, Co), downsample)
    count = float(N * H * W)

    # pass 1: conv1 -> pre-BN activation + BN1 partial sums
    y1, st1 = _conv_pass(x_l, params["w1"], params["b1"], None, None,
                         N=N, H=H, W=W, Cin=Ci, Cout=Co, TH=TH,
                         compute_dtype=compute_dtype)
    scale1, shift1 = _fold_bn(st1, count, params["g1"], params["be1"])

    if same_ch:
        # pass 2: fused BN1+ReLU then conv2 -> pre-BN activation + BN2 partials
        y2, st2 = _conv_pass(y1, params["w2"], params["b2"], scale1, shift1,
                             N=N, H=H, W=W, Cin=Co, Cout=Co, TH=TH,
                             compute_dtype=compute_dtype)
        scale2, shift2 = _fold_bn(st2, count, params["g2"], params["be2"])
        y_pre, scale_f, shift_f = y2, scale2, shift2
    else:
        y_pre, scale_f, shift_f = y1, scale1, shift1

    # pass 3: fused BN+ReLU + skip add (+ fused 1x1 stride-2 downsample)
    out_l = _finalize_pass(y_pre, x_l, scale_f, shift_f, params,
                           N=N, H=H, W=W, Cin=Ci, Cout=Co, TH=TH,
                           same_ch=same_ch, downsample=downsample,
                           skip=skip_connections)
    return jnp.transpose(out_l, (1, 3, 0, 2))      # (Ho, N, Wo, Co) -> NCHW


def init_params(key, in_ch, out_ch, downsample=False):
    """Deterministic synthetic parameters matching the nn.Module's shapes.
    Conv weights are stored as (kh*kw*cin, cout) rows ordered (dy, dx, cin)."""
    ks = jax.random.split(key, 4)

    def conv_w(k, taps, cin_declared, cin_used, cout):
        bound = float((cin_declared * taps) ** -0.5)   # PyTorch default init bound
        wgt = jax.random.uniform(k, (taps * cin_used, cout), jnp.float32, -bound, bound)
        bia = jax.random.uniform(jax.random.fold_in(k, 1), (1, cout),
                                 jnp.float32, -bound, bound)
        return wgt, bia

    w1, b1 = conv_w(ks[0], 9, in_ch, in_ch, out_ch)
    # convo2 is declared Conv2d(in_ch, out_ch) but only ever applied when
    # in_ch == out_ch, so its actual input channel count is out_ch.
    w2, b2 = conv_w(ks[1], 9, in_ch, out_ch, out_ch)
    params = {"w1": w1, "b1": b1,
              "g1": jnp.ones((1, out_ch), jnp.float32),
              "be1": jnp.zeros((1, out_ch), jnp.float32),
              "w2": w2, "b2": b2,
              "g2": jnp.ones((1, out_ch), jnp.float32),
              "be2": jnp.zeros((1, out_ch), jnp.float32)}
    if downsample:
        wd, bd = conv_w(ks[2], 1, in_ch, in_ch, out_ch)
        params["wd"], params["bd"] = wd, bd
    return params


def _reference_forward(x, params, *, downsample, skip_connections):
    """Pure-JAX (XLA) reference replicating the PyTorch module."""
    N, Ci, H, W = x.shape
    Co = params["w1"].shape[-1]
    same_ch = (Ci == Co)
    hi = jax.lax.Precision.HIGHEST

    def conv3x3(v, w, b):
        cin, cout = v.shape[1], w.shape[-1]
        w4 = jnp.transpose(w.reshape(3, 3, cin, cout), (3, 2, 0, 1))   # OIHW
        y = jax.lax.conv_general_dilated(
            v, w4, (1, 1), ((1, 1), (1, 1)),
            dimension_numbers=("NCHW", "OIHW", "NCHW"), precision=hi)
        return y + b.reshape(1, cout, 1, 1)

    def bn_relu(v, g, be):
        mean = jnp.mean(v, axis=(0, 2, 3), keepdims=True)
        var = jnp.mean(jnp.square(v - mean), axis=(0, 2, 3), keepdims=True)
        y = (v - mean) * jax.lax.rsqrt(var + _BN_EPS)
        y = y * g.reshape(1, -1, 1, 1) + be.reshape(1, -1, 1, 1)
        return jnp.maximum(y, 0.0)

    identity = x
    out = bn_relu(conv3x3(x, params["w1"], params["b1"]), params["g1"], params["be1"])
    if same_ch:
        out = bn_relu(conv3x3(out, params["w2"], params["b2"]), params["g2"], params["be2"])
    if downsample:
        wd = jnp.transpose(params["wd"], (1, 0)).reshape(Co, Ci, 1, 1)
        def ds(v):
            y = jax.lax.conv_general_dilated(
                v, wd, (2, 2), ((0, 0), (0, 0)),
                dimension_numbers=("NCHW", "OIHW", "NCHW"), precision=hi)
            return y + params["bd"].reshape(1, Co, 1, 1)
        out, identity = ds(out), ds(identity)
    if skip_connections:
        out = out + (identity if same_ch
                     else jnp.concatenate([identity, identity], axis=1))
    return out


if __name__ == "__main__":
    key = jax.random.PRNGKey(0)
    kx, kp1, kp2, kp3 = jax.random.split(key, 4)

    N, C, H, W = 2, 4, 16, 16
    x = jax.random.normal(kx, (N, C, H, W), dtype=jnp.float32)

    # Case 1: in_ch == out_ch, residual skip (primary config).
    p1 = init_params(kp1, C, C, downsample=False)
    y = skip_block_dn(x, p1, downsample=False, skip_connections=True)
    jax.block_until_ready(y)
    r = _reference_forward(x, p1, downsample=False, skip_connections=True)
    assert y.shape == (N, C, H, W) and y.dtype == jnp.float32
    assert float(jnp.max(jnp.abs(y - r))) < 1e-2

    # Case 2: downsample (fused stride-2 1x1 conv + skip in the final kernel).
    p2 = init_params(kp2, C, C, downsample=True)
    y_ds = skip_block_dn(x, p2, downsample=True, skip_connections=True)
    jax.block_until_ready(y_ds)
    r_ds = _reference_forward(x, p2, downsample=True, skip_connections=True)
    assert y_ds.shape == (N, C, H // 2, W // 2)
    assert float(jnp.max(jnp.abs(y_ds - r_ds))) < 1e-2

    # Case 3: in_ch != out_ch (out_ch == 2*in_ch), channel-cat skip.
    p3 = init_params(kp3, C, 2 * C, downsample=False)
    y_up = skip_block_dn(x, p3, downsample=False, skip_connections=True)
    jax.block_until_ready(y_up)
    r_up = _reference_forward(x, p3, downsample=False, skip_connections=True)
    assert y_up.shape == (N, 2 * C, H, W)
    assert float(jnp.max(jnp.abs(y_up - r_up))) < 1e-2

    print("KERNEL_OK")
</pallas_src>

<mosaic_0001>
module attributes {stable_mosaic.version = 11 : i64} {
  func.func @kernel(%arg0: i32, %arg1: memref<8x2x16x4xf32, #tpu.memory_space<vmem>>, %arg2: memref<1x2x16x4xf32, #tpu.memory_space<vmem>>, %arg3: memref<1x2x16x4xf32, #tpu.memory_space<vmem>>, %arg4: memref<36x4xf32, #tpu.memory_space<vmem>>, %arg5: memref<1x4xf32, #tpu.memory_space<vmem>>, %arg6: memref<8x2x16x4xf32, #tpu.memory_space<vmem>>, %arg7: memref<1x2x4xf32, #tpu.memory_space<vmem>>, %arg8: memref<10x2x18x4xf32, #tpu.memory_space<vmem>>, %arg9: memref<256x36xf32, #tpu.memory_space<vmem>>) attributes {dimension_semantics = [#tpu.dimension_semantics<parallel>], iteration_bounds = array<i64: 2>, scalar_prefetch = 0 : i64, scratch_operands = 2 : i64, tpu.core_type = #tpu.core_type<tc>, window_params = [{transform_indices = @transform_0, window_bounds = array<i64: 8, 2, 16, 4>}, {transform_indices = @transform_1, window_bounds = array<i64: 1, 2, 16, 4>}, {transform_indices = @transform_2, window_bounds = array<i64: 1, 2, 16, 4>}, {pipeline_mode = #tpu.pipeline_mode<synchronous>, transform_indices = @transform_3, window_bounds = array<i64: 36, 4>}, {pipeline_mode = #tpu.pipeline_mode<synchronous>, transform_indices = @transform_4, window_bounds = array<i64: 1, 4>}, {transform_indices = @transform_5, window_bounds = array<i64: 8, 2, 16, 4>}, {transform_indices = @transform_6, window_bounds = array<i64: 1, 2, 4>}]} {
    %c0 = arith.constant 0 : index
    %c0_0 = arith.constant 0 : index
    %c0_1 = arith.constant 0 : index
    %c0_2 = arith.constant 0 : index
    %0 = vector.load %arg1[%c0, %c0_0, %c0_1, %c0_2] : memref<8x2x16x4xf32, #tpu.memory_space<vmem>>, vector<8x2x16x4xf32>
    %c0_i32 = arith.constant 0 : i32
    %1 = arith.cmpi sgt, %arg0, %c0_i32 : i32
    %c0_3 = arith.constant 0 : index
    %c0_4 = arith.constant 0 : index
    %c0_5 = arith.constant 0 : index
    %c0_6 = arith.constant 0 : index
    %2 = vector.load %arg2[%c0_3, %c0_4, %c0_5, %c0_6] : memref<1x2x16x4xf32, #tpu.memory_space<vmem>>, vector<1x2x16x4xf32>
    %cst = arith.constant 0.000000e+00 : f32
    %3 = vector.broadcast %cst : f32 to vector<1x2x16x4xf32>
    %4 = arith.select %1, %2, %3 : vector<1x2x16x4xf32>
    %c1_i32 = arith.constant 1 : i32
    %5 = arith.cmpi slt, %arg0, %c1_i32 : i32
    %c0_7 = arith.constant 0 : index
    %c0_8 = arith.constant 0 : index
    %c0_9 = arith.constant 0 : index
    %c0_10 = arith.constant 0 : index
    %6 = vector.load %arg3[%c0_7, %c0_8, %c0_9, %c0_10] : memref<1x2x16x4xf32, #tpu.memory_space<vmem>>, vector<1x2x16x4xf32>
    %cst_11 = arith.constant 0.000000e+00 : f32
    %7 = vector.broadcast %cst_11 : f32 to vector<1x2x16x4xf32>
    %8 = arith.select %5, %6, %7 : vector<1x2x16x4xf32>
    %cst_12 = arith.constant 0.000000e+00 : f32
    %9 = vector.broadcast %cst_12 : f32 to vector<10x2x1x4xf32>
    %c0_13 = arith.constant 0 : index
    %c0_14 = arith.constant 0 : index
    %c0_15 = arith.constant 0 : index
    %c0_16 = arith.constant 0 : index
    %10 = vector.load %arg8[%c0_13, %c0_14, %c0_15, %c0_16] : memref<10x2x18x4xf32, #tpu.memory_space<vmem>>, vector<10x2x1x4xf32>
    tpu.vector_store %arg8[%c0_13, %c0_14, %c0_15, %c0_16], %9 {strides = array<i32>} : memref<10x2x18x4xf32, #tpu.memory_space<vmem>>, vector<10x2x1x4xf32>,
    %c0_17 = arith.constant 0 : index
    %c0_18 = arith.constant 0 : index
    %c17 = arith.constant 17 : index
    %c0_19 = arith.constant 0 : index
    %11 = vector.load %arg8[%c0_17, %c0_18, %c17, %c0_19] : memref<10x2x18x4xf32, #tpu.memory_space<vmem>>, vector<10x2x1x4xf32>
    tpu.vector_store %arg8[%c0_17, %c0_18, %c17, %c0_19], %9 {strides = array<i32>} : memref<10x2x18x4xf32, #tpu.memory_space<vmem>>, vector<10x2x1x4xf32>,
    %c1 = arith.constant 1 : index
    %c0_20 = arith.constant 0 : index
    %c1_21 = arith.constant 1 : index
    %c0_22 = arith.constant 0 : index
    %12 = vector.load %arg8[%c1, %c0_20, %c1_21, %c0_22] : memref<10x2x18x4xf32, #tpu.memory_space<vmem>>, vector<8x2x16x4xf32>
    tpu.vector_store %arg8[%c1, %c0_20, %c1_21, %c0_22], %0 {strides = array<i32>} : memref<10x2x18x4xf32, #tpu.memory_space<vmem>>, vector<8x2x16x4xf32>,
    %c0_23 = arith.constant 0 : index
    %c0_24 = arith.constant 0 : index
    %c1_25 = arith.constant 1 : index
    %c0_26 = arith.constant 0 : index
    %13 = vector.load %arg8[%c0_23, %c0_24, %c1_25, %c0_26] : memref<10x2x18x4xf32, #tpu.memory_space<vmem>>, vector<1x2x16x4xf32>
    tpu.vector_store %arg8[%c0_23, %c0_24, %c1_25, %c0_26], %4 {strides = array<i32>} : memref<10x2x18x4xf32, #tpu.memory_space<vmem>>, vector<1x2x16x4xf32>,
    %c9 = arith.constant 9 : index
    %c0_27 = arith.constant 0 : index
    %c1_28 = arith.constant 1 : index
    %c0_29 = arith.constant 0 : index
    %14 = vector.load %arg8[%c9, %c0_27, %c1_28, %c0_29] : memref<10x2x18x4xf32, #tpu.memory_space<vmem>>, vector<1x2x16x4xf32>
    tpu.vector_store %arg8[%c9, %c0_27, %c1_28, %c0_29], %8 {strides = array<i32>} : memref<10x2x18x4xf32, #tpu.memory_space<vmem>>, vector<1x2x16x4xf32>,
    %c0_30 = arith.constant 0 : index
    %c0_31 = arith.constant 0 : index
    %c0_32 = arith.constant 0 : index
    %c0_33 = arith.constant 0 : index
    %15 = vector.load %arg8[%c0_30, %c0_31, %c0_32, %c0_33] : memref<10x2x18x4xf32, #tpu.memory_space<vmem>>, vector<8x2x16x4xf32>
    %16 = vector.shape_cast %15 : vector<8x2x16x4xf32> to vector<256x4xf32>
    %c0_34 = arith.constant 0 : index
    %c0_35 = arith.constant 0 : index
    %17 = vector.load %arg9[%c0_34, %c0_35] : memref<256x36xf32, #tpu.memory_space<vmem>>, vector<256x4xf32>
    tpu.vector_store %arg9[%c0_34, %c0_35], %16 {strides = array<i32>} : memref<256x36xf32, #tpu.memory_space<vmem>>, vector<256x4xf32>,
    %c0_36 = arith.constant 0 : index
    %c0_37 = arith.constant 0 : index
    %c1_38 = arith.constant 1 : index
    %c0_39 = arith.constant 0 : index
    %18 = vector.load %arg8[%c0_36, %c0_37, %c1_38, %c0_39] : memref<10x2x18x4xf32, #tpu.memory_space<vmem>>, vector<8x2x16x4xf32>
    %19 = vector.shape_cast %18 : vector<8x2x16x4xf32> to vector<256x4xf32>
    %c0_40 = arith.constant 0 : index
    %c4 = arith.constant 4 : index
    %20 = vector.load %arg9[%c0_40, %c4] : memref<256x36xf32, #tpu.memory_space<vmem>>, vector<256x4xf32>
    tpu.vector_store %arg9[%c0_40, %c4], %19 {strides = array<i32>} : memref<256x36xf32, #tpu.memory_space<vmem>>, vector<256x4xf32>,
    %c0_41 = arith.constant 0 : index
    %c0_42 = arith.constant 0 : index
    %c2 = arith.constant 2 : index
    %c0_43 = arith.constant 0 : index
    %21 = vector.load %arg8[%c0_41, %c0_42, %c2, %c0_43] : memref<10x2x18x4xf32, #tpu.memory_space<vmem>>, vector<8x2x16x4xf32>
    %22 = vector.shape_cast %21 : vector<8x2x16x4xf32> to vector<256x4xf32>
    %c0_44 = arith.constant 0 : index
    %c8 = arith.constant 8 : index
    %23 = vector.load %arg9[%c0_44, %c8] : memref<256x36xf32, #tpu.memory_space<vmem>>, vector<256x4xf32>
    tpu.vector_store %arg9[%c0_44, %c8], %22 {strides = array<i32>} : memref<256x36xf32, #tpu.memory_space<vmem>>, vector<256x4xf32>,
    %c1_45 = arith.constant 1 : index
    %c0_46 = arith.constant 0 : index
    %c0_47 = arith.constant 0 : index
    %c0_48 = arith.constant 0 : index
    %24 = vector.load %arg8[%c1_45, %c0_46, %c0_47, %c0_48] : memref<10x2x18x4xf32, #tpu.memory_space<vmem>>, vector<8x2x16x4xf32>
    %25 = vector.shape_cast %24 : vector<8x2x16x4xf32> to vector<256x4xf32>
    %c0_49 = arith.constant 0 : index
    %c12 = arith.constant 12 : index
    %26 = vector.load %arg9[%c0_49, %c12] : memref<256x36xf32, #tpu.memory_space<vmem>>, vector<256x4xf32>
    tpu.vector_store %arg9[%c0_49, %c12], %25 {strides = array<i32>} : memref<256x36xf32, #tpu.memory_space<vmem>>, vector<256x4xf32>,
    %c1_50 = arith.constant 1 : index
    %c0_51 = arith.constant 0 : index
    %c1_52 = arith.constant 1 : index
    %c0_53 = arith.constant 0 : index
    %27 = vector.load %arg8[%c1_50, %c0_51, %c1_52, %c0_53] : memref<10x2x18x4xf32, #tpu.memory_space<vmem>>, vector<8x2x16x4xf32>
    %28 = vector.shape_cast %27 : vector<8x2x16x4xf32> to vector<256x4xf32>
    %c0_54 = arith.constant 0 : index
    %c16 = arith.constant 16 : index
    %29 = vector.load %arg9[%c0_54, %c16] : memref<256x36xf32, #tpu.memory_space<vmem>>, vector<256x4xf32>
    tpu.vector_store %arg9[%c0_54, %c16], %28 {strides = array<i32>} : memref<256x36xf32, #tpu.memory_space<vmem>>, vector<256x4xf32>,
    %c1_55 = arith.constant 1 : index
    %c0_56 = arith.constant 0 : index
    %c2_57 = arith.constant 2 : index
    %c0_58 = arith.constant 0 : index
    %30 = vector.load %arg8[%c1_55, %c0_56, %c2_57, %c0_58] : memref<10x2x18x4xf32, #tpu.memory_space<vmem>>, vector<8x2x16x4xf32>
    %31 = vector.shape_cast %30 : vector<8x2x16x4xf32> to vector<256x4xf32>
    %c0_59 = arith.constant 0 : index
    %c20 = arith.constant 20 : index
    %32 = vector.load %arg9[%c0_59, %c20] : memref<256x36xf32, #tpu.memory_space<vmem>>, vector<256x4xf32>
    tpu.vector_store %arg9[%c0_59, %c20], %31 {strides = array<i32>} : memref<256x36xf32, #tpu.memory_space<vmem>>, vector<256x4xf32>,
    %c2_60 = arith.constant 2 : index
    %c0_61 = arith.constant 0 : index
    %c0_62 = arith.constant 0 : index
    %c0_63 = arith.constant 0 : index
    %33 = vector.load %arg8[%c2_60, %c0_61, %c0_62, %c0_63] : memref<10x2x18x4xf32, #tpu.memory_space<vmem>>, vector<8x2x16x4xf32>
    %34 = vector.shape_cast %33 : vector<8x2x16x4xf32> to vector<256x4xf32>
    %c0_64 = arith.constant 0 : index
    %c24 = arith.constant 24 : index
    %35 = vector.load %arg9[%c0_64, %c24] : memref<256x36xf32, #tpu.memory_space<vmem>>, vector<256x4xf32>
    tpu.vector_store %arg9[%c0_64, %c24], %34 {strides = array<i32>} : memref<256x36xf32, #tpu.memory_space<vmem>>, vector<256x4xf32>,
    %c2_65 = arith.constant 2 : index
    %c0_66 = arith.constant 0 : index
    %c1_67 = arith.constant 1 : index
    %c0_68 = arith.constant 0 : index
    %36 = vector.load %arg8[%c2_65, %c0_66, %c1_67, %c0_68] : memref<10x2x18x4xf32, #tpu.memory_space<vmem>>, vector<8x2x16x4xf32>
    %37 = vector.shape_cast %36 : vector<8x2x16x4xf32> to vector<256x4xf32>
    %c0_69 = arith.constant 0 : index
    %c28 = arith.constant 28 : index
    %38 = vector.load %arg9[%c0_69, %c28] : memref<256x36xf32, #tpu.memory_space<vmem>>, vector<256x4xf32>
    tpu.vector_store %arg9[%c0_69, %c28], %37 {strides = array<i32>} : memref<256x36xf32, #tpu.memory_space<vmem>>, vector<256x4xf32>,
    %c2_70 = arith.constant 2 : index
    %c0_71 = arith.constant 0 : index
    %c2_72 = arith.constant 2 : index
    %c0_73 = arith.constant 0 : index
    %39 = vector.load %arg8[%c2_70, %c0_71, %c2_72, %c0_73] : memref<10x2x18x4xf32, #tpu.memory_space<vmem>>, vector<8x2x16x4xf32>
    %40 = vector.shape_cast %39 : vector<8x2x16x4xf32> to vector<256x4xf32>
    %c0_74 = arith.constant 0 : index
    %c32 = arith.constant 32 : index
    %41 = vector.load %arg9[%c0_74, %c32] : memref<256x36xf32, #tpu.memory_space<vmem>>, vector<256x4xf32>
    tpu.vector_store %arg9[%c0_74, %c32], %40 {strides = array<i32>} : memref<256x36xf32, #tpu.memory_space<vmem>>, vector<256x4xf32>,
    %c0_75 = arith.constant 0 : index
    %c0_76 = arith.constant 0 : index
    %42 = vector.load %arg9[%c0_75, %c0_76] : memref<256x36xf32, #tpu.memory_space<vmem>>, vector<256x36xf32>
    %c0_77 = arith.constant 0 : index
    %c0_78 = arith.constant 0 : index
    %43 = vector.load %arg4[%c0_77, %c0_78] : memref<36x4xf32, #tpu.memory_space<vmem>>, vector<36x4xf32>
    %cst_79 = arith.constant dense<0.000000e+00> : vector<256x4xf32>
    %44 = tpu.matmul %42, %43, %cst_79 {dimension_numbers = #tpu.dot_dimension_numbers<[1], [0], [0], [1], [0, 0, 1, 1], [], []>} : vector<256x36xf32>, vector<36x4xf32>, vector<256x4xf32> -> vector<256x4xf32>
    %c0_80 = arith.constant 0 : index
    %c0_81 = arith.constant 0 : index
    %45 = vector.load %arg5[%c0_80, %c0_81] : memref<1x4xf32, #tpu.memory_space<vmem>>, vector<1x4xf32>
    %46 = vector.broadcast %45 : vector<1x4xf32> to vector<256x4xf32>
    %47 = arith.addf %44, %46 : vector<256x4xf32>
    %cst_82 = arith.constant 1.000000e+00 : f32
    %48 = vector.broadcast %cst_82 : f32 to vector<1x256xf32>
    %cst_83 = arith.constant dense<0.000000e+00> : vector<1x4xf32>
    %49 = tpu.matmul %48, %47, %cst_83 {dimension_numbers = #tpu.dot_dimension_numbers<[1], [0], [0], [1], [0, 0, 1, 1], [], []>} : vector<1x256xf32>, vector<256x4xf32>, vector<1x4xf32> -> vector<1x4xf32>
    %50 = arith.mulf %47, %47 : vector<256x4xf32>
    %cst_84 = arith.constant dense<0.000000e+00> : vector<1x4xf32>
    %51 = tpu.matmul %48, %50, %cst_84 {dimension_numbers = #tpu.dot_dimension_numbers<[1], [0], [0], [1], [0, 0, 1, 1], [], []>} : vector<1x256xf32>, vector<256x4xf32>, vector<1x4xf32> -> vector<1x4xf32>
    %52 = tpu.concatenate %49, %51 in 0 : vector<1x4xf32>, vector<1x4xf32> -> vector<2x4xf32>
    %53 = vector.shape_cast %52 : vector<2x4xf32> to vector<1x2x4xf32>
    %c0_85 = arith.constant 0 : index
    %c0_86 = arith.constant 0 : index
    %c0_87 = arith.constant 0 : index
    %54 = vector.load %arg7[%c0_85, %c0_86, %c0_87] : memref<1x2x4xf32, #tpu.memory_space<vmem>>, vector<1x2x4xf32>
    tpu.vector_store %arg7[%c0_85, %c0_86, %c0_87], %53 {strides = array<i32>} : memref<1x2x4xf32, #tpu.memory_space<vmem>>, vector<1x2x4xf32>,
    %55 = vector.shape_cast %47 : vector<256x4xf32> to vector<8x2x16x4xf32>
    %c0_88 = arith.constant 0 : index
    %c0_89 = arith.constant 0 : index
    %c0_90 = arith.constant 0 : index
    %c0_91 = arith.constant 0 : index
    %56 = vector.load %arg6[%c0_88, %c0_89, %c0_90, %c0_91] : memref<8x2x16x4xf32, #tpu.memory_space<vmem>>, vector<8x2x16x4xf32>
    tpu.vector_store %arg6[%c0_88, %c0_89, %c0_90, %c0_91], %55 {strides = array<i32>} : memref<8x2x16x4xf32, #tpu.memory_space<vmem>>, vector<8x2x16x4xf32>,
    return
  }
  func.func @transform_0(%arg0: i32) -> (i32, i32, i32, i32) {
    %c0_i32 = arith.constant 0 : i32
    %c0_i32_0 = arith.constant 0 : i32
    %c0_i32_1 = arith.constant 0 : i32
    %c0_i32_2 = arith.constant 0 : i32
    return %arg0, %c0_i32, %c0_i32_0, %c0_i32_1 : i32, i32, i32, i32
  }
  func.func @transform_1(%arg0: i32) -> (i32, i32, i32, i32) {
    %c8_i32 = arith.constant 8 : i32
    %0 = arith.muli %arg0, %c8_i32 : i32
    %c1_i32 = arith.constant 1 : i32
    %1 = arith.subi %0, %c1_i32 : i32
    %c0_i32 = arith.constant 0 : i32
    %2 = arith.maxsi %1, %c0_i32 : i32
    %c0_i32_0 = arith.constant 0 : i32
    %c0_i32_1 = arith.constant 0 : i32
    %c0_i32_2 = arith.constant 0 : i32
    %c0_i32_3 = arith.constant 0 : i32
    return %2, %c0_i32_0, %c0_i32_1, %c0_i32_2 : i32, i32, i32, i32
  }
  func.func @transform_2(%arg0: i32) -> (i32, i32, i32, i32) {
    %c1_i32 = arith.constant 1 : i32
    %0 = arith.addi %arg0, %c1_i32 : i32
    %c8_i32 = arith.constant 8 : i32
    %1 = arith.muli %0, %c8_i32 : i32
    %c15_i32 = arith.constant 15 : i32
    %2 = arith.minsi %1, %c15_i32 : i32
    %c0_i32 = arith.constant 0 : i32
    %c0_i32_0 = arith.constant 0 : i32
    %c0_i32_1 = arith.constant 0 : i32
    %c0_i32_2 = arith.constant 0 : i32
    return %2, %c0_i32, %c0_i32_0, %c0_i32_1 : i32, i32, i32, i32
  }
  func.func @transform_3(%arg0: i32) -> (i32, i32) {
    %c0_i32 = arith.constant 0 : i32
    %c0_i32_0 = arith.constant 0 : i32
    %c0_i32_1 = arith.constant 0 : i32
    return %c0_i32, %c0_i32_0 : i32, i32
  }
  func.func @transform_4(%arg0: i32) -> (i32, i32) {
    %c0_i32 = arith.constant 0 : i32
    %c0_i32_0 = arith.constant 0 : i32
    %c0_i32_1 = arith.constant 0 : i32
    return %c0_i32, %c0_i32_0 : i32, i32
  }
  func.func @transform_5(%arg0: i32) -> (i32, i32, i32, i32) {
    %c0_i32 = arith.constant 0 : i32
    %c0_i32_0 = arith.constant 0 : i32
    %c0_i32_1 = arith.constant 0 : i32
    %c0_i32_2 = arith.constant 0 : i32
    return %arg0, %c0_i32, %c0_i32_0, %c0_i32_1 : i32, i32, i32, i32
  }
  func.func @transform_6(%arg0: i32) -> (i32, i32, i32) {
    %c0_i32 = arith.constant 0 : i32
    %c0_i32_0 = arith.constant 0 : i32
    %c0_i32_1 = arith.constant 0 : i32
    return %arg0, %c0_i32, %c0_i32_0 : i32, i32, i32
  }
}

</mosaic_0001>

<bundles_post_ra>
// kernel: tpu_custom_call.1
= control target key start
LH: loop header
LB: loop body
LE: loop exit
PB: predicated region body
PF: predicated region fallthrough
CT: control target
= control target key end

     0   :  { %12 = vsyncpa [#allocation5], 0  ;;  %s4439_s0 = inlined_call_operand.vmem [shape: f32[16,2,16,4], index: 0, kind: input, shape index: {}]   ;;  %s4440_s1 = inlined_call_operand.vmem [shape: f32[16,2,16,4], index: 1, kind: input, shape index: {}]   ;;  %s4441_s2 = inlined_call_operand.vmem [shape: f32[16,2,16,4], index: 2, kind: input, shape index: {}]   ;;  %s4442_s3 = inlined_call_operand.vmem [shape: f32[36,4], index: 3, kind: input, shape index: {}]   ;;  %s4443_s4 = inlined_call_operand.vmem [shape: f32[1,4], index: 4, kind: input, shape index: {}]   ;;  %s4444_s5 = inlined_call_operand.vmem [shape: f32[16,2,16,4], index: 5, kind: output, shape index: {0}]   ;;  %s4445_s6 = inlined_call_operand.hbm [shape: f32[2,2,4], index: 6, kind: output, shape index: {1}]  }
   0x1   :  { %14 = vsyncpa [#allocation5 + $0x1], 0  ;;  %s2933_s21 = smov 0   ;;  %s2935_s22 = smov 0  }
   0x2   :  { %s2937_s23 = smov 0   ;;  %s2939_s24 = smov 0  }
   0x3 LB: > { %s2954_s25 = sadd.s32 4294967295, %s2886_s24   ;;  %s2657_s26 = sadd.s32 4294967294, %s2886_s24   ;;  %s2886_s24 = sphi %s2939_s24, %s4464_s24   ;;  %s2882_s23 = sphi %s2937_s23, %s4463_s23   ;;  %s2878_s22 = sphi %s2935_s22, %s4462_s22   ;;  %s2874_s21 = sphi %s2933_s21, %s4461_s21  }
   0x4   : > { %s2958_s27 = sadd.s32 1, %s2886_s24   ;;  %s189_s28 = sadd.s32 1, %s2882_s23 }
   0x5   : > { %s186_s29 = ssub.s32 %s2886_s24, %s2958_s27  ;;  %p199_p0 = scmp.ne.s32.totalorder %s2882_s23, %s2878_s22 }
   0x6   : > { %p187_p1 = scmp.eq.s32.totalorder %s186_s29, 0  ;;  %p200_p2 = scmp.eq.s32.totalorder %s2954_s25, 1 }
   0x7   : > { %p205_p3 = scmp.ne.s32.totalorder %s2878_s22, %s2874_s21  ;;  %p206_p4 = scmp.eq.s32.totalorder %s2657_s26, 1 }
   0x8   : > { %s2969_s30 = scalar_select %p187_p1, %s2882_s23, %s189_s28  }
   0x9   : > { %p2971_p5 = por %p200_p2, %p199_p0  ;;  %p2975_p6 = por %p206_p4, %p205_p3 }
   0xa   : > { %p2666_p7 = scmp.ge.s32.totalorder %s2886_s24, 1  ;;  %p272_p8 = scmp.lt.s32.totalorder %s2886_s24, 3 }
   0xc   : > { %p273_p9 = pnand %p2666_p7, %p272_p8 }
   0xe   : > { %276 = sbr.rel (%p273_p9) target bundleno = 1134 (0x46e), region = 40 }
  0x13   : > { %s2982_s9 = sshll.u32 %s2954_s25, 3  ;;  %vm465_vm0 = vcmask 31744   ;;  %p399_p13 = scmp.gt.s32.totalorder %s2954_s25, 0  ;;  %vm423_vm1 = vcmask 24576   ;;  %v2889_v51 = vmov 0.0   ;;  %vm731_vm2 = vcmask 64544  }
  0x14   : > { %p328_p10 = scmp.lt.s32.totalorder %s2982_s9, 15  ;;  %s2672_s10 = sadd.s32 4294967295, %s2982_s9  ;;  %444 = vst.msk [vmem:[#allocation2 + $0x11] sm:$0x1] %vm423_vm1, %v2889_v51  ;;  %vm924_vm3 = vcmask 97344   ;;  %vm1117_vm4 = vcmask 130144  }
  0x15   : > { %p336_p11 = scmp.gt.s32.totalorder %s2672_s10, 0  ;;  %p2673_p12 = scmp.lt.s32.totalorder %s2672_s10, 15  ;;  %424 = vst.msk [vmem:[#allocation2] sm:$0x1] %vm423_vm1, %v2889_v51  ;;  %vm1310_vm5 = vcmask 162944   ;;  %vm2254_vm6 = vcmask 1043456  }
  0x16   : > { %s2987_s11 = scalar_select %p328_p10, %s2982_s9, 15  ;;  %425 = vst.msk [vmem:[#allocation2 + $0x18] sm:$0x1] %vm423_vm1, %v2889_v51  ;;  %vm1503_vm7 = vcmask 195744   ;;  %vm1697_vm8 = vcmask 228544   ;;  %vm1890_vm9 = vcmask 261344  }
  0x17   : > { %s4466_s10 = smov (!%p336_p11, %s2672_s10), 0  ;;  %s2888_s26 = smov 4   ;;  %426 = vst.msk [vmem:[#allocation2 + $0x30] sm:$0x1] %vm423_vm1, %v2889_v51  ;;  %vm2083_vm10 = vcmask 294144   ;;  %vm2157_vm11 = vcmask 293888  }
  0x18   : > { %s2732_s12 = sshll.u32 %s2987_s11, 5  ;;  %s4468_s10 = smov (!%p2673_p12, %s4466_s10), 15  ;;  %427 = vst.msk [vmem:[#allocation2 + $0x48] sm:$0x1] %vm423_vm1, %v2889_v51  ;;  %vm2486_vm12 = vcmask 1040384   ;;  %vm2488_vm13 = vcmask 25600  }
  0x19   : > { %s2996_s15 = scalar_lea.vmem %s4439_s0, %s2732_s12  ;;  %s2735_s16 = sshll.u32 %s4468_s10, 5  ;;  %428 = vst.msk [vmem:[#allocation2 + $0x60] sm:$0x1] %vm423_vm1, %v2889_v51 }
  0x1a   : > { %v370_v0 = vld [vmem:[%s2996_s15 + $0x18] sm:$0xff]  ;;  %v369_v1 = vld [vmem:[%s2996_s15 + $0x10] sm:$0xff]  ;;  %v372_v3 = vld [vmem:[%s2996_s15 + $0x28] sm:$0xff]  ;;  %s342_s19 = scalar_lea.vmem %s4440_s1, %s2735_s16  ;;  %429 = vst.msk [vmem:[#allocation2 + $0x78] sm:$0x1] %vm423_vm1, %v2889_v51  ;;  %s2890_s28 = smov 8  }
  0x1b   : > { %v373_v2 = vld [vmem:[%s2996_s15 + $0x30] sm:$0xff]  ;;  %469 = vst.msk [vmem:[#allocation2 + $0x51] sm:$0xff] %vm465_vm0, %v370_v0  ;;  %v367_v4 = vld [vmem:[%s2996_s15] sm:$0xff]  ;;  %v376_v5 = vld [vmem:[%s2996_s15 + $0x48] sm:$0xff]  ;;  %s2800_s20 = scalar_select %p399_p13, 255, 0 }
  0x1c   : > { %468 = vst.msk [vmem:[#allocation2 + $0x49] sm:$0xff] %vm465_vm0, %v369_v1  ;;  %v375_v6 = vld [vmem:[%s2996_s15 + $0x40] sm:$0xff]  ;;  %v368_v10 = vld [vmem:[%s2996_s15 + $0x8] sm:$0xff]  ;;  %v378_v14 = vld [vmem:[%s2996_s15 + $0x58] sm:$0xff]  ;;  %s2891_s29 = smov 12   ;;  %s2892_s10 = smov 16  }
  0x1d   : > { %472 = vst.msk [vmem:[#allocation2 + $0x79] sm:$0xff] %vm465_vm0, %v373_v2  ;;  %v2801_v7 = vld [vmem:[%s342_s19 + $0x10] sm:%s2800_s20]  ;;  %v2804_v9 = vld [vmem:[%s342_s19] sm:%s2800_s20]  ;;  %s2893_s13 = smov 28   ;;  %s2894_s14 = smov 24  }
  0x1e   : > { %471 = vst.msk [vmem:[#allocation2 + $0x69] sm:$0xff] %vm465_vm0, %v372_v3  ;;  %v2807_v12 = vld [vmem:[%s342_s19 + $0x18] sm:%s2800_s20]  ;;  %v379_v13 = vld [vmem:[%s2996_s15 + $0x60] sm:$0xff]  ;;  %v381_v21 = vld [vmem:[%s2996_s15 + $0x70] sm:$0xff]  ;;  %s2896_s16 = smov 32   ;;  %p411_p1 = scmp.lt.s32.totalorder %s2954_s25, 1 }
  0x1f   : > { %466 = vst.msk [vmem:[#allocation2 + $0x31] sm:$0xff] %vm465_vm0, %v367_v4  ;;  %v2810_v15 = vld [vmem:[%s342_s19 + $0x8] sm:%s2800_s20]  ;;  %v371_v17 = vld [vmem:[%s2996_s15 + $0x20] sm:$0xff]  ;;  %v382_v20 = vld [vmem:[%s2996_s15 + $0x78] sm:$0xff]  ;;  %s2737_s20 = sadd.s32 8, %s2982_s9  ;;  %s324_s11 = sand.u32 1, %s2878_s22  }
  0x20   : > { %475 = vst.msk [vmem:[#allocation2 + $0x99] sm:$0xff] %vm465_vm0, %v376_v5  ;;  %v374_v23 = vld [vmem:[%s2996_s15 + $0x38] sm:$0xff]  ;;  %v385_v26 = vld [vmem:[%s2996_s15 + $0x90] sm:$0xff]  ;;  %v384_v27 = vld [vmem:[%s2996_s15 + $0x88] sm:$0xff]  ;;  %p3812_p0 = scmp.lt.s32.totalorder %s2737_s20, 15 }
  0x21   : > { %474 = vst.msk [vmem:[#allocation2 + $0x91] sm:$0xff] %vm465_vm0, %v375_v6  ;;  %v377_v29 = vld [vmem:[%s2996_s15 + $0x50] sm:$0xff]  ;;  %v388_v32 = vld [vmem:[%s2996_s15 + $0xa8] sm:$0xff]  ;;  %v387_v33 = vld [vmem:[%s2996_s15 + $0xa0] sm:$0xff] }
  0x22   : > { %v3017_v8 = vld [vmem:[#allocation2 + $0x51] sm:$0xff]  ;;  %500 = vst.msk [vmem:[#allocation2 + $0x19] sm:$0xff] %vm465_vm0, %v2801_v7  ;;  %v380_v35 = vld [vmem:[%s2996_s15 + $0x68] sm:$0xff]  ;;  %v391_v38 = vld [vmem:[%s2996_s15 + $0xc0] sm:$0xff]  ;;  %s4470_s20 = smov (!%p3812_p0, %s2737_s20), 15 }
  0x23   : > { %649 = vrot.lane.b32.xlu1 %v3017_v8, %s2888_s26  ;;  %v577_v11 = vld [vmem:[#allocation2 + $0x49] sm:$0xff]  ;;  %498 = vst.msk [vmem:[#allocation2 + $0x1] sm:$0xff] %vm465_vm0, %v2804_v9  ;;  %v390_v39 = vld [vmem:[%s2996_s15 + $0xb8] sm:$0xff]  ;;  %v383_v41 = vld [vmem:[%s2996_s15 + $0x80] sm:$0xff]  ;;  %s4472_s20 = smov (!%p3812_p0, %s4470_s20), 15 }
  0x24   : > { %647 = vrot.lane.b32.xlu0 %v577_v11, %s2888_s26  ;;  %501 = vst.msk [vmem:[#allocation2 + $0x21] sm:$0xff] %vm465_vm0, %v2807_v12  ;;  %v3062_v30 = vld [vmem:[#allocation2 + $0x79] sm:$0xff]  ;;  %v393_v45 = vld [vmem:[%s2996_s15 + $0xd0] sm:$0xff]  ;;  %v392_v0 = vld [vmem:[%s2996_s15 + $0xc8] sm:$0xff]  ;;  %s2738_s9 = sshll.u32 %s4472_s20, 5 }
  0x25   : > { %467 = vst.msk [vmem:[#allocation2 + $0x39] sm:$0xff] %vm465_vm0, %v368_v10  ;;  %v3064_v31 = vld [vmem:[#allocation2 + $0x69] sm:$0xff]  ;;  %v394_v44 = vld [vmem:[%s2996_s15 + $0xd8] sm:$0xff]  ;;  %s3850_s18 = scalar_lea.vmem %s4441_s2, %s2738_s9  ;;  %s2844_s9 = scalar_lea.hbm %s4445_s6, 4 }
  0x26   : > { %v3029_v16 = vld [vmem:[#allocation2 + $0x31] sm:$0xff]  ;;  %478 = vst.msk [vmem:[#allocation2 + $0xc1] sm:$0xff] %vm465_vm0, %v379_v13  ;;  %v3233_v2 = vld [vmem:[#allocation2 + $0x48] sm:$0xff] }
  0x27   : > { %499 = vst.msk [vmem:[#allocation2 + $0x9] sm:$0xff] %vm465_vm0, %v2810_v15  ;;  %643 = vrot.lane.b32.xlu2 %v3029_v16, %s2888_s26  ;;  %v3080_v36 = vld [vmem:[#allocation2 + $0x99] sm:$0xff]  ;;  %v389_v63 = vld [vmem:[%s2996_s15 + $0xb0] sm:$0xff] }
  0x28   : > { %477 = vst.msk [vmem:[#allocation2 + $0xb1] sm:$0xff] %vm465_vm0, %v378_v14  ;;  %v3082_v37 = vld [vmem:[#allocation2 + $0x91] sm:$0xff] }
  0x29   : > { %v573_v18 = vld [vmem:[#allocation2 + $0x19] sm:$0xff]  ;;  %470 = vst.msk [vmem:[#allocation2 + $0x61] sm:$0xff] %vm465_vm0, %v371_v17  ;;  %v3231_v1 = vld [vmem:[#allocation2 + $0x50] sm:$0xff] }
  0x2a   : > { %v571_v19 = vld [vmem:[#allocation2 + $0x1] sm:$0xff]  ;;  %481 = vst.msk [vmem:[#allocation2 + $0xe1] sm:$0xff] %vm465_vm0, %v382_v20  ;;  %v386_v47 = vld [vmem:[%s2996_s15 + $0x98] sm:$0xff]  ;;  %v3236_v3 = vld [vmem:[#allocation2 + $0x30] sm:$0xff] }
  0x2b   : > { %639 = vrot.lane.b32.xlu1 %v573_v18, %s2888_s26  ;;  %480 = vst.msk [vmem:[#allocation2 + $0xd9] sm:$0xff] %vm465_vm0, %v381_v21  ;;  %v574_v24 = vld [vmem:[#allocation2 + $0x21] sm:$0xff]  ;;  %v509_v9 = vld [vmem:[#allocation2 + $0x18] sm:$0xff] }
  0x2c   : > { %635 = vrot.lane.b32.xlu0 %v571_v19, %s2888_s26  ;;  %v3042_v22 = vld [vmem:[#allocation2 + $0x39] sm:$0xff]  ;;  %473 = vst.msk [vmem:[#allocation2 + $0x81] sm:$0xff] %vm465_vm0, %v374_v23 }
  0x2d   : > { %484 = vst.msk [vmem:[#allocation2 + $0x109] sm:$0xff] %vm465_vm0, %v385_v26  ;;  %v3098_v42 = vld [vmem:[#allocation2 + $0xc1] sm:$0xff]  ;;  %v3246_v5 = vld [vmem:[#allocation2 + $0x32] sm:$0xff] }
  0x2e   : > { %v572_v25 = vld [vmem:[#allocation2 + $0x9] sm:$0xff]  ;;  %483 = vst.msk [vmem:[#allocation2 + $0xf9] sm:$0xff] %vm465_vm0, %v384_v27  ;;  %v766_v61 = vld [vmem:[#allocation2 + $0x1a] sm:$0xff] }
  0x2f   : > { %645 = vrot.lane.b32.xlu2 %v3042_v22, %s2888_s26  ;;  %476 = vst.msk [vmem:[#allocation2 + $0xa9] sm:$0xff] %vm465_vm0, %v377_v29  ;;  %v3100_v43 = vld [vmem:[#allocation2 + $0xb1] sm:$0xff]  ;;  %v507_v10 = vld [vmem:[#allocation2] sm:$0xff]  ;;  %v508_v18 = vld [vmem:[#allocation2 + $0x8] sm:$0xff] }
  0x30   : > { %v3054_v28 = vld [vmem:[#allocation2 + $0x61] sm:$0xff]  ;;  %487 = vst.msk [vmem:[#allocation2 + $0x129] sm:$0xff] %vm465_vm0, %v388_v32  ;;  %v765_v62 = vld [vmem:[#allocation2 + $0xa] sm:$0xff]  ;;  %v3258_v11 = vld [vmem:[#allocation2 + $0x38] sm:$0xff] }
  0x31   : > { %486 = vst.msk [vmem:[#allocation2 + $0x121] sm:$0xff] %vm465_vm0, %v387_v33  ;;  %v3116_v48 = vld [vmem:[#allocation2 + $0xe1] sm:$0xff] }
  0x32   : > { %479 = vst.msk [vmem:[#allocation2 + $0xc9] sm:$0xff] %vm465_vm0, %v380_v35  ;;  %v3118_v49 = vld [vmem:[#allocation2 + $0xd9] sm:$0xff]  ;;  %v3263_v12 = vld [vmem:[#allocation2 + $0x62] sm:$0xff] }
  0x33   : > { %641 = vrot.lane.b32.xlu1 %v574_v24, %s2888_s26  ;;  %v3072_v34 = vld [vmem:[#allocation2 + $0x81] sm:$0xff]  ;;  %490 = vst.msk [vmem:[#allocation2 + $0x151] sm:$0xff] %vm465_vm0, %v391_v38 }
  0x34   : > { %637 = vrot.lane.b32.xlu0 %v572_v25, %s2888_s26  ;;  %489 = vst.msk [vmem:[#allocation2 + $0x141] sm:$0xff] %vm465_vm0, %v390_v39  ;;  %v593_v52 = vld [vmem:[#allocation2 + $0x109] sm:$0xff]  ;;  %v510_v17 = vld [vmem:[#allocation2 + $0x20] sm:$0xff]  ;;  %v3292_v25 = vld [vmem:[#allocation2 + $0x78] sm:$0xff] }
  0x35   : > { %482 = vst.msk [vmem:[#allocation2 + $0xf1] sm:$0xff] %vm465_vm0, %v383_v41  ;;  %v592_v53 = vld [vmem:[#allocation2 + $0xf9] sm:$0xff]  ;;  %v764_v21 = vld [vmem:[#allocation2 + $0x2] sm:$0xff] }
  0x36   : > { %v3090_v40 = vld [vmem:[#allocation2 + $0xa9] sm:$0xff]  ;;  %493 = vst.msk [vmem:[#allocation2 + $0x171] sm:$0xff] %vm465_vm0, %v394_v44  ;;  %v3276_v19 = vld [vmem:[#allocation2 + $0x60] sm:$0xff]  ;;  %v3310_v41 = vld [vmem:[#allocation2 + $0x98] sm:$0xff] }
  0x37   : > { %651 = vrot.lane.b32.xlu2 %v3054_v28, %s2888_s26  ;;  %492 = vst.msk [vmem:[#allocation2 + $0x169] sm:$0xff] %vm465_vm0, %v393_v45  ;;  %v596_v55 = vld [vmem:[#allocation2 + $0x129] sm:$0xff]  ;;  %v3284_v23 = vld [vmem:[#allocation2 + $0x7a] sm:$0xff] }
  0x38   : > { %485 = vst.msk [vmem:[#allocation2 + $0x111] sm:$0xff] %vm465_vm0, %v386_v47  ;;  %v595_v56 = vld [vmem:[#allocation2 + $0x121] sm:$0xff]  ;;  %v778_v33 = vld [vmem:[#allocation2 + $0xaa] sm:$0xff] }
  0x39   : > { %v3108_v46 = vld [vmem:[#allocation2 + $0xc9] sm:$0xff]  ;;  %430 = vst.msk [vmem:[#allocation2 + $0x90] sm:$0x1] %vm423_vm1, %v2889_v51  ;;  %v3299_v32 = vld [vmem:[#allocation2 + $0x80] sm:$0xff] }
  0x3a   : > { %431 = vst.msk [vmem:[#allocation2 + $0xa8] sm:$0x1] %vm423_vm1, %v2889_v51  ;;  %v599_v57 = vld [vmem:[#allocation2 + $0x151] sm:$0xff]  ;;  %v3296_v27 = vld [vmem:[#allocation2 + $0x68] sm:$0xff] }
  0x3b   : > { %655 = vrot.lane.b32.xlu1 %v3062_v30, %s2888_s26  ;;  %432 = vst.msk [vmem:[#allocation2 + $0xc0] sm:$0x1] %vm423_vm1, %v2889_v51  ;;  %v3175_v58 = vld [vmem:[#allocation2 + $0x141] sm:$0xff] }
  0x3c   : > { %653 = vrot.lane.b32.xlu0 %v3064_v31, %s2888_s26  ;;  %v3124_v50 = vld [vmem:[#allocation2 + $0xf1] sm:$0xff]  ;;  %433 = vst.msk [vmem:[#allocation2 + $0xd8] sm:$0x1] %vm423_vm1, %v2889_v51 }
  0x3d   : > { %434 = vst.msk [vmem:[#allocation2 + $0xf0] sm:$0x1] %vm423_vm1, %v2889_v51  ;;  %v3194_v59 = vld [vmem:[#allocation2 + $0x171] sm:$0xff] }
  0x3e   : > { %435 = vst.msk [vmem:[#allocation2 + $0x108] sm:$0x1] %vm423_vm1, %v2889_v51  ;;  %v3198_v60 = vld [vmem:[#allocation2 + $0x169] sm:$0xff] }
  0x3f   : > { %657 = vrot.lane.b32.xlu2 %v3072_v34, %s2888_s26  ;;  %v594_v54 = vld [vmem:[#allocation2 + $0x111] sm:$0xff]  ;;  %436 = vst.msk [vmem:[#allocation2 + $0x120] sm:$0x1] %vm423_vm1, %v2889_v51 }
  0x40   : > { %437 = vst.msk [vmem:[#allocation2 + $0x138] sm:$0x1] %vm423_vm1, %v2889_v51  ;;  %v3314_v45 = vld [vmem:[#allocation2 + $0x90] sm:$0xff] }
  0x41   : > { %438 = vst.msk [vmem:[#allocation2 + $0x150] sm:$0x1] %vm423_vm1, %v2889_v51 }
  0x42   : > { %439 = vst.msk [vmem:[#allocation2 + $0x168] sm:$0x1] %vm423_vm1, %v2889_v51 }
  0x43   : > { %661 = vrot.lane.b32.xlu1 %v3080_v36, %s2888_s26  ;;  %440 = vst.msk [vmem:[#allocation2 + $0x180] sm:$0x1] %vm423_vm1, %v2889_v51 }
  0x44   : > { %659 = vrot.lane.b32.xlu0 %v3082_v37, %s2888_s26  ;;  %441 = vst.msk [vmem:[#allocation2 + $0x198] sm:$0x1] %vm423_vm1, %v2889_v51 }
  0x45   : > { %442 = vst.msk [vmem:[#allocation2 + $0x1b0] sm:$0x1] %vm423_vm1, %v2889_v51 }
  0x46   : > { %443 = vst.msk [vmem:[#allocation2 + $0x1c8] sm:$0x1] %vm423_vm1, %v2889_v51 }
  0x47   : > { %663 = vrot.lane.b32.xlu2 %v3090_v40, %s2888_s26  ;;  %445 = vst.msk [vmem:[#allocation2 + $0x29] sm:$0x1] %vm423_vm1, %v2889_v51 }
  0x48   : > { %446 = vst.msk [vmem:[#allocation2 + $0x41] sm:$0x1] %vm423_vm1, %v2889_v51 }
  0x49   : > { %447 = vst.msk [vmem:[#allocation2 + $0x59] sm:$0x1] %vm423_vm1, %v2889_v51 }
  0x4a   : > { %448 = vst.msk [vmem:[#allocation2 + $0x71] sm:$0x1] %vm423_vm1, %v2889_v51 }
  0x4b   : > { %667 = vrot.lane.b32.xlu1 %v3098_v42, %s2888_s26  ;;  %449 = vst.msk [vmem:[#allocation2 + $0x89] sm:$0x1] %vm423_vm1, %v2889_v51 }
  0x4c   : > { %665 = vrot.lane.b32.xlu0 %v3100_v43, %s2888_s26  ;;  %450 = vst.msk [vmem:[#allocation2 + $0xa1] sm:$0x1] %vm423_vm1, %v2889_v51 }
  0x4d   : > { %451 = vst.msk [vmem:[#allocation2 + $0xb9] sm:$0x1] %vm423_vm1, %v2889_v51 }
  0x4e   : > { %452 = vst.msk [vmem:[#allocation2 + $0xd1] sm:$0x1] %vm423_vm1, %v2889_v51  ;;  %v767_v35 = vld [vmem:[#allocation2 + $0x22] sm:$0xff] }
  0x4f   : > { %669 = vrot.lane.b32.xlu2 %v3108_v46, %s2888_s26  ;;  %453 = vst.msk [vmem:[#allocation2 + $0xe9] sm:$0x1] %vm423_vm1, %v2889_v51  ;;  %v3242_v4 = vld [vmem:[#allocation2 + $0x3a] sm:$0xff] }
  0x50   : > { %454 = vst.msk [vmem:[#allocation2 + $0x101] sm:$0x1] %vm423_vm1, %v2889_v51  ;;  %v3267_v14 = vld [vmem:[#allocation2 + $0x52] sm:$0xff] }
  0x51   : > { %455 = vst.msk [vmem:[#allocation2 + $0x119] sm:$0x1] %vm423_vm1, %v2889_v51 }
  0x52   : > { %456 = vst.msk [vmem:[#allocation2 + $0x131] sm:$0x1] %vm423_vm1, %v2889_v51  ;;  %v3282_v20 = vld [vmem:[#allocation2 + $0x82] sm:$0xff] }
  0x53   : > { %673 = vrot.lane.b32.xlu1 %v3116_v48, %s2888_s26  ;;  %457 = vst.msk [vmem:[#allocation2 + $0x149] sm:$0x1] %vm423_vm1, %v2889_v51  ;;  %v777_v38 = vld [vmem:[#allocation2 + $0x9a] sm:$0xff] }
  0x54   : > { %671 = vrot.lane.b32.xlu0 %v3118_v49, %s2888_s26  ;;  %458 = vst.msk [vmem:[#allocation2 + $0x161] sm:$0x1] %vm423_vm1, %v2889_v51 }
  0x55   : > { %459 = vst.msk [vmem:[#allocation2 + $0x179] sm:$0x1] %vm423_vm1, %v2889_v51 }
  0x56   : > { %460 = vst.msk [vmem:[#allocation2 + $0x191] sm:$0x1] %vm423_vm1, %v2889_v51 }
  0x57   : > { %675 = vrot.lane.b32.xlu2 %v3124_v50, %s2888_s26  ;;  %461 = vst.msk [vmem:[#allocation2 + $0x1a9] sm:$0x1] %vm423_vm1, %v2889_v51 }
  0x58   : > { %462 = vst.msk [vmem:[#allocation2 + $0x1c1] sm:$0x1] %vm423_vm1, %v2889_v51 }
  0x59   : > { %463 = vst.msk [vmem:[#allocation2 + $0x1d9] sm:$0x1] %vm423_vm1, %v2889_v51  ;;  %v3317_v51 = vld [vmem:[#allocation2 + $0xa8] sm:$0xff] }
  0x5a   : > { %488 = vst.msk [vmem:[#allocation2 + $0x139] sm:$0xff] %vm465_vm0, %v389_v63  ;;  %v3341_v63 = vld [vmem:[#allocation2 + $0xc8] sm:$0xff] }
  0x5b   : > { %679 = vrot.lane.b32.xlu1 %v593_v52, %s2888_s26  ;;  %491 = vst.msk [vmem:[#allocation2 + $0x159] sm:$0xff] %vm465_vm0, %v392_v0  ;;  %v781_v52 = vld [vmem:[#allocation2 + $0xca] sm:$0xff]  ;;  %v3344_v0 = vld [vmem:[#allocation2 + $0xf2] sm:$0xff] }
  0x5c   : > { %677 = vrot.lane.b32.xlu0 %v592_v53, %s2888_s26  ;;  %546 = vst.msk [vmem:[#allocation3 + $0x38] sm:$0xff] %vm465_vm0, %v3231_v1  ;;  %v3322_v53 = vld [vmem:[#allocation2 + $0x4a] sm:$0xff] }
  0x5d   : > { %545 = vst.msk [vmem:[#allocation3 + $0x30] sm:$0xff] %vm465_vm0, %v3233_v2 }
  0x5e   : > { %543 = vst.msk [vmem:[#allocation3 + $0x20] sm:$0xff] %vm465_vm0, %v3236_v3 }
  0x5f   : > { %681 = vrot.lane.b32.xlu2 %v594_v54, %s2888_s26  ;;  %541 = vst.msk [vmem:[#allocation3 + $0x10] sm:$0xff] %vm465_vm0, %v509_v9  ;;  %v3324_v54 = vld [vmem:[#allocation2 + $0xc2] sm:$0xff] }
  0x60   : > { %539 = vst.msk [vmem:[#allocation3] sm:$0xff] %vm465_vm0, %v507_v10  ;;  %v783_v9 = vld [vmem:[#allocation2 + $0xe2] sm:$0xff] }
  0x61   : > { %v3249_v7 = vld [vmem:[#allocation2 + $0x139] sm:$0xff]  ;;  %544 = vst.msk [vmem:[#allocation3 + $0x28] sm:$0xff] %vm465_vm0, %v3258_v11 }
  0x62   : > { %v3265_v13 = vld [vmem:[#allocation2 + $0x159] sm:$0xff]  ;;  %542 = vst.msk [vmem:[#allocation3 + $0x18] sm:$0xff] %vm465_vm0, %v510_v17 }
  0x63   : > { %685 = vrot.lane.b32.xlu1 %v596_v55, %s2888_s26  ;;  %4452 = vst [vmem:[#allocation7_spill] sm:$0xff] %v3265_v13 }
  0x64   : > { %683 = vrot.lane.b32.xlu0 %v595_v56, %s2888_s26  ;;  %540 = vst.msk [vmem:[#allocation3 + $0x8] sm:$0xff] %vm465_vm0, %v508_v18  ;;  %v3334_v56 = vld [vmem:[#allocation2 + $0xc0] sm:$0xff]  ;;  %v3362_v18 = vld [vmem:[#allocation2 + $0xd8] sm:$0xff] }
  0x65   : > { %547 = vst.msk [vmem:[#allocation3 + $0x40] sm:$0xff] %vm465_vm0, %v3276_v19 }
  0x66   : > { %549 = vst.msk [vmem:[#allocation3 + $0x50] sm:$0xff] %vm465_vm0, %v3292_v25 }
  0x67   : > { %687 = vrot.lane.b32.xlu2 %v3249_v7, %s2888_s26  ;;  %548 = vst.msk [vmem:[#allocation3 + $0x48] sm:$0xff] %vm465_vm0, %v3296_v27 }
  0x68   : > { %550 = vst.msk [vmem:[#allocation3 + $0x58] sm:$0xff] %vm465_vm0, %v3299_v32 }
  0x69   : > { %552 = vst.msk [vmem:[#allocation3 + $0x68] sm:$0xff] %vm465_vm0, %v3310_v41 }
  0x6a   : > { %551 = vst.msk [vmem:[#allocation3 + $0x60] sm:$0xff] %vm465_vm0, %v3314_v45 }
  0x6b   : > { %691 = vrot.lane.b32.xlu1 %v599_v57, %s2888_s26  ;;  %553 = vst.msk [vmem:[#allocation3 + $0x70] sm:$0xff] %vm465_vm0, %v3317_v51 }
  0x6c   : > { %689 = vrot.lane.b32.xlu0 %v3175_v58, %s2888_s26  ;;  %555 = vst.msk [vmem:[#allocation3 + $0x80] sm:$0xff] %vm465_vm0, %v3334_v56 }
  0x6d   : > { %4453 = vst [vmem:[#allocation8_spill] sm:$0xff] %v3344_v0 }
  0x6e   : > { %556 = vst.msk [vmem:[#allocation3 + $0x88] sm:$0xff] %vm465_vm0, %v3341_v63 }
  0x6f   : > { %693 = vrot.lane.b32.xlu2 %v3265_v13, %s2888_s26  ;;  %557 = vst.msk [vmem:[#allocation3 + $0x90] sm:$0xff] %vm465_vm0, %v3362_v18 }
  0x73   : > { %697 = vrot.lane.b32.xlu1 %v3194_v59, %s2888_s26 }
  0x74   : > { %695 = vrot.lane.b32.xlu0 %v3198_v60, %s2888_s26 }
  0x77   : > { %828 = vrot.lane.b32.xlu2 %v764_v21, %s2890_s28 }
  0x7b   : > { %832 = vrot.lane.b32.xlu1 %v766_v61, %s2890_s28  ;;  %v3338_v61 = vld [vmem:[#allocation2 + $0xb0] sm:$0xff] }
  0x7c   : > { %830 = vrot.lane.b32.xlu0 %v765_v62, %s2890_s28  ;;  %554 = vst.msk [vmem:[#allocation3 + $0x78] sm:$0xff] %vm465_vm0, %v3338_v61 }
  0x7f   : > { %834 = vrot.lane.b32.xlu2 %v767_v35, %s2890_s28 }
  0x81   : > { %v644_v6 = vpop.permute.xlu2 %643 }
  0x82   : > { %736 = vst.msk [vmem:[#allocation3 + $0x20] sm:$0xff] %vm731_vm2, %v644_v6  ;;  %v3348_v6 = vld [vmem:[#allocation2 + $0x6a] sm:$0xff] }
  0x83   : > { %838 = vrot.lane.b32.xlu1 %v3242_v4, %s2890_s28 }
  0x84   : > { %836 = vrot.lane.b32.xlu0 %v3246_v5, %s2890_s28 }
  0x87   : > { %840 = vrot.lane.b32.xlu2 %v3322_v53, %s2890_s28 }
  0x89   : > { %v646_v15 = vpop.permute.xlu2 %645 }
  0x8a   : > { %737 = vst.msk [vmem:[#allocation3 + $0x28] sm:$0xff] %vm731_vm2, %v646_v15  ;;  %v3358_v15 = vld [vmem:[#allocation2 + $0xe0] sm:$0xff] }
  0x8b   : > { %844 = vrot.lane.b32.xlu1 %v3263_v12, %s2890_s28  ;;  %558 = vst.msk [vmem:[#allocation3 + $0x98] sm:$0xff] %vm465_vm0, %v3358_v15 }
  0x8c   : > { %842 = vrot.lane.b32.xlu0 %v3267_v14, %s2890_s28 }
  0x8f   : > { %846 = vrot.lane.b32.xlu2 %v3348_v6, %s2890_s28 }
  0x91   : > { %v652_v24 = vpop.permute.xlu2 %651 }
  0x92   : > { %740 = vst.msk [vmem:[#allocation3 + $0x40] sm:$0xff] %vm731_vm2, %v652_v24  ;;  %v3365_v24 = vld [vmem:[#allocation2 + $0xf0] sm:$0xff] }
  0x93   : > { %850 = vrot.lane.b32.xlu1 %v3282_v20, %s2890_s28  ;;  %559 = vst.msk [vmem:[#allocation3 + $0xa0] sm:$0xff] %vm465_vm0, %v3365_v24 }
  0x94   : > { %848 = vrot.lane.b32.xlu0 %v3284_v23, %s2890_s28 }
  0x95   : > { %v650_v26 = vpop.permute.xlu1 %649 }
  0x96   : > { %739 = vst.msk [vmem:[#allocation3 + $0x38] sm:$0xff] %vm731_vm2, %v650_v26  ;;  %v648_v29 = vpop.permute.xlu0 %647  ;;  %v787_v26 = vld [vmem:[#allocation2 + $0x112] sm:$0xff] }
  0x97   : > { %738 = vst.msk [vmem:[#allocation3 + $0x30] sm:$0xff] %vm731_vm2, %v648_v29  ;;  %v776_v29 = vld [vmem:[#allocation2 + $0x92] sm:$0xff] }
  0x98   : > { %852 = vrot.lane.b32.xlu2 %v776_v29, %s2890_s28  ;;  %v3404_v29 = vld [vmem:[#allocation2 + $0x138] sm:$0xff] }
  0x99   : > { %v658_v39 = vpop.permute.xlu2 %657  ;;  %565 = vst.msk [vmem:[#allocation3 + $0xd0] sm:$0xff] %vm465_vm0, %v3404_v29 }
  0x9a   : > { %743 = vst.msk [vmem:[#allocation3 + $0x58] sm:$0xff] %vm731_vm2, %v658_v39 }
  0x9b   : > { %856 = vrot.lane.b32.xlu1 %v778_v33, %s2890_s28  ;;  %v786_v33 = vld [vmem:[#allocation2 + $0x10a] sm:$0xff] }
  0x9c   : > { %854 = vrot.lane.b32.xlu0 %v777_v38, %s2890_s28  ;;  %v3376_v38 = vld [vmem:[#allocation2 + $0x108] sm:$0xff] }
  0x9d   : > { %v640_v44 = vpop.permute.xlu1 %639  ;;  %561 = vst.msk [vmem:[#allocation3 + $0xb0] sm:$0xff] %vm465_vm0, %v3376_v38 }
  0x9e   : > { %734 = vst.msk [vmem:[#allocation3 + $0x10] sm:$0xff] %vm731_vm2, %v640_v44  ;;  %v636_v47 = vpop.permute.xlu0 %635  ;;  %v3380_v44 = vld [vmem:[#allocation2 + $0xf8] sm:$0xff] }
  0x9f   : > { %732 = vst.msk [vmem:[#allocation3] sm:$0xff] %vm731_vm2, %v636_v47 }
  0xa0   : > { %560 = vst.msk [vmem:[#allocation3 + $0xa8] sm:$0xff] %vm465_vm0, %v3380_v44 }
  0xa1   : > { %v664_v55 = vpop.permute.xlu2 %663 }
  0xa2   : > { %746 = vst.msk [vmem:[#allocation3 + $0x70] sm:$0xff] %vm731_vm2, %v664_v55  ;;  %v3386_v55 = vld [vmem:[#allocation2 + $0x13a] sm:$0xff] }
  0xa3   : > { %862 = vrot.lane.b32.xlu1 %v781_v52, %s2890_s28  ;;  %v3383_v52 = vld [vmem:[#allocation2 + $0x110] sm:$0xff] }
  0xa4   : > { %860 = vrot.lane.b32.xlu0 %v3324_v54, %s2890_s28  ;;  %562 = vst.msk [vmem:[#allocation3 + $0xb8] sm:$0xff] %vm465_vm0, %v3383_v52 }
  0xa5   : > { %v642_v57 = vpop.permute.xlu1 %641 }
  0xa6   : > { %735 = vst.msk [vmem:[#allocation3 + $0x18] sm:$0xff] %vm731_vm2, %v642_v57  ;;  %v638_v62 = vpop.permute.xlu0 %637  ;;  %v779_v57 = vld [vmem:[#allocation2 + $0xb2] sm:$0xff] }
  0xa7   : > { %733 = vst.msk [vmem:[#allocation3 + $0x8] sm:$0xff] %vm731_vm2, %v638_v62  ;;  %v789_v62 = vld [vmem:[#allocation2 + $0x12a] sm:$0xff]  ;;  %858 = vrot.lane.b32.xlu2 %v779_v57, %s2890_s28 }
  0xa9   : > { %v670_v10 = vpop.permute.xlu2 %669 }
  0xaa   : > { %749 = vst.msk [vmem:[#allocation3 + $0x88] sm:$0xff] %vm731_vm2, %v670_v10  ;;  %v3397_v10 = vld [vmem:[#allocation2 + $0x128] sm:$0xff] }
  0xab   : > { %868 = vrot.lane.b32.xlu1 %v3344_v0, %s2890_s28  ;;  %564 = vst.msk [vmem:[#allocation3 + $0xc8] sm:$0xff] %vm465_vm0, %v3397_v10 }
  0xac   : > { %866 = vrot.lane.b32.xlu0 %v783_v9, %s2890_s28 }
  0xad   : > { %v656_v17 = vpop.permute.xlu1 %655 }
  0xae   : > { %742 = vst.msk [vmem:[#allocation3 + $0x50] sm:$0xff] %vm731_vm2, %v656_v17  ;;  %v654_v21 = vpop.permute.xlu0 %653 }
  0xaf   : > { %741 = vst.msk [vmem:[#allocation3 + $0x48] sm:$0xff] %vm731_vm2, %v654_v21  ;;  %v3401_v21 = vld [vmem:[#allocation2 + $0x120] sm:$0xff] }
  0xb0   : > { %563 = vst.msk [vmem:[#allocation3 + $0xc0] sm:$0xff] %vm465_vm0, %v3401_v21 }
  0xb1   : > { %v676_v35 = vpop.permute.xlu2 %675 }
  0xb2   : > { %752 = vst.msk [vmem:[#allocation3 + $0xa0] sm:$0xff] %vm731_vm2, %v676_v35  ;;  %v782_v35 = vld [vmem:[#allocation2 + $0xda] sm:$0xff] }
  0xb3   : > { %874 = vrot.lane.b32.xlu1 %v787_v26, %s2890_s28  ;;  %864 = vrot.lane.b32.xlu2 %v782_v35, %s2890_s28  ;;  %v3434_v35 = vld [vmem:[#allocation2 + $0x172] sm:$0xff] }
  0xb4   : > { %872 = vrot.lane.b32.xlu0 %v786_v33, %s2890_s28  ;;  %v3407_v33 = vld [vmem:[#allocation2 + $0x15a] sm:$0xff] }
  0xb5   : > { %v662_v39 = vpop.permute.xlu1 %661  ;;  %4454 = vst [vmem:[#allocation9_spill] sm:$0xff] %v3407_v33 }
  0xb6   : > { %745 = vst.msk [vmem:[#allocation3 + $0x68] sm:$0xff] %vm731_vm2, %v662_v39  ;;  %v660_v47 = vpop.permute.xlu0 %659  ;;  %v3411_v39 = vld [vmem:[#allocation2 + $0x152] sm:$0xff] }
  0xb7   : > { %744 = vst.msk [vmem:[#allocation3 + $0x60] sm:$0xff] %vm731_vm2, %v660_v47  ;;  %v3420_v47 = vld [vmem:[#allocation2 + $0x150] sm:$0xff] }
  0xb8   : > { %567 = vst.msk [vmem:[#allocation3 + $0xe0] sm:$0xff] %vm465_vm0, %v3420_v47 }
  0xb9   : > { %v682_v9 = vpop.permute.xlu2 %681 }
  0xba   : > { %755 = vst.msk [vmem:[#allocation3 + $0xb8] sm:$0xff] %vm731_vm2, %v682_v9 }
  0xbb   : > { %880 = vrot.lane.b32.xlu1 %v3386_v55, %s2890_s28 }
  0xbc   : > { %878 = vrot.lane.b32.xlu0 %v789_v62, %s2890_s28  ;;  %v3424_v62 = vld [vmem:[#allocation2 + $0x140] sm:$0xff] }
  0xbd   : > { %v668_v17 = vpop.permute.xlu1 %667  ;;  %566 = vst.msk [vmem:[#allocation3 + $0xd8] sm:$0xff] %vm465_vm0, %v3424_v62 }
  0xbe   : > { %748 = vst.msk [vmem:[#allocation3 + $0x80] sm:$0xff] %vm731_vm2, %v668_v17  ;;  %v666_v26 = vpop.permute.xlu0 %665  ;;  %v3427_v17 = vld [vmem:[#allocation2 + $0x158] sm:$0xff] }
  0xbf   : > { %747 = vst.msk [vmem:[#allocation3 + $0x78] sm:$0xff] %vm731_vm2, %v666_v26  ;;  %v3432_v26 = vld [vmem:[#allocation2 + $0xfa] sm:$0xff] }
  0xc0   : > { %4455 = vst [vmem:[#allocation10_spill] sm:$0xff] %v3432_v26  ;;  %870 = vrot.lane.b32.xlu2 %v3432_v26, %s2890_s28 }
  0xc1   : > { %568 = vst.msk [vmem:[#allocation3 + $0xe8] sm:$0xff] %vm465_vm0, %v3427_v17 }
  0xc3   : > { %886 = vrot.lane.b32.xlu1 %v3407_v33, %s2890_s28  ;;  %v3448_v33 = vld [vmem:[#allocation2 + $0x168] sm:$0xff] }
  0xc4   : > { %884 = vrot.lane.b32.xlu0 %v3411_v39, %s2890_s28  ;;  %569 = vst.msk [vmem:[#allocation3 + $0xf0] sm:$0xff] %vm465_vm0, %v3448_v33 }
  0xc5   : > { %v674_v57 = vpop.permute.xlu1 %673 }
  0xc6   : > { %751 = vst.msk [vmem:[#allocation3 + $0x98] sm:$0xff] %vm731_vm2, %v674_v57  ;;  %v672_v9 = vpop.permute.xlu0 %671  ;;  %v3444_v57 = vld [vmem:[#allocation2 + $0x170] sm:$0xff] }
  0xc7   : > { %750 = vst.msk [vmem:[#allocation3 + $0x90] sm:$0xff] %vm731_vm2, %v672_v9 }
  0xc8   : > { %570 = vst.msk [vmem:[#allocation3 + $0xf8] sm:$0xff] %vm465_vm0, %v3444_v57 }
  0xcb   : > { %1021 = vrot.lane.b32.xlu1 %v3236_v3, %s2891_s29  ;;  %v788_v3 = vld [vmem:[#allocation2 + $0x122] sm:$0xff] }
  0xcc   : > { %890 = vrot.lane.b32.xlu0 %v3434_v35, %s2890_s28  ;;  %876 = vrot.lane.b32.xlu2 %v788_v3, %s2890_s28 }
  0xcd   : > { %v680_v9 = vpop.permute.xlu1 %679 }
  0xce   : > { %754 = vst.msk [vmem:[#allocation3 + $0xb0] sm:$0xff] %vm731_vm2, %v680_v9  ;;  %v678_v13 = vpop.permute.xlu0 %677  ;;  %v3461_v9 = vld [vmem:[#allocation2 + $0x142] sm:$0xff] }
  0xcf   : > { %753 = vst.msk [vmem:[#allocation3 + $0xa8] sm:$0xff] %vm731_vm2, %v678_v13  ;;  %v688_v13 = vpop.permute.xlu2 %687 }
  0xd0   : > { %758 = vst.msk [vmem:[#allocation3 + $0xd0] sm:$0xff] %vm731_vm2, %v688_v13 }
  0xd3   : > { %1027 = vrot.lane.b32.xlu1 %v3231_v1, %s2891_s29 }
  0xd4   : > { %1025 = vrot.lane.b32.xlu0 %v3233_v2, %s2891_s29  ;;  %882 = vrot.lane.b32.xlu2 %v3461_v9, %s2890_s28 }
  0xd5   : > { %v686_v26 = vpop.permute.xlu1 %685 }
  0xd6   : > { %757 = vst.msk [vmem:[#allocation3 + $0xc8] sm:$0xff] %vm731_vm2, %v686_v26  ;;  %v684_v0 = vpop.permute.xlu0 %683 }
  0xd7   : > { %756 = vst.msk [vmem:[#allocation3 + $0xc0] sm:$0xff] %vm731_vm2, %v684_v0  ;;  %v3472_v0 = vld [vmem:[#allocation2 + $0x16a] sm:$0xff]  ;;  %v694_v3 = vpop.permute.xlu2 %693 }
  0xd8   : > { %761 = vst.msk [vmem:[#allocation3 + $0xe8] sm:$0xff] %vm731_vm2, %v694_v3  ;;  %v395_v3 = vld [vmem:[%s2996_s15 + $0xe0] sm:$0xff] }
  0xd9   : > { %494 = vst.msk [vmem:[#allocation2 + $0x181] sm:$0xff] %vm465_vm0, %v395_v3 }
  0xdb   : > { %1033 = vrot.lane.b32.xlu1 %v3292_v25, %s2891_s29 }
  0xdc   : > { %1031 = vrot.lane.b32.xlu0 %v3296_v27, %s2891_s29  ;;  %888 = vrot.lane.b32.xlu2 %v3472_v0, %s2890_s28  ;;  %s3844_s28 = scalar_select %p411_p1, 255, 0 }
  0xdd   : > { %v692_v1 = vpop.permute.xlu1 %691 }
  0xde   : > { %760 = vst.msk [vmem:[#allocation3 + $0xe0] sm:$0xff] %vm731_vm2, %v692_v1  ;;  %v690_v2 = vpop.permute.xlu0 %689 }
  0xdf   : > { %759 = vst.msk [vmem:[#allocation3 + $0xd8] sm:$0xff] %vm731_vm2, %v690_v2  ;;  %v829_v13 = vpop.permute.xlu2 %828 }
  0xe0   : > { %925 = vst.msk [vmem:[#allocation3] sm:$0xff] %vm924_vm3, %v829_v13 }
  0xe3   : > { %1039 = vrot.lane.b32.xlu1 %v3310_v41, %s2891_s29 }
  0xe4   : > { %1037 = vrot.lane.b32.xlu0 %v3314_v45, %s2891_s29  ;;  %1023 = vrot.lane.b32.xlu2 %v3258_v11, %s2891_s29 }
  0xe5   : > { %v698_v26 = vpop.permute.xlu1 %697 }
  0xe6   : > { %763 = vst.msk [vmem:[#allocation3 + $0xf8] sm:$0xff] %vm731_vm2, %v698_v26  ;;  %v696_v1 = vpop.permute.xlu0 %695  ;;  %v397_v26 = vld [vmem:[%s2996_s15 + $0xf0] sm:$0xff] }
  0xe7   : > { %762 = vst.msk [vmem:[#allocation3 + $0xf0] sm:$0xff] %vm731_vm2, %v696_v1  ;;  %v396_v1 = vld [vmem:[%s2996_s15 + $0xe8] sm:$0xff] }
  0xe8   : > { %496 = vst.msk [vmem:[#allocation2 + $0x199] sm:$0xff] %vm465_vm0, %v397_v26 }
  0xe9   : > { %495 = vst.msk [vmem:[#allocation2 + $0x189] sm:$0xff] %vm465_vm0, %v396_v1 }
  0xeb   : > { %1045 = vrot.lane.b32.xlu1 %v3334_v56, %s2891_s29  ;;  %v835_v56 = vpop.permute.xlu2 %834 }
  0xec   : > { %1043 = vrot.lane.b32.xlu0 %v3338_v61, %s2891_s29  ;;  %1029 = vrot.lane.b32.xlu2 %v3276_v19, %s2891_s29  ;;  %928 = vst.msk [vmem:[#allocation3 + $0x18] sm:$0xff] %vm924_vm3, %v835_v56 }
  0xed   : > { %v833_v41 = vpop.permute.xlu1 %832 }
  0xee   : > { %927 = vst.msk [vmem:[#allocation3 + $0x10] sm:$0xff] %vm924_vm3, %v833_v41  ;;  %v831_v2 = vpop.permute.xlu0 %830 }
  0xef   : > { %926 = vst.msk [vmem:[#allocation3 + $0x8] sm:$0xff] %vm924_vm3, %v831_v2  ;;  %v3545_v56 = vld [vmem:[#allocation2 + $0x198] sm:$0xff] }
  0xf3   : > { %1051 = vrot.lane.b32.xlu1 %v3358_v15, %s2891_s29 }
  0xf4   : > { %1049 = vrot.lane.b32.xlu0 %v3362_v18, %s2891_s29  ;;  %1035 = vrot.lane.b32.xlu2 %v3299_v32, %s2891_s29  ;;  %v841_v18 = vpop.permute.xlu2 %840 }
  0xf5   : > { %v839_v11 = vpop.permute.xlu1 %838  ;;  %931 = vst.msk [vmem:[#allocation3 + $0x30] sm:$0xff] %vm924_vm3, %v841_v18 }
  0xf6   : > { %930 = vst.msk [vmem:[#allocation3 + $0x28] sm:$0xff] %vm924_vm3, %v839_v11  ;;  %v837_v61 = vpop.permute.xlu0 %836  ;;  %v398_v11 = vld [vmem:[%s2996_s15 + $0xf8] sm:$0xff]  ;;  %s2895_s15 = smov 20  }
  0xf7   : > { %929 = vst.msk [vmem:[#allocation3 + $0x20] sm:$0xff] %vm924_vm3, %v837_v61  ;;  %v3547_v61 = vld [vmem:[#allocation2 + $0x188] sm:$0xff] }
  0xf8   : > { %497 = vst.msk [vmem:[#allocation2 + $0x1a1] sm:$0xff] %vm465_vm0, %v398_v11  ;;  %v1731_v11 = vld [vmem:[#allocation2 + $0x69] sm:$0xff] }
  0xfb   : > { %1057 = vrot.lane.b32.xlu1 %v3376_v38, %s2891_s29 }
  0xfc   : > { %1055 = vrot.lane.b32.xlu0 %v3380_v44, %s2891_s29  ;;  %1041 = vrot.lane.b32.xlu2 %v3317_v51, %s2891_s29  ;;  %v847_v13 = vpop.permute.xlu2 %846 }
  0xfd   : > { %v845_v15 = vpop.permute.xlu1 %844  ;;  %934 = vst.msk [vmem:[#allocation3 + $0x48] sm:$0xff] %vm924_vm3, %v847_v13 }
  0xfe   : > { %933 = vst.msk [vmem:[#allocation3 + $0x40] sm:$0xff] %vm924_vm3, %v845_v15  ;;  %v843_v41 = vpop.permute.xlu0 %842 }
  0xff   : > { %932 = vst.msk [vmem:[#allocation3 + $0x38] sm:$0xff] %vm924_vm3, %v843_v41  ;;  %v3576_v41 = vld [vmem:[#allocation2 + $0x180] sm:$0xff] }
 0x100   : > { %v3587_v13 = vld [vmem:[#allocation2 + $0x1a0] sm:$0xff] }
 0x103   : > { %1063 = vrot.lane.b32.xlu1 %v3397_v10, %s2891_s29 }
 0x104   : > { %1061 = vrot.lane.b32.xlu0 %v3401_v21, %s2891_s29  ;;  %1047 = vrot.lane.b32.xlu2 %v3341_v63, %s2891_s29  ;;  %v853_v10 = vpop.permute.xlu2 %852 }
 0x105   : > { %v851_v38 = vpop.permute.xlu1 %850  ;;  %937 = vst.msk [vmem:[#allocation3 + $0x60] sm:$0xff] %vm924_vm3, %v853_v10 }
 0x106   : > { %936 = vst.msk [vmem:[#allocation3 + $0x58] sm:$0xff] %vm924_vm3, %v851_v38  ;;  %v849_v2 = vpop.permute.xlu0 %848 }
 0x107   : > { %935 = vst.msk [vmem:[#allocation3 + $0x50] sm:$0xff] %vm924_vm3, %v849_v2 }
 0x10b   : > { %1069 = vrot.lane.b32.xlu1 %v3420_v47, %s2891_s29 }
 0x10c   : > { %1067 = vrot.lane.b32.xlu0 %v3424_v62, %s2891_s29  ;;  %1053 = vrot.lane.b32.xlu2 %v3365_v24, %s2891_s29  ;;  %v859_v47 = vpop.permute.xlu2 %858 }
 0x10d   : > { %v857_v51 = vpop.permute.xlu1 %856  ;;  %940 = vst.msk [vmem:[#allocation3 + $0x78] sm:$0xff] %vm924_vm3, %v859_v47 }
 0x10e   : > { %939 = vst.msk [vmem:[#allocation3 + $0x70] sm:$0xff] %vm924_vm3, %v857_v51  ;;  %v855_v21 = vpop.permute.xlu0 %854  ;;  %v1152_v51 = vld [vmem:[#allocation2 + $0x49] sm:$0xff] }
 0x10f   : > { %938 = vst.msk [vmem:[#allocation3 + $0x68] sm:$0xff] %vm924_vm3, %v855_v21 }
 0x113   : > { %1075 = vrot.lane.b32.xlu1 %v3444_v57, %s2891_s29 }
 0x114   : > { %1073 = vrot.lane.b32.xlu0 %v3448_v33, %s2891_s29  ;;  %1059 = vrot.lane.b32.xlu2 %v3383_v52, %s2891_s29  ;;  %v865_v3 = vpop.permute.xlu2 %864 }
 0x115   : > { %v863_v63 = vpop.permute.xlu1 %862  ;;  %943 = vst.msk [vmem:[#allocation3 + $0x90] sm:$0xff] %vm924_vm3, %v865_v3 }
 0x116   : > { %942 = vst.msk [vmem:[#allocation3 + $0x88] sm:$0xff] %vm924_vm3, %v863_v63  ;;  %v861_v62 = vpop.permute.xlu0 %860 }
 0x117   : > { %941 = vst.msk [vmem:[#allocation3 + $0x80] sm:$0xff] %vm924_vm3, %v861_v62  ;;  %v1732_v62 = vld [vmem:[#allocation2 + $0x79] sm:$0xff] }
 0x11b   : > { %1081 = vrot.lane.b32.xlu1 %v3545_v56, %s2891_s29 }
 0x11c   : > { %1079 = vrot.lane.b32.xlu0 %v3547_v61, %s2891_s29  ;;  %1065 = vrot.lane.b32.xlu2 %v3404_v29, %s2891_s29  ;;  %v871_v15 = vpop.permute.xlu2 %870 }
 0x11d   : > { %v869_v26 = vpop.permute.xlu1 %868  ;;  %946 = vst.msk [vmem:[#allocation3 + $0xa8] sm:$0xff] %vm924_vm3, %v871_v15 }
 0x11e   : > { %945 = vst.msk [vmem:[#allocation3 + $0xa0] sm:$0xff] %vm924_vm3, %v869_v26  ;;  %v867_v1 = vpop.permute.xlu0 %866  ;;  %v1174_v26 = vld [vmem:[#allocation2 + $0x151] sm:$0xff] }
 0x11f   : > { %944 = vst.msk [vmem:[#allocation3 + $0x98] sm:$0xff] %vm924_vm3, %v867_v1 }
 0x123   : > { %1216 = vrot.lane.b32.xlu1 %v3042_v22, %s2892_s10 }
 0x124   : > { %1214 = vrot.lane.b32.xlu0 %v3029_v16, %s2892_s10  ;;  %1071 = vrot.lane.b32.xlu2 %v3427_v17, %s2891_s29 }
 0x125   : > { %v875_v52 = vpop.permute.xlu1 %874 }
 0x126   : > { %948 = vst.msk [vmem:[#allocation3 + $0xb8] sm:$0xff] %vm924_vm3, %v875_v52  ;;  %v873_v18 = vpop.permute.xlu0 %872  ;;  %v877_v16 = vpop.permute.xlu2 %876  ;;  %v3684_v52 = vld [vmem:[#allocation2 + $0x181] sm:$0xff] }
 0x127   : > { %947 = vst.msk [vmem:[#allocation3 + $0xb0] sm:$0xff] %vm924_vm3, %v873_v18  ;;  %v3695_v18 = vld [vmem:[#allocation2 + $0x182] sm:$0xff] }
 0x128   : > { %949 = vst.msk [vmem:[#allocation3 + $0xc0] sm:$0xff] %vm924_vm3, %v877_v16 }
 0x12b   : > { %1222 = vrot.lane.b32.xlu1 %v3054_v28, %s2892_s10 }
 0x12c   : > { %1220 = vrot.lane.b32.xlu0 %v3017_v8, %s2892_s10  ;;  %1077 = vrot.lane.b32.xlu2 %v3576_v41, %s2891_s29 }
 0x12d   : > { %v881_v22 = vpop.permute.xlu1 %880 }
 0x12e   : > { %951 = vst.msk [vmem:[#allocation3 + $0xd0] sm:$0xff] %vm924_vm3, %v881_v22  ;;  %v879_v29 = vpop.permute.xlu0 %878  ;;  %v883_v17 = vpop.permute.xlu2 %882 }
 0x12f   : > { %950 = vst.msk [vmem:[#allocation3 + $0xc8] sm:$0xff] %vm924_vm3, %v879_v29  ;;  %v4456_v29 = vld [vmem:[#allocation8_spill] sm:$0xff] }
 0x130   : > { %952 = vst.msk [vmem:[#allocation3 + $0xd8] sm:$0xff] %vm924_vm3, %v883_v17  ;;  %v2152_v17 = vld [vmem:[%s4442_s3 + $0x20] sm:$0xf] }
 0x131   : > { %2689 = vmatpush.msk.msra.mxu0 %vm2254_vm6, %v2152_v17  ;;  %2741 = vmatpush.msk.msra.mxu3 %vm2254_vm6, %v2152_v17 }
 0x132   : > { %2740 = vmatpush.msk.msra.mxu2 %vm2254_vm6, %v2152_v17 }
 0x133   : > { %1228 = vrot.lane.b32.xlu1 %v3072_v34, %s2892_s10 }
 0x134   : > { %1226 = vrot.lane.b32.xlu0 %v3062_v30, %s2892_s10  ;;  %1083 = vrot.lane.b32.xlu2 %v3587_v13, %s2891_s29  ;;  %s3985_s29 = scalar_lea.vmem %s4444_s5, %s2732_s12  ;;  %s2667_s12 = sshll.u32 %s324_s11, 1 }
 0x135   : > { %v887_v8 = vpop.permute.xlu1 %886 }
 0x136   : > { %954 = vst.msk [vmem:[#allocation3 + $0xe8] sm:$0xff] %vm924_vm3, %v887_v8  ;;  %v885_v38 = vpop.permute.xlu0 %884  ;;  %v889_v34 = vpop.permute.xlu2 %888 }
 0x137   : > { %953 = vst.msk [vmem:[#allocation3 + $0xe0] sm:$0xff] %vm924_vm3, %v885_v38  ;;  %v1347_v38 = vld [vmem:[#allocation2 + $0x62] sm:$0xff] }
 0x138   : > { %955 = vst.msk [vmem:[#allocation3 + $0xf0] sm:$0xff] %vm924_vm3, %v889_v34  ;;  %v2149_v34 = vld [vmem:[%s4442_s3 + $0x8] sm:$0xff] }
 0x13b   : > { %1234 = vrot.lane.b32.xlu1 %v3090_v40, %s2892_s10 }
 0x13c   : > { %1232 = vrot.lane.b32.xlu0 %v3080_v36, %s2892_s10  ;;  %1218 = vrot.lane.b32.xlu2 %v1152_v51, %s2892_s10 }
 0x13d   : > { %v1022_v30 = vpop.permute.xlu1 %1021 }
 0x13e   : > { %1118 = vst.msk [vmem:[#allocation3] sm:$0xff] %vm1117_vm4, %v1022_v30  ;;  %v891_v2 = vpop.permute.xlu0 %890  ;;  %v1024_v40 = vpop.permute.xlu2 %1023  ;;  %v2150_v30 = vld [vmem:[%s4442_s3 + $0x10] sm:$0xff] }
 0x13f   : > { %956 = vst.msk [vmem:[#allocation3 + $0xf8] sm:$0xff] %vm924_vm3, %v891_v2 }
 0x140   : > { %1119 = vst.msk [vmem:[#allocation3 + $0x8] sm:$0xff] %vm1117_vm4, %v1024_v40  ;;  %v2148_v40 = vld [vmem:[%s4442_s3] sm:$0xff] }
 0x143   : > { %1240 = vrot.lane.b32.xlu1 %v3108_v46, %s2892_s10 }
 0x144   : > { %1238 = vrot.lane.b32.xlu0 %v3098_v42, %s2892_s10  ;;  %1224 = vrot.lane.b32.xlu2 %v3064_v31, %s2892_s10 }
 0x145   : > { %v1028_v36 = vpop.permute.xlu1 %1027 }
 0x146   : > { %1121 = vst.msk [vmem:[#allocation3 + $0x18] sm:$0xff] %vm1117_vm4, %v1028_v36  ;;  %v1026_v10 = vpop.permute.xlu0 %1025  ;;  %v1030_v42 = vpop.permute.xlu2 %1029 }
 0x147   : > { %1120 = vst.msk [vmem:[#allocation3 + $0x10] sm:$0xff] %vm1117_vm4, %v1026_v10 }
 0x148   : > { %1122 = vst.msk [vmem:[#allocation3 + $0x20] sm:$0xff] %vm1117_vm4, %v1030_v42 }
 0x14b   : > { %1246 = vrot.lane.b32.xlu1 %v3124_v50, %s2892_s10 }
 0x14c   : > { %1244 = vrot.lane.b32.xlu0 %v3116_v48, %s2892_s10  ;;  %1230 = vrot.lane.b32.xlu2 %v3082_v37, %s2892_s10 }
 0x14d   : > { %v1034_v46 = vpop.permute.xlu1 %1033 }
 0x14e   : > { %1124 = vst.msk [vmem:[#allocation3 + $0x30] sm:$0xff] %vm1117_vm4, %v1034_v46  ;;  %v1032_v21 = vpop.permute.xlu0 %1031  ;;  %v1036_v48 = vpop.permute.xlu2 %1035 }
 0x14f   : > { %1123 = vst.msk [vmem:[#allocation3 + $0x28] sm:$0xff] %vm1117_vm4, %v1032_v21  ;;  %v1742_v21 = vld [vmem:[#allocation2 + $0xf1] sm:$0xff] }
 0x150   : > { %1125 = vst.msk [vmem:[#allocation3 + $0x38] sm:$0xff] %vm1117_vm4, %v1036_v48 }
 0x153   : > { %1794 = vrot.lane.b32.xlu1 %v3054_v28, %s2893_s13 }
 0x154   : > { %1601 = vrot.lane.b32.xlu0 %v3276_v19, %s2894_s14  ;;  %1236 = vrot.lane.b32.xlu2 %v3100_v43, %s2892_s10 }
 0x155   : > { %v1040_v31 = vpop.permute.xlu1 %1039 }
 0x156   : > { %1127 = vst.msk [vmem:[#allocation3 + $0x48] sm:$0xff] %vm1117_vm4, %v1040_v31  ;;  %v1038_v50 = vpop.permute.xlu0 %1037  ;;  %v1042_v37 = vpop.permute.xlu2 %1041  ;;  %v1734_v31 = vld [vmem:[#allocation2 + $0x91] sm:$0xff] }
 0x157   : > { %1126 = vst.msk [vmem:[#allocation3 + $0x40] sm:$0xff] %vm1117_vm4, %v1038_v50 }
 0x158   : > { %1128 = vst.msk [vmem:[#allocation3 + $0x50] sm:$0xff] %vm1117_vm4, %v1042_v37  ;;  %v3764_v37 = vld [vmem:[#allocation2 + $0xf9] sm:$0xff] }
 0x15b   : > { %1451 = vrot.lane.b32.xlu1 %v3386_v55, %s2895_s15 }
 0x15c   : > { %1258 = vrot.lane.b32.xlu0 %v3249_v7, %s2892_s10  ;;  %1242 = vrot.lane.b32.xlu2 %v3118_v49, %s2892_s10 }
 0x15d   : > { %v1046_v28 = vpop.permute.xlu1 %1045 }
 0x15e   : > { %1130 = vst.msk [vmem:[#allocation3 + $0x60] sm:$0xff] %vm1117_vm4, %v1046_v28  ;;  %v1044_v19 = vpop.permute.xlu0 %1043  ;;  %v1048_v7 = vpop.permute.xlu2 %1047  ;;  %v1176_v28 = vld [vmem:[#allocation2 + $0x169] sm:$0xff] }
 0x15f   : > { %1129 = vst.msk [vmem:[#allocation3 + $0x58] sm:$0xff] %vm1117_vm4, %v1044_v19 }
 0x160   : > { %1131 = vst.msk [vmem:[#allocation3 + $0x68] sm:$0xff] %vm1117_vm4, %v1048_v7 }
 0x163   : > { %1838 = vrot.lane.b32.xlu1 %v3198_v60, %s2893_s13 }
 0x164   : > { %1409 = vrot.lane.b32.xlu0 %v3242_v4, %s2895_s15  ;;  %1407 = vrot.lane.b32.xlu2 %v3246_v5, %s2895_s15 }
 0x165   : > { %v1052_v43 = vpop.permute.xlu1 %1051 }
 0x166   : > { %1133 = vst.msk [vmem:[#allocation3 + $0x78] sm:$0xff] %vm1117_vm4, %v1052_v43  ;;  %v1050_v55 = vpop.permute.xlu0 %1049  ;;  %v1054_v60 = vpop.permute.xlu2 %1053 }
 0x167   : > { %1132 = vst.msk [vmem:[#allocation3 + $0x70] sm:$0xff] %vm1117_vm4, %v1050_v55  ;;  %v3773_v55 = vld [vmem:[#allocation2 + $0x189] sm:$0xff] }
 0x168   : > { %1134 = vst.msk [vmem:[#allocation3 + $0x80] sm:$0xff] %vm1117_vm4, %v1054_v60 }
 0x16b   : > { %1796 = vrot.lane.b32.xlu1 %v1731_v11, %s2893_s13 }
 0x16c   : > { %2031 = vrot.lane.b32.xlu0 %v3472_v0, %s2896_s16  ;;  %1987 = vrot.lane.b32.xlu2 %v3263_v12, %s2896_s16 }
 0x16d   : > { %v1058_v49 = vpop.permute.xlu1 %1057 }
 0x16e   : > { %1136 = vst.msk [vmem:[#allocation3 + $0x90] sm:$0xff] %vm1117_vm4, %v1058_v49  ;;  %v1056_v4 = vpop.permute.xlu0 %1055  ;;  %v1060_v63 = vpop.permute.xlu2 %1059 }
 0x16f   : > { %1135 = vst.msk [vmem:[#allocation3 + $0x88] sm:$0xff] %vm1117_vm4, %v1056_v4 }
 0x170   : > { %1137 = vst.msk [vmem:[#allocation3 + $0x98] sm:$0xff] %vm1117_vm4, %v1060_v63  ;;  %v3785_v63 = vld [vmem:[#allocation2 + $0xca] sm:$0xff] }
 0x173   : > { %1453 = vrot.lane.b32.xlu1 %v3461_v9, %s2895_s15 }
 0x174   : > { %1260 = vrot.lane.b32.xlu0 %v3175_v58, %s2892_s10  ;;  %1645 = vrot.lane.b32.xlu2 %v3448_v33, %s2894_s14 }
 0x175   : > { %v1064_v5 = vpop.permute.xlu1 %1063 }
 0x176   : > { %1139 = vst.msk [vmem:[#allocation3 + $0xa8] sm:$0xff] %vm1117_vm4, %v1064_v5  ;;  %v1062_v47 = vpop.permute.xlu0 %1061  ;;  %v1066_v58 = vpop.permute.xlu2 %1065  ;;  %v1542_v5 = vld [vmem:[#allocation2 + $0x98] sm:$0xff] }
 0x177   : > { %1138 = vst.msk [vmem:[#allocation3 + $0xa0] sm:$0xff] %vm1117_vm4, %v1062_v47 }
 0x178   : > { %1140 = vst.msk [vmem:[#allocation3 + $0xb0] sm:$0xff] %vm1117_vm4, %v1066_v58  ;;  %v1735_v58 = vld [vmem:[#allocation2 + $0x99] sm:$0xff] }
 0x17b   : > { %1840 = vrot.lane.b32.xlu1 %v3194_v59, %s2893_s13 }
 0x17c   : > { %1411 = vrot.lane.b32.xlu0 %v3322_v53, %s2895_s15  ;;  %1603 = vrot.lane.b32.xlu2 %v3296_v27, %s2894_s14 }
 0x17d   : > { %v1070_v12 = vpop.permute.xlu1 %1069 }
 0x17e   : > { %1142 = vst.msk [vmem:[#allocation3 + $0xc0] sm:$0xff] %vm1117_vm4, %v1070_v12  ;;  %v1068_v9 = vpop.permute.xlu0 %1067  ;;  %v1072_v53 = vpop.permute.xlu2 %1071 }
 0x17f   : > { %1141 = vst.msk [vmem:[#allocation3 + $0xb8] sm:$0xff] %vm1117_vm4, %v1068_v9  ;;  %v3797_v9 = vld [vmem:[#allocation2 + $0x92] sm:$0xff] }
 0x180   : > { %1143 = vst.msk [vmem:[#allocation3 + $0xc8] sm:$0xff] %vm1117_vm4, %v1072_v53 }
 0x183   : > { %1798 = vrot.lane.b32.xlu1 %v1732_v62, %s2893_s13  ;;  %v3800_v62 = vld [vmem:[#allocation2 + $0xda] sm:$0xff] }
 0x184   : > { %2033 = vrot.lane.b32.xlu0 %v3434_v35, %s2896_s16  ;;  %1989 = vrot.lane.b32.xlu2 %v3348_v6, %s2896_s16 }
 0x185   : > { %v1076_v59 = vpop.permute.xlu1 %1075 }
 0x186   : > { %1145 = vst.msk [vmem:[#allocation3 + $0xd8] sm:$0xff] %vm1117_vm4, %v1076_v59  ;;  %v1074_v33 = vpop.permute.xlu0 %1073  ;;  %v1078_v3 = vpop.permute.xlu2 %1077 }
 0x187   : > { %1144 = vst.msk [vmem:[#allocation3 + $0xd0] sm:$0xff] %vm1117_vm4, %v1074_v33 }
 0x188   : > { %1146 = vst.msk [vmem:[#allocation3 + $0xe0] sm:$0xff] %vm1117_vm4, %v1078_v3  ;;  %v3818_v3 = vld [vmem:[#allocation2 + $0x9a] sm:$0xff] }
 0x18b   : > { %1455 = vrot.lane.b32.xlu1 %v3411_v39, %s2895_s15 }
 0x18c   : > { %1262 = vrot.lane.b32.xlu0 %v1174_v26, %s2892_s10  ;;  %1647 = vrot.lane.b32.xlu2 %v3444_v57, %s2894_s14 }
 0x18d   : > { %v1082_v27 = vpop.permute.xlu1 %1081 }
 0x18e   : > { %1148 = vst.msk [vmem:[#allocation3 + $0xf0] sm:$0xff] %vm1117_vm4, %v1082_v27  ;;  %v1080_v1 = vpop.permute.xlu0 %1079  ;;  %v1084_v39 = vpop.permute.xlu2 %1083  ;;  %v3810_v27 = vld [vmem:[#allocation2 + $0x109] sm:$0xff] }
 0x18f   : > { %1147 = vst.msk [vmem:[#allocation3 + $0xe8] sm:$0xff] %vm1117_vm4, %v1080_v1  ;;  %v4460_v1 = vld [vmem:[#allocation10_spill] sm:$0xff] }
 0x190   : > { %1149 = vst.msk [vmem:[#allocation3 + $0xf8] sm:$0xff] %vm1117_vm4, %v1084_v39 }
 0x193   : > { %1842 = vrot.lane.b32.xlu1 %v3684_v52, %s2893_s13 }
 0x194   : > { %1413 = vrot.lane.b32.xlu0 %v3267_v14, %s2895_s15  ;;  %1605 = vrot.lane.b32.xlu2 %v3292_v25, %s2894_s14 }
 0x195   : > { %v1217_v6 = vpop.permute.xlu1 %1216 }
 0x196   : > { %1312 = vst.msk [vmem:[#allocation3 + $0x8] sm:$0xff] %vm1310_vm5, %v1217_v6  ;;  %v1215_v15 = vpop.permute.xlu0 %1214  ;;  %v1219_v57 = vpop.permute.xlu2 %1218 }
 0x197   : > { %1311 = vst.msk [vmem:[#allocation3] sm:$0xff] %vm1310_vm5, %v1215_v15 }
 0x198   : > { %1313 = vst.msk [vmem:[#allocation3 + $0x10] sm:$0xff] %vm1310_vm5, %v1219_v57  ;;  %v1348_v57 = vld [vmem:[#allocation2 + $0x6a] sm:$0xff] }
 0x19b   : > { %1431 = vrot.lane.b32.xlu1 %v3324_v54, %s2895_s15 }
 0x19c   : > { %2035 = vrot.lane.b32.xlu0 %v3695_v18, %s2896_s16  ;;  %1991 = vrot.lane.b32.xlu2 %v3284_v23, %s2896_s16 }
 0x19d   : > { %v1223_v14 = vpop.permute.xlu1 %1222 }
 0x19e   : > { %1315 = vst.msk [vmem:[#allocation3 + $0x20] sm:$0xff] %vm1310_vm5, %v1223_v14  ;;  %v1221_v22 = vpop.permute.xlu0 %1220  ;;  %v1225_v54 = vpop.permute.xlu2 %1224 }
 0x19f   : > { %1314 = vst.msk [vmem:[#allocation3 + $0x18] sm:$0xff] %vm1310_vm5, %v1221_v22  ;;  %v3835_v22 = vld [vmem:[#allocation2 + $0x10a] sm:$0xff] }
 0x1a0   : > { %1316 = vst.msk [vmem:[#allocation3 + $0x28] sm:$0xff] %vm1310_vm5, %v1225_v54 }
 0x1a3   : > { %1993 = vrot.lane.b32.xlu1 %v3282_v20, %s2896_s16  ;;  %v4457_v20 = vld [vmem:[#allocation7_spill] sm:$0xff] }
 0x1a4   : > { %1625 = vrot.lane.b32.xlu0 %v3365_v24, %s2894_s14  ;;  %1649 = vrot.lane.b32.xlu2 %v3576_v41, %s2894_s14  ;;  %v2151_v41 = vld [vmem:[%s4442_s3 + $0x18] sm:$0xff] }
 0x1a5   : > { %v1229_v25 = vpop.permute.xlu1 %1228  ;;  %2270 = vmatpush.msra.mxu0 %v2151_v41  ;;  %2743 = vmatpush.msra.mxu3 %v2151_v41 }
 0x1a6   : > { %1318 = vst.msk [vmem:[#allocation3 + $0x38] sm:$0xff] %vm1310_vm5, %v1229_v25  ;;  %v1227_v16 = vpop.permute.xlu0 %1226  ;;  %v1231_v24 = vpop.permute.xlu2 %1230  ;;  %2742 = vmatpush.msra.mxu2 %v2151_v41 }
 0x1a7   : > { %1317 = vst.msk [vmem:[#allocation3 + $0x30] sm:$0xff] %vm1310_vm5, %v1227_v16  ;;  %2271 = vmatpush.msra.mxu0 %v2150_v30  ;;  %2745 = vmatpush.msra.mxu3 %v2150_v30 }
 0x1a8   : > { %1319 = vst.msk [vmem:[#allocation3 + $0x40] sm:$0xff] %vm1310_vm5, %v1231_v24  ;;  %2744 = vmatpush.msra.mxu2 %v2150_v30  ;;  %v1551_v30 = vld [vmem:[#allocation2 + $0x108] sm:$0xff] }
 0x1a9   : > { %2272 = vmatpush.msra.mxu0 %v2149_v34  ;;  %2747 = vmatpush.msra.mxu3 %v2149_v34 }
 0x1aa   : > { %2746 = vmatpush.msra.mxu2 %v2149_v34  ;;  %v3872_v34 = vld [vmem:[#allocation2 + $0x1a2] sm:$0xff] }
 0x1ab   : > { %2011 = vrot.lane.b32.xlu1 %v4456_v29, %s2896_s16  ;;  %2273 = vmatpush.msra.mxu0 %v2148_v40  ;;  %v3855_v29 = vld [vmem:[#allocation2 + $0x19a] sm:$0xff] }
 0x1ac   : > { %1264 = vrot.lane.b32.xlu0 %v4457_v20, %s2892_s10  ;;  %1607 = vrot.lane.b32.xlu2 %v3299_v32, %s2894_s14  ;;  %v3747_v32 = vld [vmem:[#allocation2 + $0x18a] sm:$0xff]  ;;  %v1349_v20 = vld [vmem:[#allocation2 + $0x7a] sm:$0xff] }
 0x1ad   : > { %v1235_v23 = vpop.permute.xlu1 %1234  ;;  %2749 = vmatpush.msra.mxu3 %v2148_v40  ;;  %2748 = vmatpush.msra.mxu2 %v2148_v40 }
 0x1ae   : > { %1321 = vst.msk [vmem:[#allocation3 + $0x50] sm:$0xff] %vm1310_vm5, %v1235_v23  ;;  %v1233_v8 = vpop.permute.xlu0 %1232  ;;  %v1237_v51 = vpop.permute.xlu2 %1236  ;;  %v2813_v23 = vld [vmem:[%s3850_s18] sm:%s3844_s28] }
 0x1af   : > { %1320 = vst.msk [vmem:[#allocation3 + $0x48] sm:$0xff] %vm1310_vm5, %v1233_v8 }
 0x1b0   : > { %1322 = vst.msk [vmem:[#allocation3 + $0x58] sm:$0xff] %vm1310_vm5, %v1237_v51 }
 0x1b1   : > { %503 = vst.msk [vmem:[#allocation2 + $0x1b1] sm:$0xff] %vm465_vm0, %v2813_v23 }
 0x1b3   : > { %1415 = vrot.lane.b32.xlu1 %v1347_v38, %s2895_s15  ;;  %v3868_v38 = vld [vmem:[#allocation2 + $0xe2] sm:$0xff] }
 0x1b4   : > { %1651 = vrot.lane.b32.xlu0 %v3547_v61, %s2894_s14  ;;  %v1733_v61 = vld [vmem:[#allocation2 + $0x81] sm:$0xff] }
 0x1b5   : > { %v1241_v2 = vpop.permute.xlu1 %1240  ;;  %1800 = vrot.lane.b32.xlu2 %v1733_v61, %s2893_s13 }
 0x1b6   : > { %1324 = vst.msk [vmem:[#allocation3 + $0x68] sm:$0xff] %vm1310_vm5, %v1241_v2  ;;  %v1239_v36 = vpop.permute.xlu0 %1238  ;;  %v1243_v46 = vpop.permute.xlu2 %1242  ;;  %v2816_v2 = vld [vmem:[%s3850_s18 + $0x8] sm:%s3844_s28] }
 0x1b7   : > { %1323 = vst.msk [vmem:[#allocation3 + $0x60] sm:$0xff] %vm1310_vm5, %v1239_v36 }
 0x1b8   : > { %1325 = vst.msk [vmem:[#allocation3 + $0x70] sm:$0xff] %vm1310_vm5, %v1243_v46  ;;  %v1177_v46 = vld [vmem:[#allocation2 + $0x171] sm:$0xff] }
 0x1b9   : > { %504 = vst.msk [vmem:[#allocation2 + $0x1b9] sm:$0xff] %vm465_vm0, %v2816_v2 }
 0x1bb   : > { %2037 = vrot.lane.b32.xlu1 %v3747_v32, %s2896_s16 }
 0x1bc   : > { %1609 = vrot.lane.b32.xlu0 %v3314_v45, %s2894_s14 }
 0x1bd   : > { %v1247_v10 = vpop.permute.xlu1 %1246  ;;  %1818 = vrot.lane.b32.xlu2 %v1742_v21, %s2893_s13 }
 0x1be   : > { %1327 = vst.msk [vmem:[#allocation3 + $0x80] sm:$0xff] %vm1310_vm5, %v1247_v10  ;;  %v1245_v42 = vpop.permute.xlu0 %1244  ;;  %v1408_v48 = vpop.permute.xlu2 %1407  ;;  %v3885_v10 = vld [vmem:[#allocation2 + $0xaa] sm:$0xff] }
 0x1bf   : > { %1326 = vst.msk [vmem:[#allocation3 + $0x78] sm:$0xff] %vm1310_vm5, %v1245_v42  ;;  %v1552_v42 = vld [vmem:[#allocation2 + $0x110] sm:$0xff] }
 0x1c0   : > { %1504 = vst.msk [vmem:[#allocation3] sm:$0xff] %vm1503_vm7, %v1408_v48  ;;  %v3895_v48 = vld [vmem:[#allocation2 + $0x112] sm:$0xff] }
 0x1c3   : > { %1627 = vrot.lane.b32.xlu1 %v3380_v44, %s2894_s14  ;;  %v4458_v44 = vld [vmem:[#allocation9_spill] sm:$0xff] }
 0x1c4   : > { %1802 = vrot.lane.b32.xlu0 %v1734_v31, %s2893_s13 }
 0x1c5   : > { %v1795_v45 = vpop.permute.xlu1 %1794  ;;  %1457 = vrot.lane.b32.xlu2 %v4458_v44, %s2895_s15 }
 0x1c6   : > { %v1602_v50 = vpop.permute.xlu0 %1601  ;;  %v1988_v43 = vpop.permute.xlu2 %1987 }
 0x1c7   : > { %1698 = vst.msk [vmem:[#allocation3] sm:$0xff] %vm1697_vm8, %v1602_v50 }
 0x1c8   : > { %1891 = vst.msk [vmem:[#allocation3] sm:$0xff] %vm1890_vm9, %v1795_v45 }
 0x1c9   : > { %2084 = vst.msk [vmem:[#allocation3] sm:$0xff] %vm2083_vm10, %v1988_v43  ;;  %v1350_v43 = vld [vmem:[#allocation2 + $0x82] sm:$0xff] }
 0x1cb   : > { %1266 = vrot.lane.b32.xlu1 %v1176_v28, %s2892_s10 }
 0x1cc   : > { %1820 = vrot.lane.b32.xlu0 %v3764_v37, %s2893_s13 }
 0x1cd   : > { %v1452_v19 = vpop.permute.xlu1 %1451  ;;  %1844 = vrot.lane.b32.xlu2 %v3773_v55, %s2893_s13 }
 0x1ce   : > { %v1259_v7 = vpop.permute.xlu0 %1258  ;;  %v1646_v49 = vpop.permute.xlu2 %1645 }
 0x1cf   : > { %1333 = vst.msk [vmem:[#allocation3 + $0xb0] sm:$0xff] %vm1310_vm5, %v1259_v7  ;;  %v1543_v7 = vld [vmem:[#allocation2 + $0xa8] sm:$0xff] }
 0x1d0   : > { %1526 = vst.msk [vmem:[#allocation3 + $0xb0] sm:$0xff] %vm1503_vm7, %v1452_v19  ;;  %v2116_v60 = vld [vmem:[#allocation3] sm:$0xff] }
 0x1d1   : > { %1720 = vst.msk [vmem:[#allocation3 + $0xb0] sm:$0xff] %vm1697_vm8, %v1646_v49  ;;  %2690 = vmatmul.msk.f32.vlgmr.msra.gmra.mxu0 %vm2157_vm11, %v2116_v60 }
 0x1d3   : > { %1653 = vrot.lane.b32.xlu1 %v3545_v56, %s2894_s14  ;;  %v3788_v56 = vld [vmem:[#allocation2 + $0x199] sm:$0xff] }
 0x1d4   : > { %1459 = vrot.lane.b32.xlu0 %v3472_v0, %s2895_s15 }
 0x1d5   : > { %v1839_v11 = vpop.permute.xlu1 %1838  ;;  %1433 = vrot.lane.b32.xlu2 %v3785_v63, %s2895_s15 }
 0x1d6   : > { %v1410_v4 = vpop.permute.xlu0 %1409  ;;  %1913 = vst.msk [vmem:[#allocation3 + $0xb0] sm:$0xff] %vm1890_vm9, %v1839_v11  ;;  %v1604_v47 = vpop.permute.xlu2 %1603  ;;  %v1565_v11 = vld [vmem:[#allocation2 + $0x1b0] sm:$0xff] }
 0x1d7   : > { %1505 = vst.msk [vmem:[#allocation3 + $0x8] sm:$0xff] %vm1503_vm7, %v1410_v4  ;;  %v1951_v4 = vld [vmem:[#allocation2 + $0x1b2] sm:$0xff] }
 0x1d8   : > { %1699 = vst.msk [vmem:[#allocation3 + $0x8] sm:$0xff] %vm1697_vm8, %v1604_v47 }
 0x1db   : > { %1611 = vrot.lane.b32.xlu1 %v1542_v5, %s2894_s14  ;;  %v1736_v5 = vld [vmem:[#allocation2 + $0xa9] sm:$0xff] }
 0x1dc   : > { %1846 = vrot.lane.b32.xlu0 %v3788_v56, %s2893_s13 }
 0x1dd   : > { %v1797_v0 = vpop.permute.xlu1 %1796  ;;  %1995 = vrot.lane.b32.xlu2 %v3797_v9, %s2896_s16 }
 0x1de   : > { %v2032_v12 = vpop.permute.xlu0 %2031  ;;  %1892 = vst.msk [vmem:[#allocation3 + $0x8] sm:$0xff] %vm1890_vm9, %v1797_v0  ;;  %v1990_v53 = vpop.permute.xlu2 %1989  ;;  %v1544_v0 = vld [vmem:[#allocation2 + $0xb0] sm:$0xff] }
 0x1df   : > { %2106 = vst.msk [vmem:[#allocation3 + $0xb0] sm:$0xff] %vm2083_vm10, %v2032_v12 }
 0x1e0   : > { %2085 = vst.msk [vmem:[#allocation3 + $0x8] sm:$0xff] %vm2083_vm10, %v1990_v53  ;;  %v1553_v53 = vld [vmem:[#allocation2 + $0x120] sm:$0xff] }
 0x1e3   : > { %1804 = vrot.lane.b32.xlu1 %v1735_v58, %s2893_s13 }
 0x1e4   : > { %1435 = vrot.lane.b32.xlu0 %v3800_v62, %s2895_s15 }
 0x1e5   : > { %v1454_v59 = vpop.permute.xlu1 %1453  ;;  %2013 = vrot.lane.b32.xlu2 %v4460_v1, %s2896_s16 }
 0x1e6   : > { %v1261_v33 = vpop.permute.xlu0 %1260  ;;  %v2138_v26 = vld [vmem:[#allocation3 + $0xb0] sm:$0xff]  ;;  %v1648_v39 = vpop.permute.xlu2 %1647 }
 0x1e7   : > { %1334 = vst.msk [vmem:[#allocation3 + $0xb8] sm:$0xff] %vm1310_vm5, %v1261_v33  ;;  %2712 = vmatmul.msk.f32.vlgmr.msra.gmra.mxu3 %vm2157_vm11, %v2138_v26  ;;  %v2117_v15 = vld [vmem:[#allocation3 + $0x8] sm:$0xff]  ;;  %v3921_v33 = vld [vmem:[#allocation2 + $0x111] sm:$0xff] }
 0x1e8   : > { %1527 = vst.msk [vmem:[#allocation3 + $0xb8] sm:$0xff] %vm1503_vm7, %v1454_v59  ;;  %2691 = vmatmul.msk.f32.gmra.mxu0 %vm2157_vm11, %v2117_v15  ;;  %v1737_v26 = vld [vmem:[#allocation2 + $0xb1] sm:$0xff]  ;;  %v3930_v15 = vld [vmem:[#allocation2 + $0x121] sm:$0xff] }
 0x1e9   : > { %1721 = vst.msk [vmem:[#allocation3 + $0xb8] sm:$0xff] %vm1697_vm8, %v1648_v39 }
 0x1eb   : > { %1822 = vrot.lane.b32.xlu1 %v3810_v27, %s2893_s13 }
 0x1ec   : > { %1997 = vrot.lane.b32.xlu0 %v3818_v3, %s2896_s16 }
 0x1ed   : > { %v1841_v6 = vpop.permute.xlu1 %1840  ;;  %1417 = vrot.lane.b32.xlu2 %v1348_v57, %s2895_s15 }
 0x1ee   : > { %v1412_v14 = vpop.permute.xlu0 %1411  ;;  %1914 = vst.msk [vmem:[#allocation3 + $0xb8] sm:$0xff] %vm1890_vm9, %v1841_v6  ;;  %v1606_v54 = vpop.permute.xlu2 %1605 }
 0x1ef   : > { %1506 = vst.msk [vmem:[#allocation3 + $0x10] sm:$0xff] %vm1503_vm7, %v1412_v14 }
 0x1f0   : > { %1700 = vst.msk [vmem:[#allocation3 + $0x10] sm:$0xff] %vm1697_vm8, %v1606_v54 }
 0x1f3   : > { %1461 = vrot.lane.b32.xlu1 %v3434_v35, %s2895_s15  ;;  %v3853_v35 = vld [vmem:[#allocation2 + $0x1a1] sm:$0xff] }
 0x1f4   : > { %2015 = vrot.lane.b32.xlu0 %v3835_v22, %s2896_s16 }
 0x1f5   : > { %v1799_v25 = vpop.permute.xlu1 %1798  ;;  %2039 = vrot.lane.b32.xlu2 %v3855_v29, %s2896_s16 }
 0x1f6   : > { %v2034_v16 = vpop.permute.xlu0 %2033  ;;  %1893 = vst.msk [vmem:[#allocation3 + $0x10] sm:$0xff] %vm1890_vm9, %v1799_v25  ;;  %v1992_v8 = vpop.permute.xlu2 %1991 }
 0x1f7   : > { %2107 = vst.msk [vmem:[#allocation3 + $0xb8] sm:$0xff] %vm2083_vm10, %v2034_v16  ;;  %v1566_v16 = vld [vmem:[#allocation2 + $0x1b8] sm:$0xff] }
 0x1f8   : > { %2086 = vst.msk [vmem:[#allocation3 + $0x10] sm:$0xff] %vm2083_vm10, %v1992_v8  ;;  %v1759_v8 = vld [vmem:[#allocation2 + $0x1b9] sm:$0xff] }
 0x1fb   : > { %1848 = vrot.lane.b32.xlu1 %v3853_v35, %s2893_s13 }
 0x1fc   : > { %1419 = vrot.lane.b32.xlu0 %v1349_v20, %s2895_s15 }
 0x1fd   : > { %v1456_v24 = vpop.permute.xlu1 %1455  ;;  %1629 = vrot.lane.b32.xlu2 %v1551_v30, %s2894_s14 }
 0x1fe   : > { %v1263_v17 = vpop.permute.xlu0 %1262  ;;  %v2139_v41 = vld [vmem:[#allocation3 + $0xb8] sm:$0xff]  ;;  %v1650_v36 = vpop.permute.xlu2 %1649 }
 0x1ff   : > { %1335 = vst.msk [vmem:[#allocation3 + $0xc0] sm:$0xff] %vm1310_vm5, %v1263_v17  ;;  %2713 = vmatmul.msk.f32.gmra.mxu3 %vm2157_vm11, %v2139_v41  ;;  %v2118_v40 = vld [vmem:[#allocation3 + $0x10] sm:$0xff] }
 0x200   : > { %1528 = vst.msk [vmem:[#allocation3 + $0xc0] sm:$0xff] %vm1503_vm7, %v1456_v24  ;;  %2692 = vmatmul.msk.f32.gmra.mxu0 %vm2157_vm11, %v2118_v40  ;;  %v1359_v24 = vld [vmem:[#allocation2 + $0xf2] sm:$0xff] }
 0x201   : > { %1722 = vst.msk [vmem:[#allocation3 + $0xc0] sm:$0xff] %vm1697_vm8, %v1650_v36  ;;  %v2820_v17 = vld [vmem:[%s3850_s18 + $0x10] sm:%s3844_s28] }
 0x202   : > { %505 = vst.msk [vmem:[#allocation2 + $0x1c9] sm:$0xff] %vm465_vm0, %v2820_v17  ;;  %v3959_v36 = vld [vmem:[#allocation2 + $0xb2] sm:$0xff]  ;;  %v1941_v17 = vld [vmem:[#allocation2 + $0x13a] sm:$0xff] }
 0x203   : > { %1437 = vrot.lane.b32.xlu1 %v3868_v38, %s2895_s15 }
 0x204   : > { %2041 = vrot.lane.b32.xlu0 %v3872_v34, %s2896_s16 }
 0x205   : > { %v1843_v51 = vpop.permute.xlu1 %1842  ;;  %1268 = vrot.lane.b32.xlu2 %v1177_v46, %s2892_s10 }
 0x206   : > { %v1414_v61 = vpop.permute.xlu0 %1413  ;;  %1915 = vst.msk [vmem:[#allocation3 + $0xc0] sm:$0xff] %vm1890_vm9, %v1843_v51  ;;  %v1608_v31 = vpop.permute.xlu2 %1607  ;;  %v1360_v51 = vld [vmem:[#allocation2 + $0xfa] sm:$0xff] }
 0x207   : > { %1507 = vst.msk [vmem:[#allocation3 + $0x18] sm:$0xff] %vm1503_vm7, %v1414_v61 }
 0x208   : > { %1701 = vst.msk [vmem:[#allocation3 + $0x18] sm:$0xff] %vm1697_vm8, %v1608_v31  ;;  %v3969_v31 = vld [vmem:[#allocation2 + $0x122] sm:$0xff] }
 0x20b   : > { %1999 = vrot.lane.b32.xlu1 %v3885_v10, %s2896_s16 }
 0x20c   : > { %1631 = vrot.lane.b32.xlu0 %v1552_v42, %s2894_s14 }
 0x20d   : > { %v1432_v21 = vpop.permute.xlu1 %1431  ;;  %1655 = vrot.lane.b32.xlu2 %v3587_v13, %s2894_s14 }
 0x20e   : > { %1516 = vst.msk [vmem:[#allocation3 + $0x60] sm:$0xff] %vm1503_vm7, %v1432_v21  ;;  %v2036_v45 = vpop.permute.xlu0 %2035  ;;  %v1931_v21 = vld [vmem:[#allocation2 + $0xc2] sm:$0xff] }
 0x20f   : > { %2108 = vst.msk [vmem:[#allocation3 + $0xc0] sm:$0xff] %vm2083_vm10, %v2036_v45  ;;  %v1801_v28 = vpop.permute.xlu2 %1800  ;;  %v3975_v45 = vld [vmem:[%s4443_s4] ss:$0 sm:$0xff] }
 0x210   : > { %1894 = vst.msk [vmem:[#allocation3 + $0x18] sm:$0xff] %vm1890_vm9, %v1801_v28 }
 0x213   : > { %2017 = vrot.lane.b32.xlu1 %v3895_v48, %s2896_s16 }
 0x214   : > { %1270 = vrot.lane.b32.xlu0 %v3684_v52, %s2892_s10 }
 0x215   : > { %v1994_v50 = vpop.permute.xlu1 %1993  ;;  %1613 = vrot.lane.b32.xlu2 %v1543_v7, %s2894_s14 }
 0x216   : > { %v1626_v44 = vpop.permute.xlu0 %1625  ;;  %v2140_v19 = vld [vmem:[#allocation3 + $0xc0] sm:$0xff]  ;;  %2087 = vst.msk [vmem:[#allocation3 + $0x18] sm:$0xff] %vm2083_vm10, %v1994_v50  ;;  %v1554_v50 = vld [vmem:[#allocation2 + $0x128] sm:$0xff] }
 0x217   : > { %2714 = vmatmul.msk.f32.gmra.mxu3 %vm2157_vm11, %v2140_v19  ;;  %1710 = vst.msk [vmem:[#allocation3 + $0x60] sm:$0xff] %vm1697_vm8, %v1626_v44  ;;  %v1819_v52 = vpop.permute.xlu2 %1818 }
 0x218   : > { %1903 = vst.msk [vmem:[#allocation3 + $0x60] sm:$0xff] %vm1890_vm9, %v1819_v52 }
 0x21b   : > { %1421 = vrot.lane.b32.xlu1 %v1350_v43, %s2895_s15 }
 0x21c   : > { %1657 = vrot.lane.b32.xlu0 %v1565_v11, %s2894_s14  ;;  %v3996_v11 = vld [vmem:[#allocation2 + $0x12a] sm:$0xff] }
 0x21d   : > { %v2012_v13 = vpop.permute.xlu1 %2011  ;;  %v2119_v60 = vld [vmem:[#allocation3 + $0x18] sm:$0xff]  ;;  %1806 = vrot.lane.b32.xlu2 %v1736_v5, %s2893_s13  ;;  %v1567_v5 = vld [vmem:[#allocation2 + $0x1c8] sm:$0xff] }
 0x21e   : > { %v1265_v49 = vpop.permute.xlu0 %1264  ;;  %2096 = vst.msk [vmem:[#allocation3 + $0x60] sm:$0xff] %vm2083_vm10, %v2012_v13  ;;  %2693 = vmatmul.msk.f32.gmra.mxu0 %vm2157_vm11, %v2119_v60 }
 0x21f   : > { %1336 = vst.msk [vmem:[#allocation3 + $0xc8] sm:$0xff] %vm1310_vm5, %v1265_v49  ;;  %v1458_v12 = vpop.permute.xlu2 %1457 }
 0x220   : > { %1529 = vst.msk [vmem:[#allocation3 + $0xc8] sm:$0xff] %vm1503_vm7, %v1458_v12 }
 0x223   : > { %2043 = vrot.lane.b32.xlu1 %v1951_v4, %s2896_s16  ;;  %v1545_v4 = vld [vmem:[#allocation2 + $0xc0] sm:$0xff] }
 0x224   : > { %1615 = vrot.lane.b32.xlu0 %v1544_v0, %s2894_s14 }
 0x225   : > { %v1416_v47 = vpop.permute.xlu1 %1415  ;;  %v2128_v59 = vld [vmem:[#allocation3 + $0x60] sm:$0xff]  ;;  %1824 = vrot.lane.b32.xlu2 %v3921_v33, %s2893_s13 }
 0x226   : > { %1508 = vst.msk [vmem:[#allocation3 + $0x20] sm:$0xff] %vm1503_vm7, %v1416_v47  ;;  %v1652_v58 = vpop.permute.xlu0 %1651  ;;  %2702 = vmatmul.msk.f32.vlgmr.msra.gmra.mxu2 %vm2157_vm11, %v2128_v59  ;;  %v1738_v59 = vld [vmem:[#allocation2 + $0xc1] sm:$0xff] }
 0x227   : > { %1723 = vst.msk [vmem:[#allocation3 + $0xc8] sm:$0xff] %vm1697_vm8, %v1652_v58  ;;  %v1845_v6 = vpop.permute.xlu2 %1844  ;;  %v1546_v58 = vld [vmem:[#allocation2 + $0xc8] sm:$0xff] }
 0x228   : > { %1916 = vst.msk [vmem:[#allocation3 + $0xc8] sm:$0xff] %vm1890_vm9, %v1845_v6 }
 0x22b   : > { %1633 = vrot.lane.b32.xlu1 %v1553_v53, %s2894_s14 }
 0x22c   : > { %1808 = vrot.lane.b32.xlu0 %v1737_v26, %s2893_s13 }
 0x22d   : > { %v2038_v1 = vpop.permute.xlu1 %2037  ;;  %1463 = vrot.lane.b32.xlu2 %v3695_v18, %s2895_s15 }
 0x22e   : > { %v1610_v39 = vpop.permute.xlu0 %1609  ;;  %2109 = vst.msk [vmem:[#allocation3 + $0xc8] sm:$0xff] %vm2083_vm10, %v2038_v1 }
 0x22f   : > { %1702 = vst.msk [vmem:[#allocation3 + $0x20] sm:$0xff] %vm1697_vm8, %v1610_v39  ;;  %v1434_v57 = vpop.permute.xlu2 %1433 }
 0x230   : > { %1517 = vst.msk [vmem:[#allocation3 + $0x68] sm:$0xff] %vm1503_vm7, %v1434_v57 }
 0x233   : > { %1272 = vrot.lane.b32.xlu1 %v3773_v55, %s2892_s10  ;;  %v1758_v55 = vld [vmem:[#allocation2 + $0x1b1] sm:$0xff] }
 0x234   : > { %1826 = vrot.lane.b32.xlu0 %v3930_v15, %s2893_s13 }
 0x235   : > { %v1628_v14 = vpop.permute.xlu1 %1627  ;;  %v2141_v54 = vld [vmem:[#allocation3 + $0xc8] sm:$0xff]  ;;  %1850 = vrot.lane.b32.xlu2 %v1758_v55, %s2893_s13 }
 0x236   : > { %v1803_v25 = vpop.permute.xlu0 %1802  ;;  %1711 = vst.msk [vmem:[#allocation3 + $0x68] sm:$0xff] %vm1697_vm8, %v1628_v14  ;;  %2715 = vmatmul.msk.f32.gmra.mxu3 %vm2157_vm11, %v2141_v54 }
 0x237   : > { %1895 = vst.msk [vmem:[#allocation3 + $0x20] sm:$0xff] %vm1890_vm9, %v1803_v25  ;;  %v1996_v20 = vpop.permute.xlu2 %1995  ;;  %v1739_v25 = vld [vmem:[#allocation2 + $0xc9] sm:$0xff] }
 0x238   : > { %2088 = vst.msk [vmem:[#allocation3 + $0x20] sm:$0xff] %vm2083_vm10, %v1996_v20 }
 0x23b   : > { %1659 = vrot.lane.b32.xlu1 %v1566_v16, %s2894_s14 }
 0x23c   : > { %1465 = vrot.lane.b32.xlu0 %v3747_v32, %s2895_s15 }
 0x23d   : > { %v1267_v18 = vpop.permute.xlu1 %1266  ;;  %1439 = vrot.lane.b32.xlu2 %v1359_v24, %s2895_s15 }
 0x23e   : > { %1337 = vst.msk [vmem:[#allocation3 + $0xd0] sm:$0xff] %vm1310_vm5, %v1267_v18  ;;  %v1821_v23 = vpop.permute.xlu0 %1820  ;;  %v1748_v18 = vld [vmem:[#allocation2 + $0x139] sm:$0xff] }
 0x23f   : > { %1904 = vst.msk [vmem:[#allocation3 + $0x68] sm:$0xff] %vm1890_vm9, %v1821_v23  ;;  %v2014_v41 = vpop.permute.xlu2 %2013  ;;  %v2120_v30 = vld [vmem:[#allocation3 + $0x20] sm:$0xff] }
 0x240   : > { %2097 = vst.msk [vmem:[#allocation3 + $0x68] sm:$0xff] %vm2083_vm10, %v2014_v41  ;;  %2694 = vmatmul.msk.f32.gmra.mxu0 %vm2157_vm11, %v2120_v30 }
 0x243   : > { %1248 = vrot.lane.b32.xlu1 %v3764_v37, %s2892_s10  ;;  %v1952_v37 = vld [vmem:[#allocation2 + $0x1ba] sm:$0xff] }
 0x244   : > { %1852 = vrot.lane.b32.xlu0 %v1759_v8, %s2893_s13  ;;  %v1760_v8 = vld [vmem:[#allocation2 + $0x1c9] sm:$0xff] }
 0x245   : > { %v1654_v32 = vpop.permute.xlu1 %1653  ;;  %2001 = vrot.lane.b32.xlu2 %v3959_v36, %s2896_s16 }
 0x246   : > { %v1460_v2 = vpop.permute.xlu0 %1459 }
 0x247   : > { %1530 = vst.msk [vmem:[#allocation3 + $0xd0] sm:$0xff] %vm1503_vm7, %v1460_v2  ;;  %v1418_v61 = vpop.permute.xlu2 %1417  ;;  %v2129_v46 = vld [vmem:[#allocation3 + $0x68] sm:$0xff] }
 0x248   : > { %1724 = vst.msk [vmem:[#allocation3 + $0xd0] sm:$0xff] %vm1697_vm8, %v1654_v32  ;;  %2703 = vmatmul.msk.f32.gmra.mxu2 %vm2157_vm11, %v2129_v46 }
 0x249   : > { %1509 = vst.msk [vmem:[#allocation3 + $0x28] sm:$0xff] %vm1503_vm7, %v1418_v61 }
 0x24b   : > { %1441 = vrot.lane.b32.xlu1 %v1360_v51, %s2895_s15 }
 0x24c   : > { %2045 = vrot.lane.b32.xlu0 %v1952_v37, %s2896_s16 }
 0x24d   : > { %v1612_v40 = vpop.permute.xlu1 %1611  ;;  %2019 = vrot.lane.b32.xlu2 %v3969_v31, %s2896_s16 }
 0x24e   : > { %v1847_v42 = vpop.permute.xlu0 %1846  ;;  %1703 = vst.msk [vmem:[#allocation3 + $0x28] sm:$0xff] %vm1697_vm8, %v1612_v40  ;;  %v2275_v28 = vpop.f32.mrf.mxu0 }
 0x24f   : > { %1917 = vst.msk [vmem:[#allocation3 + $0xd0] sm:$0xff] %vm1890_vm9, %v1847_v42  ;;  %v3989_v44 = vadd.f32 %v3975_v45, %v2275_v28  ;;  %v2040_v43 = vpop.permute.xlu2 %2039 }
 0x250   : > { %2110 = vst.msk [vmem:[#allocation3 + $0xd0] sm:$0xff] %vm2083_vm10, %v2040_v43 }
 0x251   : > { %2490 = vst.msk [vmem:[%s3985_s29] sm:$0xff] %vm465_vm0, %v3989_v44 }
 0x253   : > { %2003 = vrot.lane.b32.xlu1 %v1931_v21, %s2896_s16 }
 0x254   : > { %1635 = vrot.lane.b32.xlu0 %v1554_v50, %s2894_s14  ;;  %v1555_v50 = vld [vmem:[#allocation2 + $0x138] sm:$0xff] }
 0x255   : > { %v1805_v19 = vpop.permute.xlu1 %1804  ;;  %1423 = vrot.lane.b32.xlu2 %v3797_v9, %s2895_s15 }
 0x256   : > { %1896 = vst.msk [vmem:[#allocation3 + $0x28] sm:$0xff] %vm1890_vm9, %v1805_v19  ;;  %v1436_v7 = vpop.permute.xlu0 %1435  ;;  %v1547_v19 = vld [vmem:[#allocation2 + $0xd8] sm:$0xff] }
 0x257   : > { %1518 = vst.msk [vmem:[#allocation3 + $0x70] sm:$0xff] %vm1503_vm7, %v1436_v7  ;;  %v1630_v52 = vpop.permute.xlu2 %1629  ;;  %v2142_v60 = vld [vmem:[#allocation3 + $0xd0] sm:$0xff] }
 0x258   : > { %1712 = vst.msk [vmem:[#allocation3 + $0x70] sm:$0xff] %vm1697_vm8, %v1630_v52  ;;  %2716 = vmatmul.msk.f32.gmra.mxu3 %vm2157_vm11, %v2142_v60  ;;  %v1740_v52 = vld [vmem:[#allocation2 + $0xd9] sm:$0xff] }
 0x25b   : > { %2021 = vrot.lane.b32.xlu1 %v3996_v11, %s2896_s16 }
 0x25c   : > { %1274 = vrot.lane.b32.xlu0 %v3788_v56, %s2892_s10  ;;  %v2823_v56 = vld [vmem:[%s3850_s18 + $0x18] sm:%s3844_s28] }
 0x25d   : > { %v1823_v13 = vpop.permute.xlu1 %1822  ;;  %1617 = vrot.lane.b32.xlu2 %v1545_v4, %s2894_s14  ;;  %506 = vst.msk [vmem:[#allocation2 + $0x1d1] sm:$0xff] %vm465_vm0, %v2823_v56 }
 0x25e   : > { %v1998_v49 = vpop.permute.xlu0 %1997  ;;  %1905 = vst.msk [vmem:[#allocation3 + $0x70] sm:$0xff] %vm1890_vm9, %v1823_v13  ;;  %v1556_v13 = vld [vmem:[#allocation2 + $0x140] sm:$0xff] }
 0x25f   : > { %2089 = vst.msk [vmem:[#allocation3 + $0x28] sm:$0xff] %vm2083_vm10, %v1998_v49  ;;  %v1269_v0 = vpop.permute.xlu2 %1268 }
 0x260   : > { %1338 = vst.msk [vmem:[#allocation3 + $0xd8] sm:$0xff] %vm1310_vm5, %v1269_v0 }
 0x263   : > { %1425 = vrot.lane.b32.xlu1 %v3818_v3, %s2895_s15 }
 0x264   : > { %1661 = vrot.lane.b32.xlu0 %v1567_v5, %s2894_s14  ;;  %v1953_v40 = vld [vmem:[#allocation2 + $0x1ca] sm:$0xff]  ;;  %v1954_v21 = vld [vmem:[#allocation2 + $0x1d2] sm:$0xff] }
 0x265   : > { %v1462_v9 = vpop.permute.xlu1 %1461  ;;  %1810 = vrot.lane.b32.xlu2 %v1738_v59, %s2893_s13  ;;  %v2278_v3 = vpop.f32.mrf.mxu0 }
 0x266   : > { %v2016_v47 = vpop.permute.xlu0 %2015  ;;  %1531 = vst.msk [vmem:[#allocation3 + $0xd8] sm:$0xff] %vm1503_vm7, %v1462_v9  ;;  %v2121_v12 = vld [vmem:[#allocation3 + $0x28] sm:$0xff]  ;;  %v4025_v26 = vadd.f32 %v3975_v45, %v2278_v3 }
 0x267   : > { %2098 = vst.msk [vmem:[#allocation3 + $0x70] sm:$0xff] %vm2083_vm10, %v2016_v47  ;;  %2695 = vmatmul.msk.f32.gmra.mxu0 %vm2157_vm11, %v2121_v12  ;;  %v1656_v39 = vpop.permute.xlu2 %1655  ;;  %v1568_v12 = vld [vmem:[#allocation2 + $0x1d0] sm:$0xff] }
 0x268   : > { %2491 = vst.msk [vmem:[%s3985_s29 + $0x8] sm:$0xff] %vm465_vm0, %v4025_v26 }
 0x269   : > { %1725 = vst.msk [vmem:[#allocation3 + $0xd8] sm:$0xff] %vm1697_vm8, %v1656_v39 }
 0x26a   : > { %v2341_v53 = vpop.f32.mrf.mxu3 }
 0x26b   : > { %1619 = vrot.lane.b32.xlu1 %v1546_v58, %s2894_s14  ;;  %v4028_v1 = vadd.f32 %v3975_v45, %v2341_v53  ;;  %v1749_v58 = vld [vmem:[#allocation2 + $0x141] sm:$0xff] }
 0x26c   : > { %1250 = vrot.lane.b32.xlu0 %v3810_v27, %s2892_s10  ;;  %v4037_v27 = vld [vmem:[#allocation2 + $0x129] sm:$0xff] }
 0x26d   : > { %v1849_v6 = vpop.permute.xlu1 %1848  ;;  %2512 = vst.msk [vmem:[%s3985_s29 + $0xb0] sm:$0xff] %vm465_vm0, %v4028_v1  ;;  %1828 = vrot.lane.b32.xlu2 %v4037_v27, %s2893_s13 }
 0x26e   : > { %v1420_v14 = vpop.permute.xlu0 %1419  ;;  %v2130_v57 = vld [vmem:[#allocation3 + $0x70] sm:$0xff]  ;;  %1918 = vst.msk [vmem:[#allocation3 + $0xd8] sm:$0xff] %vm1890_vm9, %v1849_v6  ;;  %v1548_v6 = vld [vmem:[#allocation2 + $0xe0] sm:$0xff] }
 0x26f   : > { %2704 = vmatmul.msk.f32.gmra.mxu2 %vm2157_vm11, %v2130_v57  ;;  %1510 = vst.msk [vmem:[#allocation3 + $0x30] sm:$0xff] %vm1503_vm7, %v1420_v14  ;;  %v1614_v16 = vpop.permute.xlu2 %1613 }
 0x270   : > { %1704 = vst.msk [vmem:[#allocation3 + $0x30] sm:$0xff] %vm1697_vm8, %v1614_v16 }
 0x273   : > { %1812 = vrot.lane.b32.xlu1 %v1739_v25, %s2893_s13 }
 0x274   : > { %1443 = vrot.lane.b32.xlu0 %v3835_v22, %s2895_s15 }
 0x275   : > { %v1438_v54 = vpop.permute.xlu1 %1437  ;;  %1467 = vrot.lane.b32.xlu2 %v3855_v29, %s2895_s15 }
 0x276   : > { %1519 = vst.msk [vmem:[#allocation3 + $0x78] sm:$0xff] %vm1503_vm7, %v1438_v54  ;;  %v2042_v55 = vpop.permute.xlu0 %2041 }
 0x277   : > { %2111 = vst.msk [vmem:[#allocation3 + $0xd8] sm:$0xff] %vm2083_vm10, %v2042_v55  ;;  %v1807_v22 = vpop.permute.xlu2 %1806 }
 0x278   : > { %1897 = vst.msk [vmem:[#allocation3 + $0x30] sm:$0xff] %vm1890_vm9, %v1807_v22 }
 0x27b   : > { %1830 = vrot.lane.b32.xlu1 %v1748_v18, %s2893_s13 }
 0x27c   : > { %2005 = vrot.lane.b32.xlu0 %v3785_v63, %s2896_s16 }
 0x27d   : > { %v2000_v20 = vpop.permute.xlu1 %1999  ;;  %1854 = vrot.lane.b32.xlu2 %v1760_v8, %s2893_s13  ;;  %v2281_v63 = vpop.f32.mrf.mxu0 }
 0x27e   : > { %v1632_v23 = vpop.permute.xlu0 %1631  ;;  %v2143_v24 = vld [vmem:[#allocation3 + $0xd8] sm:$0xff]  ;;  %2090 = vst.msk [vmem:[#allocation3 + $0x30] sm:$0xff] %vm2083_vm10, %v2000_v20  ;;  %v4064_v32 = vadd.f32 %v3975_v45, %v2281_v63 }
 0x27f   : > { %2717 = vmatmul.msk.f32.gmra.mxu3 %vm2157_vm11, %v2143_v24  ;;  %1713 = vst.msk [vmem:[#allocation3 + $0x78] sm:$0xff] %vm1697_vm8, %v1632_v23  ;;  %v1825_v2 = vpop.permute.xlu2 %1824  ;;  %v1943_v23 = vld [vmem:[#allocation2 + $0x152] sm:$0xff] }
 0x280   : > { %2492 = vst.msk [vmem:[%s3985_s29 + $0x10] sm:$0xff] %vm465_vm0, %v4064_v32  ;;  %v1750_v24 = vld [vmem:[#allocation2 + $0x151] sm:$0xff] }
 0x281   : > { %1906 = vst.msk [vmem:[#allocation3 + $0x78] sm:$0xff] %vm1890_vm9, %v1825_v2 }
 0x282   : > { %v2344_v29 = vpop.f32.mrf.mxu3 }
 0x283   : > { %1469 = vrot.lane.b32.xlu1 %v3872_v34, %s2895_s15  ;;  %v4067_v41 = vadd.f32 %v3975_v45, %v2344_v29  ;;  %v1761_v34 = vld [vmem:[#allocation2 + $0x1d1] sm:$0xff] }
 0x284   : > { %2023 = vrot.lane.b32.xlu0 %v1941_v17, %s2896_s16 }
 0x285   : > { %v2018_v30 = vpop.permute.xlu1 %2017  ;;  %v2122_v37 = vld [vmem:[#allocation3 + $0x30] sm:$0xff]  ;;  %2513 = vst.msk [vmem:[%s3985_s29 + $0xb8] sm:$0xff] %vm465_vm0, %v4067_v41  ;;  %2047 = vrot.lane.b32.xlu2 %v1953_v40, %s2896_s16 }
 0x286   : > { %v1271_v51 = vpop.permute.xlu0 %1270  ;;  %2696 = vmatmul.msk.f32.gmra.mxu0 %vm2157_vm11, %v2122_v37  ;;  %2099 = vst.msk [vmem:[#allocation3 + $0x78] sm:$0xff] %vm2083_vm10, %v2018_v30  ;;  %v1558_v30 = vld [vmem:[#allocation2 + $0x158] sm:$0xff] }
 0x287   : > { %1339 = vst.msk [vmem:[#allocation3 + $0xe0] sm:$0xff] %vm1310_vm5, %v1271_v51  ;;  %v1464_v46 = vpop.permute.xlu2 %1463 }
 0x288   : > { %1532 = vst.msk [vmem:[#allocation3 + $0xe0] sm:$0xff] %vm1503_vm7, %v1464_v46 }
 0x28b   : > { %1856 = vrot.lane.b32.xlu1 %v1761_v34, %s2893_s13 }
 0x28c   : > { %1427 = vrot.lane.b32.xlu0 %v3885_v10, %s2895_s15 }
 0x28d   : > { %v1422_v61 = vpop.permute.xlu1 %1421  ;;  %v2131_v28 = vld [vmem:[#allocation3 + $0x78] sm:$0xff]  ;;  %1637 = vrot.lane.b32.xlu2 %v1555_v50, %s2894_s14 }
 0x28e   : > { %1511 = vst.msk [vmem:[#allocation3 + $0x38] sm:$0xff] %vm1503_vm7, %v1422_v61  ;;  %v1658_v42 = vpop.permute.xlu0 %1657  ;;  %2705 = vmatmul.msk.f32.gmra.mxu2 %vm2157_vm11, %v2131_v28 }
 0x28f   : > { %1726 = vst.msk [vmem:[#allocation3 + $0xe0] sm:$0xff] %vm1697_vm8, %v1658_v42  ;;  %v1851_v43 = vpop.permute.xlu2 %1850 }
 0x290   : > { %1919 = vst.msk [vmem:[#allocation3 + $0xe0] sm:$0xff] %vm1890_vm9, %v1851_v43 }
 0x293   : > { %2049 = vrot.lane.b32.xlu1 %v1954_v21, %s2896_s16 }
 0x294   : > { %1621 = vrot.lane.b32.xlu0 %v1547_v19, %s2894_s14 }
 0x295   : > { %v2044_v10 = vpop.permute.xlu1 %2043  ;;  %1276 = vrot.lane.b32.xlu2 %v3853_v35, %s2892_s10  ;;  %v1942_v35 = vld [vmem:[#allocation2 + $0x142] sm:$0xff] }
 0x296   : > { %v1616_v7 = vpop.permute.xlu0 %1615  ;;  %2112 = vst.msk [vmem:[#allocation3 + $0xe0] sm:$0xff] %vm2083_vm10, %v2044_v10 }
 0x297   : > { %1705 = vst.msk [vmem:[#allocation3 + $0x38] sm:$0xff] %vm1697_vm8, %v1616_v7  ;;  %v1440_v56 = vpop.permute.xlu2 %1439 }
 0x298   : > { %1520 = vst.msk [vmem:[#allocation3 + $0x80] sm:$0xff] %vm1503_vm7, %v1440_v56 }
 0x29a   : > { %v2347_v49 = vpop.f32.mrf.mxu3 }
 0x29b   : > { %1639 = vrot.lane.b32.xlu1 %v1556_v13, %s2894_s14  ;;  %v4097_v60 = vadd.f32 %v3975_v45, %v2347_v49  ;;  %v2284_v5 = vpop.f32.mrf.mxu0  ;;  %v1751_v13 = vld [vmem:[#allocation2 + $0x159] sm:$0xff] }
 0x29c   : > { %1814 = vrot.lane.b32.xlu0 %v1740_v52, %s2893_s13  ;;  %v4104_v0 = vadd.f32 %v3975_v45, %v2284_v5 }
 0x29d   : > { %v1634_v4 = vpop.permute.xlu1 %1633  ;;  %2514 = vst.msk [vmem:[%s3985_s29 + $0xc0] sm:$0xff] %vm465_vm0, %v4097_v60  ;;  %v2144_v47 = vld [vmem:[#allocation3 + $0xe0] sm:$0xff]  ;;  %1663 = vrot.lane.b32.xlu2 %v1568_v12, %s2894_s14 }
 0x29e   : > { %v1809_v9 = vpop.permute.xlu0 %1808  ;;  %1714 = vst.msk [vmem:[#allocation3 + $0x80] sm:$0xff] %vm1697_vm8, %v1634_v4  ;;  %2718 = vmatmul.msk.f32.gmra.mxu3 %vm2157_vm11, %v2144_v47 }
 0x29f   : > { %1898 = vst.msk [vmem:[#allocation3 + $0x38] sm:$0xff] %vm1890_vm9, %v1809_v9  ;;  %v2002_v3 = vpop.permute.xlu2 %2001 }
 0x2a0   : > { %2493 = vst.msk [vmem:[%s3985_s29 + $0x18] sm:$0xff] %vm465_vm0, %v4104_v0 }
 0x2a1   : > { %2091 = vst.msk [vmem:[#allocation3 + $0x38] sm:$0xff] %vm2083_vm10, %v2002_v3 }
 0x2a3   : > { %2025 = vrot.lane.b32.xlu1 %v1942_v35, %s2896_s16 }
 0x2a4   : > { %1832 = vrot.lane.b32.xlu0 %v1749_v58, %s2893_s13 }
 0x2a5   : > { %v1273_v59 = vpop.permute.xlu1 %1272  ;;  %1252 = vrot.lane.b32.xlu2 %v3921_v33, %s2892_s10  ;;  %v1557_v33 = vld [vmem:[#allocation2 + $0x150] sm:$0xff] }
 0x2a6   : > { %1340 = vst.msk [vmem:[#allocation3 + $0xe8] sm:$0xff] %vm1310_vm5, %v1273_v59  ;;  %v1827_v53 = vpop.permute.xlu0 %1826 }
 0x2a7   : > { %1907 = vst.msk [vmem:[#allocation3 + $0x80] sm:$0xff] %vm1890_vm9, %v1827_v53  ;;  %v2020_v25 = vpop.permute.xlu2 %2019 }
 0x2a8   : > { %v2123_v54 = vld [vmem:[#allocation3 + $0x38] sm:$0xff]  ;;  %2100 = vst.msk [vmem:[#allocation3 + $0x80] sm:$0xff] %vm2083_vm10, %v2020_v25 }
 0x2a9   : > { %v2311_v39 = vpop.f32.mrf.mxu2  ;;  %2697 = vmatmul.msk.f32.gmra.mxu0 %vm2157_vm11, %v2123_v54 }
 0x2aa   : > { %v4125_v14 = vadd.f32 %v3975_v45, %v2311_v39 }
 0x2ab   : > { %1623 = vrot.lane.b32.xlu1 %v1548_v6, %s2894_s14 }
 0x2ac   : > { %1254 = vrot.lane.b32.xlu0 %v3930_v15, %s2892_s10  ;;  %2502 = vst.msk [vmem:[%s3985_s29 + $0x60] sm:$0xff] %vm465_vm0, %v4125_v14  ;;  %v1741_v15 = vld [vmem:[#allocation2 + $0xe1] sm:$0xff] }
 0x2ad   : > { %v1660_v57 = vpop.permute.xlu1 %1659  ;;  %1445 = vrot.lane.b32.xlu2 %v3895_v48, %s2895_s15 }
 0x2ae   : > { %v1466_v16 = vpop.permute.xlu0 %1465 }
 0x2af   : > { %1533 = vst.msk [vmem:[#allocation3 + $0xe8] sm:$0xff] %vm1503_vm7, %v1466_v16  ;;  %v1424_v18 = vpop.permute.xlu2 %1423  ;;  %v2132_v20 = vld [vmem:[#allocation3 + $0x80] sm:$0xff] }
 0x2b0   : > { %1727 = vst.msk [vmem:[#allocation3 + $0xe8] sm:$0xff] %vm1697_vm8, %v1660_v57  ;;  %2706 = vmatmul.msk.f32.gmra.mxu2 %vm2157_vm11, %v2132_v20 }
 0x2b1   : > { %1512 = vst.msk [vmem:[#allocation3 + $0x40] sm:$0xff] %vm1503_vm7, %v1424_v18 }
 0x2b3   : > { %1641 = vrot.lane.b32.xlu1 %v1557_v33, %s2894_s14 }
 0x2b4   : > { %1816 = vrot.lane.b32.xlu0 %v1741_v15, %s2893_s13 }
 0x2b5   : > { %v1249_v55 = vpop.permute.xlu1 %1248  ;;  %2007 = vrot.lane.b32.xlu2 %v3800_v62, %s2896_s16 }
 0x2b6   : > { %1328 = vst.msk [vmem:[#allocation3 + $0x88] sm:$0xff] %vm1310_vm5, %v1249_v55  ;;  %v1853_v22 = vpop.permute.xlu0 %1852 }
 0x2b7   : > { %1920 = vst.msk [vmem:[#allocation3 + $0xe8] sm:$0xff] %vm1890_vm9, %v1853_v22  ;;  %v1618_v63 = vpop.permute.xlu2 %1617 }
 0x2b8   : > { %1706 = vst.msk [vmem:[#allocation3 + $0x40] sm:$0xff] %vm1697_vm8, %v1618_v63 }
 0x2b9   : > { %v2350_v8 = vpop.f32.mrf.mxu3 }
 0x2ba   : > { %v4147_v17 = vadd.f32 %v3975_v45, %v2350_v8 }
 0x2bb   : > { %2027 = vrot.lane.b32.xlu1 %v1943_v23, %s2896_s16 }
 0x2bc   : > { %1834 = vrot.lane.b32.xlu0 %v1750_v24, %s2893_s13  ;;  %2515 = vst.msk [vmem:[%s3985_s29 + $0xc8] sm:$0xff] %vm465_vm0, %v4147_v17 }
 0x2bd   : > { %v1442_v48 = vpop.permute.xlu1 %1441  ;;  %1429 = vrot.lane.b32.xlu2 %v3959_v36, %s2895_s15  ;;  %v2287_v62 = vpop.f32.mrf.mxu0  ;;  %v1944_v36 = vld [vmem:[#allocation2 + $0x15a] sm:$0xff] }
 0x2be   : > { %1521 = vst.msk [vmem:[#allocation3 + $0x88] sm:$0xff] %vm1503_vm7, %v1442_v48  ;;  %v2046_v29 = vpop.permute.xlu0 %2045  ;;  %v4161_v2 = vadd.f32 %v3975_v45, %v2287_v62 }
 0x2bf   : > { %2113 = vst.msk [vmem:[#allocation3 + $0xe8] sm:$0xff] %vm2083_vm10, %v2046_v29  ;;  %v1811_v37 = vpop.permute.xlu2 %1810 }
 0x2c0   : > { %2494 = vst.msk [vmem:[%s3985_s29 + $0x20] sm:$0xff] %vm465_vm0, %v4161_v2 }
 0x2c1   : > { %1899 = vst.msk [vmem:[#allocation3 + $0x40] sm:$0xff] %vm1890_vm9, %v1811_v37 }
 0x2c3   : > { %1643 = vrot.lane.b32.xlu1 %v1558_v30, %s2894_s14 }
 0x2c4   : > { %1449 = vrot.lane.b32.xlu0 %v3996_v11, %s2895_s15 }
 0x2c5   : > { %v2004_v51 = vpop.permute.xlu1 %2003  ;;  %1447 = vrot.lane.b32.xlu2 %v3969_v31, %s2895_s15 }
 0x2c6   : > { %v1636_v34 = vpop.permute.xlu0 %1635  ;;  %v2145_v40 = vld [vmem:[#allocation3 + $0xe8] sm:$0xff]  ;;  %2092 = vst.msk [vmem:[#allocation3 + $0x40] sm:$0xff] %vm2083_vm10, %v2004_v51 }
 0x2c7   : > { %2719 = vmatmul.msk.f32.gmra.mxu3 %vm2157_vm11, %v2145_v40  ;;  %1715 = vst.msk [vmem:[#allocation3 + $0x88] sm:$0xff] %vm1697_vm8, %v1636_v34  ;;  %v1829_v61 = vpop.permute.xlu2 %1828 }
 0x2c8   : > { %1908 = vst.msk [vmem:[#allocation3 + $0x88] sm:$0xff] %vm1890_vm9, %v1829_v61 }
 0x2cb   : > { %v2314_v21 = vpop.f32.mrf.mxu2 }
 0x2cc   : > { %2029 = vrot.lane.b32.xlu0 %v1944_v36, %s2896_s16  ;;  %v4178_v50 = vadd.f32 %v3975_v45, %v2314_v21  ;;  %v2423_v21 = vmul.f32 %v4125_v14, %v4125_v14 }
 0x2cd   : > { %v2022_v11 = vpop.permute.xlu1 %2021  ;;  %v2124_v42 = vld [vmem:[#allocation3 + $0x40] sm:$0xff]  ;;  %2009 = vrot.lane.b32.xlu2 %v3868_v38, %s2896_s16  ;;  %s326_s16 = scalar_lea.vmem [#allocation4], %s2667_s12 }
 0x2ce   : > { %v1275_v46 = vpop.permute.xlu0 %1274  ;;  %2101 = vst.msk [vmem:[#allocation3 + $0x88] sm:$0xff] %vm2083_vm10, %v2022_v11  ;;  %2698 = vmatmul.msk.f32.gmra.mxu0 %vm2157_vm11, %v2124_v42  ;;  %v2424_v11 = vmul.f32 %v4178_v50, %v4178_v50  ;;  %s2545_s28 = sshll.u32 %s326_s16, 4  ;;  %s2546_s28 = int_to_ptr.vmem [resolvable:$true] %s2545_s28 }
 0x2cf   : > { %1341 = vst.msk [vmem:[#allocation3 + $0xf0] sm:$0xff] %vm1310_vm5, %v1275_v46  ;;  %v1468_v28 = vpop.permute.xlu2 %1467 }
 0x2d0   : > { %2503 = vst.msk [vmem:[%s3985_s29 + $0x68] sm:$0xff] %vm465_vm0, %v4178_v50 }
 0x2d1   : > { %1534 = vst.msk [vmem:[#allocation3 + $0xf0] sm:$0xff] %vm1503_vm7, %v1468_v28 }
 0x2d5   : > { %v1426_v31 = vpop.permute.xlu1 %1425  ;;  %v2133_v10 = vld [vmem:[#allocation3 + $0x88] sm:$0xff]  ;;  %1256 = vrot.lane.b32.xlu2 %v4037_v27, %s2892_s10  ;;  %s2723_s10 = sshll.u32 %s2954_s25, 1  ;;  %s2529_s25 = scalar_lea.sflag [#allocation5], %s324_s11 }
 0x2d6   : > { %1513 = vst.msk [vmem:[#allocation3 + $0x48] sm:$0xff] %vm1503_vm7, %v1426_v31  ;;  %v1662_v19 = vpop.permute.xlu0 %1661  ;;  %2707 = vmatmul.msk.f32.gmra.mxu2 %vm2157_vm11, %v2133_v10  ;;  %s2543_s15 = scalar_lea.hbm %s4445_s6, %s2723_s10 }
 0x2d7   : > { %1728 = vst.msk [vmem:[#allocation3 + $0xf0] sm:$0xff] %vm1697_vm8, %v1662_v19  ;;  %v1855_v43 = vpop.permute.xlu2 %1854  ;;  %s2547_s17 = sshll.u32 %s2543_s15, 4  ;;  %s2548_s17 = int_to_ptr.hbm [resolvable:$true] %s2547_s17 }
 0x2d8   : > { %1921 = vst.msk [vmem:[#allocation3 + $0xf0] sm:$0xff] %vm1890_vm9, %v1855_v43  ;;  %s2838_s18 = sshra.s32 %s2548_s17, 4  ;;  %s2839_s18 = int_to_ptr.hbm [resolvable:$true] %s2838_s18 }
 0x2d9   : > { %s2840_s19 = scalar_lea.hbm %s2839_s18, 2  ;;  %p2845_p7 = scmp.lt.s32.totalorder %s2839_s18, %s4445_s6 }
 0x2da   : > { %p2841_p2 = scmp.ne.s32.totalorder %s2839_s18, %s2840_s19  ;;  %p2846_p8 = scmp.lt.s32.totalorder %s2844_s9, %s2840_s19 }
 0x2db   : > { %v2353_v52 = vpop.f32.mrf.mxu3 }
 0x2dc   : > { %v4195_v49 = vadd.f32 %v3975_v45, %v2353_v52  ;;  %p2842_p3 = pnand %p2841_p2, %p2971_p5  ;;  %p2847_p9 = por %p2846_p8, %p2845_p7 }
 0x2dd   : > { %v1620_v38 = vpop.permute.xlu1 %1619  ;;  %1836 = vrot.lane.b32.xlu2 %v1751_v13, %s2893_s13 }
 0x2de   : > { %1707 = vst.msk [vmem:[#allocation3 + $0x48] sm:$0xff] %vm1697_vm8, %v1620_v38  ;;  %v1251_v7 = vpop.permute.xlu0 %1250  ;;  %p2843_p4 = pneg %p2842_p3 }
 0x2df   : > { %1329 = vst.msk [vmem:[#allocation3 + $0x90] sm:$0xff] %vm1310_vm5, %v1251_v7  ;;  %v2048_v27 = vpop.permute.xlu2 %2047 }
 0x2e0   : > { %2516 = vst.msk [vmem:[%s3985_s29 + $0xd0] sm:$0xff] %vm465_vm0, %v4195_v49  ;;  %p2848_p10 = pnand %p2847_p9, %p2843_p4 }
 0x2e1   : > { %2114 = vst.msk [vmem:[#allocation3 + $0xf0] sm:$0xff] %vm2083_vm10, %v2048_v27 }
 0x2e4   : > { %v2290_v5 = vpop.f32.mrf.mxu0 }
 0x2e5   : > { %v1813_v4 = vpop.permute.xlu1 %1812  ;;  %v4203_v56 = vadd.f32 %v3975_v45, %v2290_v5 }
 0x2e6   : > { %v1444_v9 = vpop.permute.xlu0 %1443  ;;  %1900 = vst.msk [vmem:[#allocation3 + $0x48] sm:$0xff] %vm1890_vm9, %v1813_v4 }
 0x2e7   : > { %2495 = vst.msk [vmem:[%s3985_s29 + $0x28] sm:$0xff] %vm465_vm0, %v4203_v56  ;;  %v1638_v35 = vpop.permute.xlu2 %1637 }
 0x2e8   : > { %1522 = vst.msk [vmem:[#allocation3 + $0x90] sm:$0xff] %vm1503_vm7, %v1444_v9  ;;  %v2146_v12 = vld [vmem:[#allocation3 + $0xf0] sm:$0xff] }
 0x2e9   : > { %1716 = vst.msk [vmem:[#allocation3 + $0x90] sm:$0xff] %vm1697_vm8, %v1638_v35  ;;  %2720 = vmatmul.msk.f32.gmra.mxu3 %vm2157_vm11, %v2146_v12 }
 0x2ed   : > { %v1831_v47 = vpop.permute.xlu1 %1830 }
 0x2ee   : > { %v2006_v58 = vpop.permute.xlu0 %2005  ;;  %1909 = vst.msk [vmem:[#allocation3 + $0x90] sm:$0xff] %vm1890_vm9, %v1831_v47 }
 0x2ef   : > { %2093 = vst.msk [vmem:[#allocation3 + $0x48] sm:$0xff] %vm2083_vm10, %v2006_v58  ;;  %v1277_v6 = vpop.permute.xlu2 %1276 }
 0x2f0   : > { %1342 = vst.msk [vmem:[#allocation3 + $0xf8] sm:$0xff] %vm1310_vm5, %v1277_v6 }
 0x2f2   : > { %v2317_v59 = vpop.f32.mrf.mxu2 }
 0x2f3   : > { %v2318_v3 = vadd.f32 %v3975_v45, %v2317_v59 }
 0x2f5   : > { %v1470_v53 = vpop.permute.xlu1 %1469  ;;  %2504 = vst.msk [vmem:[%s3985_s29 + $0x70] sm:$0xff] %vm465_vm0, %v2318_v3  ;;  %v2425_v36 = vmul.f32 %v2318_v3, %v2318_v3 }
 0x2f6   : > { %v2024_v39 = vpop.permute.xlu0 %2023  ;;  %v2125_v57 = vld [vmem:[#allocation3 + $0x48] sm:$0xff]  ;;  %1535 = vst.msk [vmem:[#allocation3 + $0xf8] sm:$0xff] %vm1503_vm7, %v1470_v53 }
 0x2f7   : > { %2699 = vmatmul.msk.f32.gmra.mxu0 %vm2157_vm11, %v2125_v57  ;;  %2102 = vst.msk [vmem:[#allocation3 + $0x90] sm:$0xff] %vm2083_vm10, %v2024_v39  ;;  %v1664_v54 = vpop.permute.xlu2 %1663 }
 0x2f8   : > { %1729 = vst.msk [vmem:[#allocation3 + $0xf8] sm:$0xff] %vm1697_vm8, %v1664_v54 }
 0x2fd   : > { %v1857_v25 = vpop.permute.xlu1 %1856 }
 0x2fe   : > { %v1428_v16 = vpop.permute.xlu0 %1427  ;;  %1922 = vst.msk [vmem:[#allocation3 + $0xf8] sm:$0xff] %vm1890_vm9, %v1857_v25  ;;  %v2134_v33 = vld [vmem:[#allocation3 + $0x90] sm:$0xff] }
 0x2ff   : > { %1514 = vst.msk [vmem:[#allocation3 + $0x50] sm:$0xff] %vm1503_vm7, %v1428_v16  ;;  %2708 = vmatmul.msk.f32.gmra.mxu2 %vm2157_vm11, %v2134_v33  ;;  %v1253_v22 = vpop.permute.xlu2 %1252 }
 0x300   : > { %1330 = vst.msk [vmem:[#allocation3 + $0x98] sm:$0xff] %vm1310_vm5, %v1253_v22 }
 0x302   : > { %v2356_v15 = vpop.f32.mrf.mxu3 }
 0x303   : > { %v4226_v55 = vadd.f32 %v3975_v45, %v2356_v15  ;;  %v2293_v20 = vpop.f32.mrf.mxu0 }
 0x304   : > { %v4232_v23 = vadd.f32 %v3975_v45, %v2293_v20 }
 0x305   : > { %v2050_v18 = vpop.permute.xlu1 %2049  ;;  %2517 = vst.msk [vmem:[%s3985_s29 + $0xd8] sm:$0xff] %vm465_vm0, %v4226_v55 }
 0x306   : > { %v1622_v24 = vpop.permute.xlu0 %1621  ;;  %2115 = vst.msk [vmem:[#allocation3 + $0xf8] sm:$0xff] %vm2083_vm10, %v2050_v18 }
 0x307   : > { %1708 = vst.msk [vmem:[#allocation3 + $0x50] sm:$0xff] %vm1697_vm8, %v1622_v24  ;;  %v1446_v48 = vpop.permute.xlu2 %1445 }
 0x308   : > { %2496 = vst.msk [vmem:[%s3985_s29 + $0x30] sm:$0xff] %vm465_vm0, %v4232_v23 }
 0x309   : > { %1523 = vst.msk [vmem:[#allocation3 + $0x98] sm:$0xff] %vm1503_vm7, %v1446_v48 }
 0x30d   : > { %v1640_v8 = vpop.permute.xlu1 %1639  ;;  %v2147_v29 = vld [vmem:[#allocation3 + $0xf8] sm:$0xff] }
 0x30e   : > { %v1815_v63 = vpop.permute.xlu0 %1814  ;;  %2721 = vmatmul.msk.f32.gmra.mxu3 %vm2157_vm11, %v2147_v29  ;;  %1717 = vst.msk [vmem:[#allocation3 + $0x98] sm:$0xff] %vm1697_vm8, %v1640_v8 }
 0x30f   : > { %1901 = vst.msk [vmem:[#allocation3 + $0x50] sm:$0xff] %vm1890_vm9, %v1815_v63  ;;  %v2008_v51 = vpop.permute.xlu2 %2007 }
 0x310   : > { %2094 = vst.msk [vmem:[#allocation3 + $0x50] sm:$0xff] %vm2083_vm10, %v2008_v51 }
 0x311   : > { %v2320_v30 = vpop.f32.mrf.mxu2 }
 0x312   : > { %v2321_v37 = vadd.f32 %v3975_v45, %v2320_v30 }
 0x314   : > { %2505 = vst.msk [vmem:[%s3985_s29 + $0x78] sm:$0xff] %vm465_vm0, %v2321_v37  ;;  %2371 = vmatpush.msra.mxu1 %v2321_v37  ;;  %v2426_v40 = vmul.f32 %v2321_v37, %v2321_v37 }
 0x315   : > { %v2026_v62 = vpop.permute.xlu1 %2025 }
 0x316   : > { %v1833_v34 = vpop.permute.xlu0 %1832  ;;  %2372 = vmatpush.msra.mxu1 %v2318_v3  ;;  %2443 = vmatpush.msrb.mxu3 %v2426_v40 }
 0x317   : > { %1910 = vst.msk [vmem:[#allocation3 + $0x98] sm:$0xff] %vm1890_vm9, %v1833_v34  ;;  %v1430_v46 = vpop.permute.xlu2 %1429  ;;  %v2126_v42 = vld [vmem:[#allocation3 + $0x50] sm:$0xff] }
 0x318   : > { %2103 = vst.msk [vmem:[#allocation3 + $0x98] sm:$0xff] %vm2083_vm10, %v2026_v62  ;;  %2373 = vmatpush.msra.mxu1 %v4178_v50  ;;  %2444 = vmatpush.msrb.mxu3 %v2425_v36 }
 0x319   : > { %1515 = vst.msk [vmem:[#allocation3 + $0x58] sm:$0xff] %vm1503_vm7, %v1430_v46  ;;  %2700 = vmatmul.msk.f32.gmra.mxu0 %vm2157_vm11, %v2126_v42 }
 0x31a   : > { %2374 = vmatpush.msra.mxu1 %v4125_v14  ;;  %2445 = vmatpush.msrb.mxu3 %v2424_v11 }
 0x31c   : > { %2446 = vmatpush.msrb.mxu3 %v2423_v21  ;;  %v2417_v21 = vmul.f32 %v4232_v23, %v4232_v23 }
 0x31d   : > { %v1624_v61 = vpop.permute.xlu1 %1623 }
 0x31e   : > { %v1255_v31 = vpop.permute.xlu0 %1254  ;;  %1709 = vst.msk [vmem:[#allocation3 + $0x58] sm:$0xff] %vm1697_vm8, %v1624_v61 }
 0x31f   : > { %1331 = vst.msk [vmem:[#allocation3 + $0xa0] sm:$0xff] %vm1310_vm5, %v1255_v31  ;;  %v2135_v50 = vld [vmem:[#allocation3 + $0x98] sm:$0xff]  ;;  %v1448_v14 = vpop.permute.xlu2 %1447  ;;  %v2416_v31 = vmul.f32 %v4203_v56, %v4203_v56 }
 0x320   : > { %2709 = vmatmul.msk.f32.gmra.mxu2 %vm2157_vm11, %v2135_v50  ;;  %1524 = vst.msk [vmem:[#allocation3 + $0xa0] sm:$0xff] %vm1503_vm7, %v1448_v14  ;;  %v2415_v50 = vmul.f32 %v4161_v2, %v4161_v2 }
 0x321   : > { %v2359_v28 = vpop.f32.mrf.mxu3 }
 0x322   : > { %v4262_v19 = vadd.f32 %v3975_v45, %v2359_v28  ;;  %v2414_v28 = vmul.f32 %v4104_v0, %v4104_v0 }
 0x324   : > { %2518 = vst.msk [vmem:[%s3985_s29 + $0xe0] sm:$0xff] %vm465_vm0, %v4262_v19 }
 0x325   : > { %v1642_v10 = vpop.permute.xlu1 %1641 }
 0x326   : > { %v1817_v38 = vpop.permute.xlu0 %1816  ;;  %1718 = vst.msk [vmem:[#allocation3 + $0xa0] sm:$0xff] %vm1697_vm8, %v1642_v10  ;;  %v2296_v43 = vpop.f32.mrf.mxu0 }
 0x327   : > { %1902 = vst.msk [vmem:[#allocation3 + $0x58] sm:$0xff] %vm1890_vm9, %v1817_v38  ;;  %v4271_v7 = vadd.f32 %v3975_v45, %v2296_v43  ;;  %v2010_v52 = vpop.permute.xlu2 %2009  ;;  %v2897_v38 = vmov 1.0   ;;  %v2437_v43 = vmul.f32 %v4195_v49, %v4195_v49 }
 0x328   : > { %2095 = vst.msk [vmem:[#allocation3 + $0x58] sm:$0xff] %vm2083_vm10, %v2010_v52 }
 0x329   : > { %2497 = vst.msk [vmem:[%s3985_s29 + $0x38] sm:$0xff] %vm465_vm0, %v4271_v7  ;;  %v2418_v42 = vmul.f32 %v4271_v7, %v4271_v7 }
 0x32d   : > { %v2028_v13 = vpop.permute.xlu1 %2027 }
 0x32e   : > { %v1835_v4 = vpop.permute.xlu0 %1834 }
 0x32f   : > { %1911 = vst.msk [vmem:[#allocation3 + $0xa0] sm:$0xff] %vm1890_vm9, %v1835_v4  ;;  %v1257_v27 = vpop.permute.xlu2 %1256  ;;  %v2127_v9 = vld [vmem:[#allocation3 + $0x58] sm:$0xff] }
 0x330   : > { %2104 = vst.msk [vmem:[#allocation3 + $0xa0] sm:$0xff] %vm2083_vm10, %v2028_v13  ;;  %2701 = vmatmul.msk.f32.gmra.mxu0 %vm2157_vm11, %v2127_v9 }
 0x331   : > { %1332 = vst.msk [vmem:[#allocation3 + $0xa8] sm:$0xff] %vm1310_vm5, %v1257_v27 }
 0x333   : > { %v2323_v12 = vpop.f32.mrf.mxu2 }
 0x334   : > { %v4285_v58 = vadd.f32 %v3975_v45, %v2323_v12 }
 0x335   : > { %v1644_v5 = vpop.permute.xlu1 %1643 }
 0x336   : > { %v1450_v47 = vpop.permute.xlu0 %1449  ;;  %2506 = vst.msk [vmem:[%s3985_s29 + $0x80] sm:$0xff] %vm465_vm0, %v4285_v58 }
 0x337   : > { %1525 = vst.msk [vmem:[#allocation3 + $0xa8] sm:$0xff] %vm1503_vm7, %v1450_v47  ;;  %v2136_v35 = vld [vmem:[#allocation3 + $0xa0] sm:$0xff]  ;;  %v1837_v59 = vpop.permute.xlu2 %1836 }
 0x338   : > { %1719 = vst.msk [vmem:[#allocation3 + $0xa8] sm:$0xff] %vm1697_vm8, %v1644_v5  ;;  %2710 = vmatmul.msk.f32.gmra.mxu2 %vm2157_vm11, %v2136_v35 }
 0x339   : > { %1912 = vst.msk [vmem:[#allocation3 + $0xa8] sm:$0xff] %vm1890_vm9, %v1837_v59 }
 0x33e   : > { %v2030_v3 = vpop.permute.xlu0 %2029 }
 0x33f   : > { %2105 = vst.msk [vmem:[#allocation3 + $0xa8] sm:$0xff] %vm2083_vm10, %v2030_v3 }
 0x346   : > { %v2137_v53 = vld [vmem:[#allocation3 + $0xa8] sm:$0xff] }
 0x347   : > { %2711 = vmatmul.msk.f32.gmra.mxu2 %vm2157_vm11, %v2137_v53 }
 0x34a   : > { %v2362_v6 = vpop.f32.mrf.mxu3 }
 0x34b   : > { %v4294_v39 = vadd.f32 %v3975_v45, %v2362_v6  ;;  %v2299_v57 = vpop.f32.mrf.mxu0 }
 0x34c   : > { %v2300_v25 = vadd.f32 %v3975_v45, %v2299_v57 }
 0x34d   : > { %2519 = vst.msk [vmem:[%s3985_s29 + $0xe8] sm:$0xff] %vm465_vm0, %v4294_v39 }
 0x34e   : > { %2498 = vst.msk [vmem:[%s3985_s29 + $0x40] sm:$0xff] %vm465_vm0, %v2300_v25  ;;  %v2419_v61 = vmul.f32 %v2300_v25, %v2300_v25 }
 0x359   : > { %v2326_v54 = vpop.f32.mrf.mxu2 }
 0x35a   : > { %v4303_v16 = vadd.f32 %v3975_v45, %v2326_v54 }
 0x35c   : > { %2507 = vst.msk [vmem:[%s3985_s29 + $0x88] sm:$0xff] %vm465_vm0, %v4303_v16 }
 0x36c   : > { %v2365_v33 = vpop.f32.mrf.mxu3 }
 0x36d   : > { %v4309_v15 = vadd.f32 %v3975_v45, %v2365_v33 }
 0x36f   : > { %2520 = vst.msk [vmem:[%s3985_s29 + $0xf0] sm:$0xff] %vm465_vm0, %v4309_v15 }
 0x374   : > { %v2302_v18 = vpop.f32.mrf.mxu0 }
 0x375   : > { %v2303_v20 = vadd.f32 %v3975_v45, %v2302_v18 }
 0x377   : > { %2499 = vst.msk [vmem:[%s3985_s29 + $0x48] sm:$0xff] %vm465_vm0, %v2303_v20  ;;  %v2420_v36 = vmul.f32 %v2303_v20, %v2303_v20 }
 0x382   : > { %v2329_v22 = vpop.f32.mrf.mxu2 }
 0x383   : > { %v4318_v24 = vadd.f32 %v3975_v45, %v2329_v22 }
 0x385   : > { %2508 = vst.msk [vmem:[%s3985_s29 + $0x90] sm:$0xff] %vm465_vm0, %v4318_v24 }
 0x391   : > { %v2368_v8 = vpop.f32.mrf.mxu3 }
 0x392   : > { %v2369_v48 = vadd.f32 %v3975_v45, %v2368_v8 }
 0x394   : > { %2521 = vst.msk [vmem:[%s3985_s29 + $0xf8] sm:$0xff] %vm465_vm0, %v2369_v48  ;;  %2391 = vmatpush.msrb.mxu2 %v2369_v48  ;;  %v2442_v14 = vmul.f32 %v2369_v48, %v2369_v48 }
 0x396   : > { %2392 = vmatpush.msrb.mxu2 %v4309_v15  ;;  %v2305_v63 = vpop.f32.mrf.mxu0 }
 0x397   : > { %v2306_v29 = vadd.f32 %v3975_v45, %v2305_v63 }
 0x398   : > { %2393 = vmatpush.msrb.mxu2 %v4294_v39 }
 0x399   : > { %2500 = vst.msk [vmem:[%s3985_s29 + $0x50] sm:$0xff] %vm465_vm0, %v2306_v29  ;;  %v2421_v40 = vmul.f32 %v2306_v29, %v2306_v29 }
 0x39a   : > { %2394 = vmatpush.msrb.mxu2 %v4262_v19 }
 0x39c   : > { %2395 = vmatpush.msrb.mxu2 %v4226_v55 }
 0x39e   : > { %2396 = vmatpush.msrb.mxu2 %v4195_v49  ;;  %v2433_v49 = vmul.f32 %v4028_v1, %v4028_v1 }
 0x3a0   : > { %2397 = vmatpush.msrb.mxu2 %v4147_v17 }
 0x3a2   : > { %2398 = vmatpush.msrb.mxu2 %v4097_v60 }
 0x3a3   : > { %v2332_v30 = vpop.f32.mrf.mxu2 }
 0x3a4   : > { %2399 = vmatpush.msrb.mxu2 %v4067_v41  ;;  %v4338_v62 = vadd.f32 %v3975_v45, %v2332_v30 }
 0x3a6   : > { %2400 = vmatpush.msrb.mxu2 %v4028_v1  ;;  %2509 = vst.msk [vmem:[%s3985_s29 + $0x98] sm:$0xff] %vm465_vm0, %v4338_v62  ;;  %v2430_v52 = vmul.f32 %v4338_v62, %v4338_v62  ;;  %v2427_v1 = vmul.f32 %v4285_v58, %v4285_v58 }
 0x3ad   : > { %v2308_v51 = vpop.f32.mrf.mxu0 }
 0x3ae   : > { %v2309_v37 = vadd.f32 %v3975_v45, %v2308_v51 }
 0x3b0   : > { %2501 = vst.msk [vmem:[%s3985_s29 + $0x58] sm:$0xff] %vm465_vm0, %v2309_v37  ;;  %2375 = vmatpush.msra.mxu1 %v2309_v37  ;;  %v2422_v34 = vmul.f32 %v2309_v37, %v2309_v37 }
 0x3b2   : > { %2376 = vmatpush.msra.mxu1 %v2306_v29  ;;  %2447 = vmatpush.msrb.mxu3 %v2422_v34 }
 0x3b4   : > { %2377 = vmatpush.msra.mxu1 %v2303_v20  ;;  %2448 = vmatpush.msrb.mxu3 %v2421_v40 }
 0x3b6   : > { %2378 = vmatpush.msra.mxu1 %v2300_v25  ;;  %2449 = vmatpush.msrb.mxu3 %v2420_v36 }
 0x3b8   : > { %2379 = vmatpush.msra.mxu1 %v4271_v7  ;;  %2450 = vmatpush.msrb.mxu3 %v2419_v61  ;;  %v2436_v7 = vmul.f32 %v4147_v17, %v4147_v17 }
 0x3ba   : > { %2380 = vmatpush.msra.mxu1 %v4232_v23  ;;  %2451 = vmatpush.msrb.mxu3 %v2418_v42  ;;  %v2413_v23 = vmul.f32 %v4064_v32, %v4064_v32 }
 0x3bb   : > { %v2335_v11 = vpop.f32.mrf.mxu2 }
 0x3bc   : > { %v2336_v46 = vadd.f32 %v3975_v45, %v2335_v11  ;;  %2381 = vmatpush.msra.mxu1 %v4203_v56  ;;  %2452 = vmatpush.msrb.mxu3 %v2417_v21 }
 0x3be   : > { %2510 = vst.msk [vmem:[%s3985_s29 + $0xa0] sm:$0xff] %vm465_vm0, %v2336_v46  ;;  %2382 = vmatpush.msra.mxu1 %v4161_v2  ;;  %2453 = vmatpush.msrb.mxu3 %v2416_v31  ;;  %v2412_v2 = vmul.f32 %v4025_v26, %v4025_v26  ;;  %v2431_v17 = vmul.f32 %v2336_v46, %v2336_v46 }
 0x3c0   : > { %2383 = vmatpush.msra.mxu1 %v4104_v0  ;;  %2454 = vmatpush.msrb.mxu3 %v2415_v50  ;;  %v2411_v0 = vmul.f32 %v3989_v44, %v3989_v44 }
 0x3c2   : > { %2384 = vmatpush.msra.mxu1 %v4064_v32  ;;  %2455 = vmatpush.msrb.mxu3 %v2414_v28  ;;  %v2441_v32 = vmul.f32 %v4309_v15, %v4309_v15 }
 0x3c4   : > { %2385 = vmatpush.msra.mxu1 %v4025_v26  ;;  %2456 = vmatpush.msrb.mxu3 %v2413_v23  ;;  %v2438_v26 = vmul.f32 %v4226_v55, %v4226_v55  ;;  %v2434_v55 = vmul.f32 %v4067_v41, %v4067_v41  ;;  %v2428_v41 = vmul.f32 %v4303_v16, %v4303_v16 }
 0x3c6   : > { %2386 = vmatpush.msra.mxu1 %v3989_v44  ;;  %2457 = vmatpush.msrb.mxu3 %v2412_v2  ;;  %v2439_v44 = vmul.f32 %v4262_v19, %v4262_v19  ;;  %v2435_v19 = vmul.f32 %v4097_v60, %v4097_v60  ;;  %v2429_v60 = vmul.f32 %v4318_v24, %v4318_v24 }
 0x3c7   : > { %2387 = vmatmul.f32.vlgmr.msra.gmra.mxu1 %v2897_v38 }
 0x3c8   : > { %2463 = vmatpush.msrb.mxu1 %v2442_v14  ;;  %2458 = vmatpush.msrb.mxu3 %v2411_v0 }
 0x3c9   : > { %2459 = vmatmul.f32.vlgmr.msrb.gmra.mxu3 %v2897_v38 }
 0x3ca   : > { %v2338_v56 = vpop.f32.mrf.mxu2  ;;  %2464 = vmatpush.msrb.mxu1 %v2441_v32 }
 0x3cb   : > { %v2339_v10 = vadd.f32 %v3975_v45, %v2338_v56  ;;  %v2440_v45 = vmul.f32 %v4294_v39, %v4294_v39 }
 0x3cd   : > { %2511 = vst.msk [vmem:[%s3985_s29 + $0xa8] sm:$0xff] %vm465_vm0, %v2339_v10  ;;  %2401 = vmatpush.msrb.mxu2 %v2339_v10  ;;  %2465 = vmatpush.msrb.mxu1 %v2440_v45  ;;  %v2432_v13 = vmul.f32 %v2339_v10, %v2339_v10 }
 0x3cf   : > { %2402 = vmatpush.msrb.mxu2 %v2336_v46  ;;  %2466 = vmatpush.msrb.mxu1 %v2439_v44 }
 0x3d1   : > { %2403 = vmatpush.msrb.mxu2 %v4338_v62  ;;  %2467 = vmatpush.msrb.mxu1 %v2438_v26 }
 0x3d3   : > { %2404 = vmatpush.msrb.mxu2 %v4318_v24  ;;  %2468 = vmatpush.msrb.mxu1 %v2437_v43 }
 0x3d5   : > { %2405 = vmatpush.msrb.mxu2 %v4303_v16  ;;  %2469 = vmatpush.msrb.mxu1 %v2436_v7 }
 0x3d7   : > { %2406 = vmatpush.msrb.mxu2 %v4285_v58  ;;  %2470 = vmatpush.msrb.mxu1 %v2435_v19 }
 0x3d8   : > { %2407 = vmatmul.f32.vlgmr.msrb.gmra.mxu2 %v2897_v38 }
 0x3d9   : > { %2471 = vmatpush.msrb.mxu1 %v2434_v55 }
 0x3db   : > { %2472 = vmatpush.msrb.mxu1 %v2433_v49 }
 0x3dd   : > { %2473 = vmatpush.msrb.mxu1 %v2432_v13 }
 0x3df   : > { %2474 = vmatpush.msrb.mxu1 %v2431_v17 }
 0x3e1   : > { %2475 = vmatpush.msrb.mxu1 %v2430_v52 }
 0x3e3   : > { %2476 = vmatpush.msrb.mxu1 %v2429_v60 }
 0x3e5   : > { %2477 = vmatpush.msrb.mxu1 %v2428_v41 }
 0x3e7   : > { %2478 = vmatpush.msrb.mxu1 %v2427_v1 }
 0x3e8   : > { %2479 = vmatmul.f32.vlgmr.msrb.gmra.mxu1 %v2897_v38 }
 0x444   : > { %v2388_v4 = vpop.f32.mrf.mxu1 }
 0x44c   : > { %v2460_v27 = vpop.f32.mrf.mxu3 }
 0x45b   : > { %v2408_v9 = vpop.f32.mrf.mxu2 }
 0x45c   : > { %v2409_v12 = vadd.f32 %v2408_v9, %v2388_v4 }
 0x465   : > { %v2480_v5 = vpop.f32.mrf.mxu1 }
 0x466   : > { %v2481_v47 = vadd.f32 %v2480_v5, %v2460_v27 }
 0x468   : > { %v2484_v35 = vrot.slane %v2481_v47, 7 }
 0x46a   : > { %v2487_v58 = vsel %vm2486_vm12, %v2409_v12, %v2484_v35 }
 0x46b   : > { %2489 = vst.msk [vmem:[%s326_s16] sm:$0x3] %vm2488_vm13, %v2487_v58 }
 0x46c   : > { %2851 = shalt.err (!%p2848_p10)
}
 0x46d   : > { %2750 = dma.vmem_to_hbm [thread:$0]  (%p2971_p5), %s2546_s28, 32, %s2548_s17, %s2529_s25  }
 0x46e PF: > { %p2756_p11 = scmp.ge.s32.totalorder %s2886_s24, 2  ;;  %s2568_s11 = sand.u32 1, %s2874_s21  }
 0x46f   : > { %s2569_s10 = scalar_lea.sflag [#allocation5], %s2568_s11 }
 0x470   : > { %p2753_p12 = pnand %p2756_p11, %p2975_p6 }
 0x472   : > { %p2754_p13 = pneg %p2753_p12 }
 0x474   : > { %2869 = dma.done.wait (%p2754_p13), %s2569_s10, 32  }
 0x475   : > { %2871 = vsyncadd (%p2754_p13), %s2569_s10, 4294967264  ;;  %p17_p0 = scmp.ge.s32.totalorder %s2958_s27, 4   ;;  %s4461_s21 = smov %s2878_s22 }
 0x476   : > { %s4462_s22 = smov %s2882_s23  ;;  %s4463_s23 = smov %s2969_s30 }
 0x477   : > { %s4464_s24 = smov %s2958_s27  ;;  %19 = sbr.rel (!%p17_p0) target bundleno = 3 (0x3), region = 96 }
 0x47c   :  { %2575 = vsyncpa [#allocation5], 1 }
 0x47d   :  { %2577 = vsyncpa [#allocation5 + $0x1], 1 }

</bundles_post_ra>
